<compile_context>
chip_gen: v5e
topology: v5e:2x2
jax: 0.10.0
libtpu: 0.0.40
codegen_flags: <defaults>
</compile_context>

<pallas_src>
import functools

import jax
import jax.numpy as jnp
from jax.experimental import pallas as pl
from jax.experimental.pallas import tpu as pltpu

_EPS = 1e-5              # BatchNorm eps (PyTorch default)
_LANE = 128              # channel dims padded to a multiple of this
_TM_MAX = 512            # max row tile (rows = N*H*W)
_CDTYPE = jnp.bfloat16   # MXU input / intermediate dtype
_EPI_F32_BYTES = 2 * 1024 * 1024      # cap on tm*tn*4 (f32 epilogue tile)
_W_SINGLE_TILE_BYTES = 8 * 1024 * 1024  # single-N-tile weight budget


def _round_up(x, m):
    return ((x + m - 1) // m) * m


def _cdiv(a, b):
    return (a + b - 1) // b


def _pick_tm(m, n_pad):
    """Row tile: multiple of 64, bounded so the f32 epilogue tile stays small."""
    lim = max(64, (_EPI_F32_BYTES // (4 * n_pad)) // 64 * 64)
    return int(max(64, min(_TM_MAX, lim, _round_up(m, 64))))


def _pick_halo(off_max, tm):
    """Smallest multiple of 8 that is >= off_max and divides tm (else tm)."""
    h = _round_up(off_max, 8)
    while h < tm and tm % h:
        h += 8
    return int(min(h, tm))


def _vmem_limit(block_bytes):
    return int(min(56 << 20, max(32 << 20, int(block_bytes) + (4 << 20))))


# ---------------------------------------------------------------------------
# Pallas kernels
# ---------------------------------------------------------------------------
def _matmul_bias_kernel(x_ref, w_ref, b_ref, o_ref, *, relu):
    """(tm, K) @ (K, tn) + bias, optional ReLU.  BN scale pre-folded into w."""
    acc = jnp.dot(x_ref[...], w_ref[...], preferred_element_type=jnp.float32)
    y = acc + b_ref[...]
    if relu:
        y = jnp.maximum(y, 0.0)
    o_ref[...] = y.astype(o_ref.dtype)


def _matmul_bias_add_relu_kernel(x_ref, w_ref, b_ref, r_ref, o_ref):
    """conv3 + bn3 + residual add + ReLU fused."""
    acc = jnp.dot(x_ref[...], w_ref[...], preferred_element_type=jnp.float32)
    y = acc + b_ref[...] + r_ref[...].astype(jnp.float32)
    o_ref[...] = jnp.maximum(y, 0.0).astype(o_ref.dtype)


def _conv3x3_tap_kernel(x_ref, halo_ref, w_ref, b_ref, o_ref, buf_ref, *, offs):
    """9-tap 3x3 (stride 1) conv over a row-flattened, spatially padded input.

    Each tap is a constant row offset into the (tm + halo) VMEM window; the
    accumulation is 9 MXU matmuls into an f32 accumulator (no HBM im2col).
    """
    tm = x_ref.shape[0]
    halo = halo_ref.shape[0]
    cout = o_ref.shape[1]
    buf_ref[pl.ds(0, tm), :] = x_ref[...]
    buf_ref[pl.ds(tm, halo), :] = halo_ref[...]
    acc = jnp.zeros((tm, cout), jnp.float32)
    for t, off in enumerate(offs):
        tap = buf_ref[pl.ds(off, tm), :]
        acc = acc + jnp.dot(tap, w_ref[t], preferred_element_type=jnp.float32)
    y = jnp.maximum(acc + b_ref[...], 0.0)
    o_ref[...] = y.astype(o_ref.dtype)


# ---------------------------------------------------------------------------
# Kernel wrappers
# ---------------------------------------------------------------------------
def _matmul_bias(x2d, w, bias2d, residual=None, relu=True, out_dtype=_CDTYPE):
    """Tiled (rows, K) @ (K, N) + bias (+ residual + ReLU); bf16 in, f32 acc.

    Grid is (row tiles outer/parallel, channel tiles inner); N is a single tile
    whenever the weight slab is small, so activations are streamed once.
    """
    m, k = x2d.shape
    n = w.shape[1]
    tm = _pick_tm(m, n)
    tn = n if k * n * 2 <= _W_SINGLE_TILE_BYTES else min(n, 512)
    grid = (_cdiv(m, tm), _cdiv(n, tn))      # rows outer, channels inner

    x2d = x2d.astype(_CDTYPE)
    w = w.astype(_CDTYPE)
    bias2d = bias2d.astype(jnp.float32)

    in_specs = [
        pl.BlockSpec((tm, k), lambda i, j: (i, 0)),   # activations (row tile)
        pl.BlockSpec((k, tn), lambda i, j: (0, j)),   # BN-folded weights
        pl.BlockSpec((1, tn), lambda i, j: (0, j)),   # folded bias
    ]
    args = [x2d, w, bias2d]
    if residual is None:
        kernel = functools.partial(_matmul_bias_kernel, relu=relu)
    else:
        kernel = _matmul_bias_add_relu_kernel
        in_specs.append(pl.BlockSpec((tm, tn), lambda i, j: (i, j)))
        args.append(residual.astype(_CDTYPE))

    # VMEM (double-buffered operands + f32 epilogue) and HBM-traffic estimates.
    block_bytes = (2 * tm * k * 2 + 2 * k * tn * 2 + 2 * tn * 4
                   + 2 * tm * tn * 2 + tm * tn * 4)
    if residual is not None:
        block_bytes += 2 * tm * tn * 2
    w_streams = grid[0] if grid[1] > 1 else 1
    bytes_accessed = int(m * k * 2 + k * n * 2 * w_streams + n * 4 + m * n * 2
                         + (m * n * 2 if residual is not None else 0))

    return pl.pallas_call(
        kernel,
        out_shape=jax.ShapeDtypeStruct((m, n), out_dtype),
        grid=grid,
        in_specs=in_specs,
        out_specs=pl.BlockSpec((tm, tn), lambda i, j: (i, j)),
        compiler_params=pltpu.CompilerParams(
            dimension_semantics=("parallel", "parallel"),
            vmem_limit_bytes=_vmem_limit(block_bytes)),
        cost_estimate=pl.CostEstimate(
            flops=2 * m * k * n, transcendentals=0,
            bytes_accessed=bytes_accessed),
    )(*args)


def _conv3x3_s1_bn_relu(y_nhwc, w_taps, bias2d):
    """3x3 / stride 1 / pad 1 conv + folded BN bias + ReLU, no HBM im2col.

    Works in a row-flattened spatially padded space: output row r reads input
    rows r + (dh*Wp + dw); extra (pad-border) rows are computed and discarded.
    """
    n, h, w, c = y_nhwc.shape
    cout = w_taps.shape[-1]
    hp, wp = h + 2, w + 2
    m = n * hp * wp
    tm = _pick_tm(m, cout)
    m_pad = _round_up(m, tm)
    off_max = 2 * wp + 2
    halo = _pick_halo(off_max, tm)

    xp = jnp.pad(y_nhwc, ((0, 0), (1, 1), (1, 1), (0, 0))).reshape(m, c)
    xp = jnp.pad(xp, ((0, m_pad + halo - m), (0, 0))).astype(_CDTYPE)
    w_taps = w_taps.astype(_CDTYPE)
    bias2d = bias2d.astype(jnp.float32)

    offs = tuple(dh * wp + dw for dh in range(3) for dw in range(3))
    grid = (m_pad // tm,)
    steps = tm // halo

    block_bytes = (2 * tm * c * 2 + 2 * halo * c * 2 + 2 * 9 * c * cout * 2
                   + 2 * cout * 4 + 2 * tm * cout * 2
                   + (tm + halo) * c * 2 + tm * cout * 4)
    bytes_accessed = int((m_pad + grid[0] * halo) * c * 2
                         + 9 * c * cout * 2 + cout * 4 + m_pad * cout * 2)

    out = pl.pallas_call(
        functools.partial(_conv3x3_tap_kernel, offs=offs),
        out_shape=jax.ShapeDtypeStruct((m_pad, cout), _CDTYPE),
        grid=grid,
        in_specs=[
            pl.BlockSpec((tm, c), lambda i: (i, 0)),                    # row tile
            pl.BlockSpec((halo, c), lambda i: ((i + 1) * steps, 0)),    # halo rows
            pl.BlockSpec((9, c, cout), lambda i: (0, 0, 0)),            # 9 tap weights
            pl.BlockSpec((1, cout), lambda i: (0, 0)),                  # folded bias
        ],
        out_specs=pl.BlockSpec((tm, cout), lambda i: (i, 0)),
        scratch_shapes=[pltpu.VMEM((tm + halo, c), _CDTYPE)],
        compiler_params=pltpu.CompilerParams(
            dimension_semantics=("parallel",),
            vmem_limit_bytes=_vmem_limit(block_bytes)),
        cost_estimate=pl.CostEstimate(
            flops=2 * m_pad * 9 * c * cout, transcendentals=0,
            bytes_accessed=bytes_accessed),
    )(xp, xp, w_taps, bias2d)

    # Strip the spatial-pad / garbage rows -> (N, H, W, Cout).
    return out[:m].reshape(n, hp, wp, cout)[:, :h, :w, :]


# ---------------------------------------------------------------------------
# Plain-JAX glue (strided fallback only)
# ---------------------------------------------------------------------------
def _im2col_3x3(x_nhwc, stride):
    """3x3, padding=1, given stride -> (N*Ho*Wo, 9*C) bf16 patches."""
    n, h, w, c = x_nhwc.shape
    xp = jnp.pad(x_nhwc, ((0, 0), (1, 1), (1, 1), (0, 0)))
    ho = (h + 2 - 3) // stride + 1
    wo = (w + 2 - 3) // stride + 1
    cols = []
    for dh in range(3):
        for dw in range(3):
            cols.append(xp[:,
                           dh:dh + (ho - 1) * stride + 1:stride,
                           dw:dw + (wo - 1) * stride + 1:stride, :])
    patches = jnp.concatenate(cols, axis=-1)          # (n, ho, wo, 9*c)
    return patches.reshape(n * ho * wo, 9 * c), (n, ho, wo)


# ---------------------------------------------------------------------------
# Parameter folding (BN -> affine, channel padding, bf16) -- done ONCE
# ---------------------------------------------------------------------------
def _fold_bn(bn, conv_b):
    scale = bn["gamma"] / jnp.sqrt(bn["var"] + _EPS)
    bias = (conv_b - bn["mean"]) * scale + bn["beta"]
    return scale, bias


def _pad2(a, rows, cols):
    return jnp.pad(a, ((0, rows - a.shape[0]), (0, cols - a.shape[1])))


def _pad_bias(b, n_pad):
    return jnp.pad(b, (0, n_pad - b.shape[0])).reshape(1, n_pad).astype(jnp.float32)


def fold_block_params(p, cin_p):
    mid = p["conv1_w"].shape[1]
    out_ch = p["conv3_w"].shape[1]
    mid_p = _round_up(mid, _LANE)
    out_p = _round_up(out_ch, _LANE)
    fp = dict(stride=p["stride"], conv_flag=p["conv_flag"], out_ch=out_ch)

    s1, b1 = _fold_bn(p["bn1"], p["conv1_b"])
    fp["w1"] = _pad2(p["conv1_w"] * s1[None, :], cin_p, mid_p).astype(_CDTYPE)
    fp["b1"] = _pad_bias(b1, mid_p)

    s2, b2 = _fold_bn(p["bn2"], p["conv2_b"])
    w2 = p["conv2_w"] * s2[None, None, None, :]
    w2 = jnp.pad(w2, ((0, 0), (0, 0), (0, mid_p - mid), (0, mid_p - mid)))
    fp["w2"] = w2.reshape(9, mid_p, mid_p).astype(_CDTYPE)   # taps (dh*3+dw)-major
    fp["b2"] = _pad_bias(b2, mid_p)

    s3, b3 = _fold_bn(p["bn3"], p["conv3_b"])
    fp["w3"] = _pad2(p["conv3_w"] * s3[None, :], mid_p, out_p).astype(_CDTYPE)
    fp["b3"] = _pad_bias(b3, out_p)

    if p["conv_flag"]:
        sp, bp = _fold_bn(p["norm"], p["plus_b"])
        fp["wp"] = _pad2(p["plus_w"] * sp[None, :], cin_p, out_p).astype(_CDTYPE)
        fp["bp"] = _pad_bias(bp, out_p)
    return fp, out_p


def fold_conv_layer_params(params, in_ch):
    cin_p = _round_up(in_ch, _LANE)
    folded = []
    for p in params:
        fp, cin_p = fold_block_params(p, cin_p)
        folded.append(fp)
    return folded


# ---------------------------------------------------------------------------
# Deterministic parameter init (synthetic; shapes follow the PyTorch module)
# ---------------------------------------------------------------------------
def _init_bn(key, c):
    k1, k2, k3 = jax.random.split(key, 3)
    return dict(
        gamma=1.0 + 0.1 * jax.random.normal(k1, (c,), jnp.float32),
        beta=0.1 * jax.random.normal(k2, (c,), jnp.float32),
        mean=0.1 * jax.random.normal(k3, (c,), jnp.float32),
        var=0.9 * jnp.ones((c,), jnp.float32),
    )


def _init_conv1x1(key, c_in, c_out):
    kw, kb = jax.random.split(key)
    w = jax.random.normal(kw, (c_in, c_out), jnp.float32) / jnp.sqrt(float(c_in))
    b = 0.05 * jax.random.normal(kb, (c_out,), jnp.float32)
    return w, b


def _init_conv3x3(key, c_in, c_out):
    kw, kb = jax.random.split(key)
    fan_in = 9 * c_in
    w = jax.random.normal(kw, (3, 3, c_in, c_out), jnp.float32) / jnp.sqrt(float(fan_in))
    b = 0.05 * jax.random.normal(kb, (c_out,), jnp.float32)
    return w, b


def init_residual_block(key, in_ch, out_ch, stride, conv_flag):
    mid = out_ch // 4
    keys = jax.random.split(key, 8)
    p = dict(stride=stride, conv_flag=conv_flag)
    p["conv1_w"], p["conv1_b"] = _init_conv1x1(keys[0], in_ch, mid)     # 1x1
    p["bn1"] = _init_bn(keys[1], mid)
    p["conv2_w"], p["conv2_b"] = _init_conv3x3(keys[2], mid, mid)       # 3x3
    p["bn2"] = _init_bn(keys[3], mid)
    p["conv3_w"], p["conv3_b"] = _init_conv1x1(keys[4], mid, out_ch)    # 1x1
    p["bn3"] = _init_bn(keys[5], out_ch)
    if conv_flag:
        p["plus_w"], p["plus_b"] = _init_conv1x1(keys[6], in_ch, out_ch)  # 1x1, stride
        p["norm"] = _init_bn(keys[7], out_ch)
    return p


def init_conv_layer(key, in_ch, out_ch, stride, block_num):
    keys = jax.random.split(key, block_num)
    blocks = [init_residual_block(keys[0], in_ch, out_ch, stride, True)]
    for i in range(1, block_num):
        blocks.append(init_residual_block(keys[i], out_ch, out_ch, 1, False))
    return blocks


# ---------------------------------------------------------------------------
# Forward
# ---------------------------------------------------------------------------
def residual_block_forward(fp, x_nhwc):
    """x_nhwc is channel-padded bf16; returns channel-padded bf16."""
    n, h, w, cin_p = x_nhwc.shape
    stride = fp["stride"]
    mid_p = fp["w1"].shape[1]
    out_p = fp["w3"].shape[1]

    # conv1 (1x1) + bn1 + relu
    y1 = _matmul_bias(x_nhwc.reshape(n * h * w, cin_p), fp["w1"], fp["b1"],
                      relu=True)
    y1 = y1.reshape(n, h, w, mid_p)

    # conv2 (3x3, stride, pad 1) + bn2 + relu
    if stride == 1 and (2 * (w + 2) + 2) <= _pick_tm(n * (h + 2) * (w + 2), mid_p):
        y2 = _conv3x3_s1_bn_relu(y1, fp["w2"], fp["b2"])       # no HBM im2col
        ho, wo = h, w
        y2 = y2.reshape(n * ho * wo, mid_p)
    else:
        # TODO(synk): strided conv2 still feeds an HBM-materialized im2col.
        patches, (_, ho, wo) = _im2col_3x3(y1, stride)
        y2 = _matmul_bias(patches, fp["w2"].reshape(9 * mid_p, mid_p),
                          fp["b2"], relu=True)

    # residual branch
    if fp["conv_flag"]:
        # TODO(synk): downsample gather is still an XLA strided slice.
        xs = x_nhwc[:, ::stride, ::stride, :].reshape(n * ho * wo, cin_p)
        res = _matmul_bias(xs, fp["wp"], fp["bp"], relu=False)
    else:
        assert cin_p == out_p and stride == 1
        res = x_nhwc.reshape(n * h * w, cin_p)

    # conv3 (1x1) + bn3 + residual add + relu (fully fused kernel)
    y3 = _matmul_bias(y2, fp["w3"], fp["b3"], residual=res, relu=True)
    return y3.reshape(n, ho, wo, out_p)


def conv_layer_forward(folded, x_nchw):
    x = jnp.transpose(x_nchw, (0, 2, 3, 1))                 # NCHW -> NHWC
    c_in = x.shape[-1]
    cin_p = _round_up(c_in, _LANE)
    x = jnp.pad(x, ((0, 0), (0, 0), (0, 0), (0, cin_p - c_in))).astype(_CDTYPE)
    for fp in folded:
        x = residual_block_forward(fp, x)
    out_ch = folded[-1]["out_ch"]
    x = x[..., :out_ch].astype(jnp.float32)                 # strip channel pad
    return jnp.transpose(x, (0, 3, 1, 2))                   # NHWC -> NCHW


# ---------------------------------------------------------------------------
if __name__ == "__main__":
    key = jax.random.PRNGKey(0)
    kx, kp = jax.random.split(key)

    in_channels, out_channels, stride, block_num = 4, 16, 2, 2
    x = jax.random.normal(kx, (2, in_channels, 16, 16), jnp.float32)

    params = init_conv_layer(kp, in_channels, out_channels, stride, block_num)
    folded = fold_conv_layer_params(params, in_channels)    # BN folding once
    fwd = jax.jit(lambda xx: conv_layer_forward(folded, xx))
    y = fwd(x)
    jax.block_until_ready(y)

    assert y.shape == (2, out_channels, 8, 8), y.shape
    assert bool(jnp.all(y >= 0.0))   # final ReLU
    print("KERNEL_OK")
</pallas_src>

<mosaic_0001>
module attributes {stable_mosaic.version = 11 : i64} {
  func.func @_matmul_bias_kernel(%arg0: i32, %arg1: i32, %arg2: memref<128x128xbf16, #tpu.memory_space<vmem>>, %arg3: memref<128x128xbf16, #tpu.memory_space<vmem>>, %arg4: memref<1x128xf32, #tpu.memory_space<vmem>>, %arg5: memref<128x128xbf16, #tpu.memory_space<vmem>>) attributes {dimension_semantics = [#tpu.dimension_semantics<parallel>, #tpu.dimension_semantics<parallel>], iteration_bounds = array<i64: 1, 1>, scalar_prefetch = 0 : i64, scratch_operands = 0 : i64, tpu.core_type = #tpu.core_type<tc>, window_params = [{transform_indices = @transform_0, window_bounds = array<i64: 128, 128>}, {transform_indices = @transform_1, window_bounds = array<i64: 128, 128>}, {transform_indices = @transform_2, window_bounds = array<i64: 1, 128>}, {transform_indices = @transform_3, window_bounds = array<i64: 128, 128>}]} {
    %c0 = arith.constant 0 : index
    %c0_0 = arith.constant 0 : index
    %0 = vector.load %arg2[%c0, %c0_0] : memref<128x128xbf16, #tpu.memory_space<vmem>>, vector<128x128xbf16>
    %c0_1 = arith.constant 0 : index
    %c0_2 = arith.constant 0 : index
    %1 = vector.load %arg3[%c0_1, %c0_2] : memref<128x128xbf16, #tpu.memory_space<vmem>>, vector<128x128xbf16>
    %cst = arith.constant dense<0.000000e+00> : vector<128x128xf32>
    %2 = tpu.matmul %0, %1, %cst {dimension_numbers = #tpu.dot_dimension_numbers<[1], [0], [0], [1], [0, 0, 1, 1], [], []>} : vector<128x128xbf16>, vector<128x128xbf16>, vector<128x128xf32> -> vector<128x128xf32>
    %c0_3 = arith.constant 0 : index
    %c0_4 = arith.constant 0 : index
    %3 = vector.load %arg4[%c0_3, %c0_4] : memref<1x128xf32, #tpu.memory_space<vmem>>, vector<1x128xf32>
    %4 = vector.broadcast %3 : vector<1x128xf32> to vector<128x128xf32>
    %5 = arith.addf %2, %4 : vector<128x128xf32>
    %6 = arith.truncf %5 : vector<128x128xf32> to vector<128x128xbf16>
    %c0_5 = arith.constant 0 : index
    %c0_6 = arith.constant 0 : index
    %7 = vector.load %arg5[%c0_5, %c0_6] : memref<128x128xbf16, #tpu.memory_space<vmem>>, vector<128x128xbf16>
    tpu.vector_store %arg5[%c0_5, %c0_6], %6 {strides = array<i32>} : memref<128x128xbf16, #tpu.memory_space<vmem>>, vector<128x128xbf16>,
    return
  }
  func.func @transform_0(%arg0: i32, %arg1: i32) -> (i32, i32) {
    %c0_i32 = arith.constant 0 : i32
    %c0_i32_0 = arith.constant 0 : i32
    return %arg0, %c0_i32 : i32, i32
  }
  func.func @transform_1(%arg0: i32, %arg1: i32) -> (i32, i32) {
    %c0_i32 = arith.constant 0 : i32
    %c0_i32_0 = arith.constant 0 : i32
    return %c0_i32, %arg1 : i32, i32
  }
  func.func @transform_2(%arg0: i32, %arg1: i32) -> (i32, i32) {
    %c0_i32 = arith.constant 0 : i32
    %c0_i32_0 = arith.constant 0 : i32
    return %c0_i32, %arg1 : i32, i32
  }
  func.func @transform_3(%arg0: i32, %arg1: i32) -> (i32, i32) {
    %c0_i32 = arith.constant 0 : i32
    return %arg0, %arg1 : i32, i32
  }
}

module attributes {stable_mosaic.version = 11 : i64} {
  func.func @_matmul_bias_kernel(%arg0: i32, %arg1: i32, %arg2: memref<512x128xbf16, #tpu.memory_space<vmem>>, %arg3: memref<128x128xbf16, #tpu.memory_space<vmem>>, %arg4: memref<1x128xf32, #tpu.memory_space<vmem>>, %arg5: memref<512x128xbf16, #tpu.memory_space<vmem>>) attributes {dimension_semantics = [#tpu.dimension_semantics<parallel>, #tpu.dimension_semantics<parallel>], iteration_bounds = array<i64: 1, 1>, scalar_prefetch = 0 : i64, scratch_operands = 0 : i64, tpu.core_type = #tpu.core_type<tc>, window_params = [{transform_indices = @transform_0, window_bounds = array<i64: 512, 128>}, {transform_indices = @transform_1, window_bounds = array<i64: 128, 128>}, {transform_indices = @transform_2, window_bounds = array<i64: 1, 128>}, {transform_indices = @transform_3, window_bounds = array<i64: 512, 128>}]} {
    %c0 = arith.constant 0 : index
    %c0_0 = arith.constant 0 : index
    %0 = vector.load %arg2[%c0, %c0_0] : memref<512x128xbf16, #tpu.memory_space<vmem>>, vector<512x128xbf16>
    %c0_1 = arith.constant 0 : index
    %c0_2 = arith.constant 0 : index
    %1 = vector.load %arg3[%c0_1, %c0_2] : memref<128x128xbf16, #tpu.memory_space<vmem>>, vector<128x128xbf16>
    %cst = arith.constant dense<0.000000e+00> : vector<512x128xf32>
    %2 = tpu.matmul %0, %1, %cst {dimension_numbers = #tpu.dot_dimension_numbers<[1], [0], [0], [1], [0, 0, 1, 1], [], []>} : vector<512x128xbf16>, vector<128x128xbf16>, vector<512x128xf32> -> vector<512x128xf32>
    %c0_3 = arith.constant 0 : index
    %c0_4 = arith.constant 0 : index
    %3 = vector.load %arg4[%c0_3, %c0_4] : memref<1x128xf32, #tpu.memory_space<vmem>>, vector<1x128xf32>
    %4 = vector.broadcast %3 : vector<1x128xf32> to vector<512x128xf32>
    %5 = arith.addf %2, %4 : vector<512x128xf32>
    %cst_5 = arith.constant 0.000000e+00 : f32
    %6 = vector.broadcast %cst_5 : f32 to vector<512x128xf32>
    %7 = arith.maximumf %5, %6 : vector<512x128xf32>
    %8 = arith.truncf %7 : vector<512x128xf32> to vector<512x128xbf16>
    %c0_6 = arith.constant 0 : index
    %c0_7 = arith.constant 0 : index
    %9 = vector.load %arg5[%c0_6, %c0_7] : memref<512x128xbf16, #tpu.memory_space<vmem>>, vector<512x128xbf16>
    tpu.vector_store %arg5[%c0_6, %c0_7], %8 {strides = array<i32>} : memref<512x128xbf16, #tpu.memory_space<vmem>>, vector<512x128xbf16>,
    return
  }
  func.func @transform_0(%arg0: i32, %arg1: i32) -> (i32, i32) {
    %c0_i32 = arith.constant 0 : i32
    %c0_i32_0 = arith.constant 0 : i32
    return %arg0, %c0_i32 : i32, i32
  }
  func.func @transform_1(%arg0: i32, %arg1: i32) -> (i32, i32) {
    %c0_i32 = arith.constant 0 : i32
    %c0_i32_0 = arith.constant 0 : i32
    return %c0_i32, %arg1 : i32, i32
  }
  func.func @transform_2(%arg0: i32, %arg1: i32) -> (i32, i32) {
    %c0_i32 = arith.constant 0 : i32
    %c0_i32_0 = arith.constant 0 : i32
    return %c0_i32, %arg1 : i32, i32
  }
  func.func @transform_3(%arg0: i32, %arg1: i32) -> (i32, i32) {
    %c0_i32 = arith.constant 0 : i32
    return %arg0, %arg1 : i32, i32
  }
}

module attributes {stable_mosaic.version = 11 : i64} {
  func.func @_matmul_bias_kernel(%arg0: i32, %arg1: i32, %arg2: memref<128x1152xbf16, #tpu.memory_space<vmem>>, %arg3: memref<1152x128xbf16, #tpu.memory_space<vmem>>, %arg4: memref<1x128xf32, #tpu.memory_space<vmem>>, %arg5: memref<128x128xbf16, #tpu.memory_space<vmem>>) attributes {dimension_semantics = [#tpu.dimension_semantics<parallel>, #tpu.dimension_semantics<parallel>], iteration_bounds = array<i64: 1, 1>, scalar_prefetch = 0 : i64, scratch_operands = 0 : i64, tpu.core_type = #tpu.core_type<tc>, window_params = [{transform_indices = @transform_0, window_bounds = array<i64: 128, 1152>}, {transform_indices = @transform_1, window_bounds = array<i64: 1152, 128>}, {transform_indices = @transform_2, window_bounds = array<i64: 1, 128>}, {transform_indices = @transform_3, window_bounds = array<i64: 128, 128>}]} {
    %c0 = arith.constant 0 : index
    %c0_0 = arith.constant 0 : index
    %0 = vector.load %arg2[%c0, %c0_0] : memref<128x1152xbf16, #tpu.memory_space<vmem>>, vector<128x1152xbf16>
    %c0_1 = arith.constant 0 : index
    %c0_2 = arith.constant 0 : index
    %1 = vector.load %arg3[%c0_1, %c0_2] : memref<1152x128xbf16, #tpu.memory_space<vmem>>, vector<1152x128xbf16>
    %cst = arith.constant dense<0.000000e+00> : vector<128x128xf32>
    %2 = tpu.matmul %0, %1, %cst {dimension_numbers = #tpu.dot_dimension_numbers<[1], [0], [0], [1], [0, 0, 1, 1], [], []>} : vector<128x1152xbf16>, vector<1152x128xbf16>, vector<128x128xf32> -> vector<128x128xf32>
    %c0_3 = arith.constant 0 : index
    %c0_4 = arith.constant 0 : index
    %3 = vector.load %arg4[%c0_3, %c0_4] : memref<1x128xf32, #tpu.memory_space<vmem>>, vector<1x128xf32>
    %4 = vector.broadcast %3 : vector<1x128xf32> to vector<128x128xf32>
    %5 = arith.addf %2, %4 : vector<128x128xf32>
    %cst_5 = arith.constant 0.000000e+00 : f32
    %6 = vector.broadcast %cst_5 : f32 to vector<128x128xf32>
    %7 = arith.maximumf %5, %6 : vector<128x128xf32>
    %8 = arith.truncf %7 : vector<128x128xf32> to vector<128x128xbf16>
    %c0_6 = arith.constant 0 : index
    %c0_7 = arith.constant 0 : index
    %9 = vector.load %arg5[%c0_6, %c0_7] : memref<128x128xbf16, #tpu.memory_space<vmem>>, vector<128x128xbf16>
    tpu.vector_store %arg5[%c0_6, %c0_7], %8 {strides = array<i32>} : memref<128x128xbf16, #tpu.memory_space<vmem>>, vector<128x128xbf16>,
    return
  }
  func.func @transform_0(%arg0: i32, %arg1: i32) -> (i32, i32) {
    %c0_i32 = arith.constant 0 : i32
    %c0_i32_0 = arith.constant 0 : i32
    return %arg0, %c0_i32 : i32, i32
  }
  func.func @transform_1(%arg0: i32, %arg1: i32) -> (i32, i32) {
    %c0_i32 = arith.constant 0 : i32
    %c0_i32_0 = arith.constant 0 : i32
    return %c0_i32, %arg1 : i32, i32
  }
  func.func @transform_2(%arg0: i32, %arg1: i32) -> (i32, i32) {
    %c0_i32 = arith.constant 0 : i32
    %c0_i32_0 = arith.constant 0 : i32
    return %c0_i32, %arg1 : i32, i32
  }
  func.func @transform_3(%arg0: i32, %arg1: i32) -> (i32, i32) {
    %c0_i32 = arith.constant 0 : i32
    return %arg0, %arg1 : i32, i32
  }
}

module attributes {stable_mosaic.version = 11 : i64} {
  func.func @_matmul_bias_add_relu_kernel(%arg0: i32, %arg1: i32, %arg2: memref<128x128xbf16, #tpu.memory_space<vmem>>, %arg3: memref<128x128xbf16, #tpu.memory_space<vmem>>, %arg4: memref<1x128xf32, #tpu.memory_space<vmem>>, %arg5: memref<128x128xbf16, #tpu.memory_space<vmem>>, %arg6: memref<128x128xbf16, #tpu.memory_space<vmem>>) attributes {dimension_semantics = [#tpu.dimension_semantics<parallel>, #tpu.dimension_semantics<parallel>], iteration_bounds = array<i64: 1, 1>, scalar_prefetch = 0 : i64, scratch_operands = 0 : i64, tpu.core_type = #tpu.core_type<tc>, window_params = [{transform_indices = @transform_0, window_bounds = array<i64: 128, 128>}, {transform_indices = @transform_1, window_bounds = array<i64: 128, 128>}, {transform_indices = @transform_2, window_bounds = array<i64: 1, 128>}, {transform_indices = @transform_3, window_bounds = array<i64: 128, 128>}, {transform_indices = @transform_4, window_bounds = array<i64: 128, 128>}]} {
    %c0 = arith.constant 0 : index
    %c0_0 = arith.constant 0 : index
    %0 = vector.load %arg2[%c0, %c0_0] : memref<128x128xbf16, #tpu.memory_space<vmem>>, vector<128x128xbf16>
    %c0_1 = arith.constant 0 : index
    %c0_2 = arith.constant 0 : index
    %1 = vector.load %arg3[%c0_1, %c0_2] : memref<128x128xbf16, #tpu.memory_space<vmem>>, vector<128x128xbf16>
    %cst = arith.constant dense<0.000000e+00> : vector<128x128xf32>
    %2 = tpu.matmul %0, %1, %cst {dimension_numbers = #tpu.dot_dimension_numbers<[1], [0], [0], [1], [0, 0, 1, 1], [], []>} : vector<128x128xbf16>, vector<128x128xbf16>, vector<128x128xf32> -> vector<128x128xf32>
    %c0_3 = arith.constant 0 : index
    %c0_4 = arith.constant 0 : index
    %3 = vector.load %arg4[%c0_3, %c0_4] : memref<1x128xf32, #tpu.memory_space<vmem>>, vector<1x128xf32>
    %4 = vector.broadcast %3 : vector<1x128xf32> to vector<128x128xf32>
    %5 = arith.addf %2, %4 : vector<128x128xf32>
    %c0_5 = arith.constant 0 : index
    %c0_6 = arith.constant 0 : index
    %6 = vector.load %arg5[%c0_5, %c0_6] : memref<128x128xbf16, #tpu.memory_space<vmem>>, vector<128x128xbf16>
    %7 = arith.extf %6 : vector<128x128xbf16> to vector<128x128xf32>
    %8 = arith.addf %5, %7 : vector<128x128xf32>
    %cst_7 = arith.constant 0.000000e+00 : f32
    %9 = vector.broadcast %cst_7 : f32 to vector<128x128xf32>
    %10 = arith.maximumf %8, %9 : vector<128x128xf32>
    %11 = arith.truncf %10 : vector<128x128xf32> to vector<128x128xbf16>
    %c0_8 = arith.constant 0 : index
    %c0_9 = arith.constant 0 : index
    %12 = vector.load %arg6[%c0_8, %c0_9] : memref<128x128xbf16, #tpu.memory_space<vmem>>, vector<128x128xbf16>
    tpu.vector_store %arg6[%c0_8, %c0_9], %11 {strides = array<i32>} : memref<128x128xbf16, #tpu.memory_space<vmem>>, vector<128x128xbf16>,
    return
  }
  func.func @transform_0(%arg0: i32, %arg1: i32) -> (i32, i32) {
    %c0_i32 = arith.constant 0 : i32
    %c0_i32_0 = arith.constant 0 : i32
    return %arg0, %c0_i32 : i32, i32
  }
  func.func @transform_1(%arg0: i32, %arg1: i32) -> (i32, i32) {
    %c0_i32 = arith.constant 0 : i32
    %c0_i32_0 = arith.constant 0 : i32
    return %c0_i32, %arg1 : i32, i32
  }
  func.func @transform_2(%arg0: i32, %arg1: i32) -> (i32, i32) {
    %c0_i32 = arith.constant 0 : i32
    %c0_i32_0 = arith.constant 0 : i32
    return %c0_i32, %arg1 : i32, i32
  }
  func.func @transform_3(%arg0: i32, %arg1: i32) -> (i32, i32) {
    %c0_i32 = arith.constant 0 : i32
    return %arg0, %arg1 : i32, i32
  }
  func.func @transform_4(%arg0: i32, %arg1: i32) -> (i32, i32) {
    %c0_i32 = arith.constant 0 : i32
    return %arg0, %arg1 : i32, i32
  }
}

module attributes {stable_mosaic.version = 11 : i64} {
  func.func @_matmul_bias_kernel(%arg0: i32, %arg1: i32, %arg2: memref<128x128xbf16, #tpu.memory_space<vmem>>, %arg3: memref<128x128xbf16, #tpu.memory_space<vmem>>, %arg4: memref<1x128xf32, #tpu.memory_space<vmem>>, %arg5: memref<128x128xbf16, #tpu.memory_space<vmem>>) attributes {dimension_semantics = [#tpu.dimension_semantics<parallel>, #tpu.dimension_semantics<parallel>], iteration_bounds = array<i64: 1, 1>, scalar_prefetch = 0 : i64, scratch_operands = 0 : i64, tpu.core_type = #tpu.core_type<tc>, window_params = [{transform_indices = @transform_0, window_bounds = array<i64: 128, 128>}, {transform_indices = @transform_1, window_bounds = array<i64: 128, 128>}, {transform_indices = @transform_2, window_bounds = array<i64: 1, 128>}, {transform_indices = @transform_3, window_bounds = array<i64: 128, 128>}]} {
    %c0 = arith.constant 0 : index
    %c0_0 = arith.constant 0 : index
    %0 = vector.load %arg2[%c0, %c0_0] : memref<128x128xbf16, #tpu.memory_space<vmem>>, vector<128x128xbf16>
    %c0_1 = arith.constant 0 : index
    %c0_2 = arith.constant 0 : index
    %1 = vector.load %arg3[%c0_1, %c0_2] : memref<128x128xbf16, #tpu.memory_space<vmem>>, vector<128x128xbf16>
    %cst = arith.constant dense<0.000000e+00> : vector<128x128xf32>
    %2 = tpu.matmul %0, %1, %cst {dimension_numbers = #tpu.dot_dimension_numbers<[1], [0], [0], [1], [0, 0, 1, 1], [], []>} : vector<128x128xbf16>, vector<128x128xbf16>, vector<128x128xf32> -> vector<128x128xf32>
    %c0_3 = arith.constant 0 : index
    %c0_4 = arith.constant 0 : index
    %3 = vector.load %arg4[%c0_3, %c0_4] : memref<1x128xf32, #tpu.memory_space<vmem>>, vector<1x128xf32>
    %4 = vector.broadcast %3 : vector<1x128xf32> to vector<128x128xf32>
    %5 = arith.addf %2, %4 : vector<128x128xf32>
    %cst_5 = arith.constant 0.000000e+00 : f32
    %6 = vector.broadcast %cst_5 : f32 to vector<128x128xf32>
    %7 = arith.maximumf %5, %6 : vector<128x128xf32>
    %8 = arith.truncf %7 : vector<128x128xf32> to vector<128x128xbf16>
    %c0_6 = arith.constant 0 : index
    %c0_7 = arith.constant 0 : index
    %9 = vector.load %arg5[%c0_6, %c0_7] : memref<128x128xbf16, #tpu.memory_space<vmem>>, vector<128x128xbf16>
    tpu.vector_store %arg5[%c0_6, %c0_7], %8 {strides = array<i32>} : memref<128x128xbf16, #tpu.memory_space<vmem>>, vector<128x128xbf16>,
    return
  }
  func.func @transform_0(%arg0: i32, %arg1: i32) -> (i32, i32) {
    %c0_i32 = arith.constant 0 : i32
    %c0_i32_0 = arith.constant 0 : i32
    return %arg0, %c0_i32 : i32, i32
  }
  func.func @transform_1(%arg0: i32, %arg1: i32) -> (i32, i32) {
    %c0_i32 = arith.constant 0 : i32
    %c0_i32_0 = arith.constant 0 : i32
    return %c0_i32, %arg1 : i32, i32
  }
  func.func @transform_2(%arg0: i32, %arg1: i32) -> (i32, i32) {
    %c0_i32 = arith.constant 0 : i32
    %c0_i32_0 = arith.constant 0 : i32
    return %c0_i32, %arg1 : i32, i32
  }
  func.func @transform_3(%arg0: i32, %arg1: i32) -> (i32, i32) {
    %c0_i32 = arith.constant 0 : i32
    return %arg0, %arg1 : i32, i32
  }
}

module attributes {stable_mosaic.version = 11 : i64} {
  func.func @_conv3x3_tap_kernel(%arg0: i32, %arg1: memref<256x128xbf16, #tpu.memory_space<vmem>>, %arg2: memref<32x128xbf16, #tpu.memory_space<vmem>>, %arg3: memref<9x128x128xbf16, #tpu.memory_space<vmem>>, %arg4: memref<1x128xf32, #tpu.memory_space<vmem>>, %arg5: memref<256x128xbf16, #tpu.memory_space<vmem>>, %arg6: memref<288x128xbf16, #tpu.memory_space<vmem>>) attributes {dimension_semantics = [#tpu.dimension_semantics<parallel>], iteration_bounds = array<i64: 1>, scalar_prefetch = 0 : i64, scratch_operands = 1 : i64, tpu.core_type = #tpu.core_type<tc>, window_params = [{transform_indices = @transform_0, window_bounds = array<i64: 256, 128>}, {transform_indices = @transform_1, window_bounds = array<i64: 32, 128>}, {pipeline_mode = #tpu.pipeline_mode<synchronous>, transform_indices = @transform_2, window_bounds = array<i64: 9, 128, 128>}, {pipeline_mode = #tpu.pipeline_mode<synchronous>, transform_indices = @transform_3, window_bounds = array<i64: 1, 128>}, {transform_indices = @transform_4, window_bounds = array<i64: 256, 128>}]} {
    %c0 = arith.constant 0 : index
    %c0_0 = arith.constant 0 : index
    %0 = vector.load %arg1[%c0, %c0_0] : memref<256x128xbf16, #tpu.memory_space<vmem>>, vector<256x128xbf16>
    %c0_1 = arith.constant 0 : index
    %c0_2 = arith.constant 0 : index
    %1 = vector.load %arg6[%c0_1, %c0_2] : memref<288x128xbf16, #tpu.memory_space<vmem>>, vector<256x128xbf16>
    tpu.vector_store %arg6[%c0_1, %c0_2], %0 {strides = array<i32>} : memref<288x128xbf16, #tpu.memory_space<vmem>>, vector<256x128xbf16>,
    %c0_3 = arith.constant 0 : index
    %c0_4 = arith.constant 0 : index
    %2 = vector.load %arg2[%c0_3, %c0_4] : memref<32x128xbf16, #tpu.memory_space<vmem>>, vector<32x128xbf16>
    %c256 = arith.constant 256 : index
    %c0_5 = arith.constant 0 : index
    %3 = vector.load %arg6[%c256, %c0_5] : memref<288x128xbf16, #tpu.memory_space<vmem>>, vector<32x128xbf16>
    tpu.vector_store %arg6[%c256, %c0_5], %2 {strides = array<i32>} : memref<288x128xbf16, #tpu.memory_space<vmem>>, vector<32x128xbf16>,
    %cst = arith.constant 0.000000e+00 : f32
    %4 = vector.broadcast %cst : f32 to vector<256x128xf32>
    %c0_6 = arith.constant 0 : index
    %c0_7 = arith.constant 0 : index
    %5 = vector.load %arg6[%c0_6, %c0_7] : memref<288x128xbf16, #tpu.memory_space<vmem>>, vector<256x128xbf16>
    %c0_8 = arith.constant 0 : index
    %c0_9 = arith.constant 0 : index
    %c0_10 = arith.constant 0 : index
    %6 = vector.load %arg3[%c0_8, %c0_9, %c0_10] : memref<9x128x128xbf16, #tpu.memory_space<vmem>>, vector<1x128x128xbf16>
    %7 = vector.shape_cast %6 : vector<1x128x128xbf16> to vector<128x128xbf16>
    %cst_11 = arith.constant dense<0.000000e+00> : vector<256x128xf32>
    %8 = tpu.matmul %5, %7, %cst_11 {dimension_numbers = #tpu.dot_dimension_numbers<[1], [0], [0], [1], [0, 0, 1, 1], [], []>} : vector<256x128xbf16>, vector<128x128xbf16>, vector<256x128xf32> -> vector<256x128xf32>
    %9 = arith.addf %4, %8 : vector<256x128xf32>
    %c1 = arith.constant 1 : index
    %c0_12 = arith.constant 0 : index
    %10 = vector.load %arg6[%c1, %c0_12] : memref<288x128xbf16, #tpu.memory_space<vmem>>, vector<256x128xbf16>
    %c1_13 = arith.constant 1 : index
    %c0_14 = arith.constant 0 : index
    %c0_15 = arith.constant 0 : index
    %11 = vector.load %arg3[%c1_13, %c0_14, %c0_15] : memref<9x128x128xbf16, #tpu.memory_space<vmem>>, vector<1x128x128xbf16>
    %12 = vector.shape_cast %11 : vector<1x128x128xbf16> to vector<128x128xbf16>
    %cst_16 = arith.constant dense<0.000000e+00> : vector<256x128xf32>
    %13 = tpu.matmul %10, %12, %cst_16 {dimension_numbers = #tpu.dot_dimension_numbers<[1], [0], [0], [1], [0, 0, 1, 1], [], []>} : vector<256x128xbf16>, vector<128x128xbf16>, vector<256x128xf32> -> vector<256x128xf32>
    %14 = arith.addf %9, %13 : vector<256x128xf32>
    %c2 = arith.constant 2 : index
    %c0_17 = arith.constant 0 : index
    %15 = vector.load %arg6[%c2, %c0_17] : memref<288x128xbf16, #tpu.memory_space<vmem>>, vector<256x128xbf16>
    %c2_18 = arith.constant 2 : index
    %c0_19 = arith.constant 0 : index
    %c0_20 = arith.constant 0 : index
    %16 = vector.load %arg3[%c2_18, %c0_19, %c0_20] : memref<9x128x128xbf16, #tpu.memory_space<vmem>>, vector<1x128x128xbf16>
    %17 = vector.shape_cast %16 : vector<1x128x128xbf16> to vector<128x128xbf16>
    %cst_21 = arith.constant dense<0.000000e+00> : vector<256x128xf32>
    %18 = tpu.matmul %15, %17, %cst_21 {dimension_numbers = #tpu.dot_dimension_numbers<[1], [0], [0], [1], [0, 0, 1, 1], [], []>} : vector<256x128xbf16>, vector<128x128xbf16>, vector<256x128xf32> -> vector<256x128xf32>
    %19 = arith.addf %14, %18 : vector<256x128xf32>
    %c10 = arith.constant 10 : index
    %c0_22 = arith.constant 0 : index
    %20 = vector.load %arg6[%c10, %c0_22] : memref<288x128xbf16, #tpu.memory_space<vmem>>, vector<256x128xbf16>
    %c3 = arith.constant 3 : index
    %c0_23 = arith.constant 0 : index
    %c0_24 = arith.constant 0 : index
    %21 = vector.load %arg3[%c3, %c0_23, %c0_24] : memref<9x128x128xbf16, #tpu.memory_space<vmem>>, vector<1x128x128xbf16>
    %22 = vector.shape_cast %21 : vector<1x128x128xbf16> to vector<128x128xbf16>
    %cst_25 = arith.constant dense<0.000000e+00> : vector<256x128xf32>
    %23 = tpu.matmul %20, %22, %cst_25 {dimension_numbers = #tpu.dot_dimension_numbers<[1], [0], [0], [1], [0, 0, 1, 1], [], []>} : vector<256x128xbf16>, vector<128x128xbf16>, vector<256x128xf32> -> vector<256x128xf32>
    %24 = arith.addf %19, %23 : vector<256x128xf32>
    %c11 = arith.constant 11 : index
    %c0_26 = arith.constant 0 : index
    %25 = vector.load %arg6[%c11, %c0_26] : memref<288x128xbf16, #tpu.memory_space<vmem>>, vector<256x128xbf16>
    %c4 = arith.constant 4 : index
    %c0_27 = arith.constant 0 : index
    %c0_28 = arith.constant 0 : index
    %26 = vector.load %arg3[%c4, %c0_27, %c0_28] : memref<9x128x128xbf16, #tpu.memory_space<vmem>>, vector<1x128x128xbf16>
    %27 = vector.shape_cast %26 : vector<1x128x128xbf16> to vector<128x128xbf16>
    %cst_29 = arith.constant dense<0.000000e+00> : vector<256x128xf32>
    %28 = tpu.matmul %25, %27, %cst_29 {dimension_numbers = #tpu.dot_dimension_numbers<[1], [0], [0], [1], [0, 0, 1, 1], [], []>} : vector<256x128xbf16>, vector<128x128xbf16>, vector<256x128xf32> -> vector<256x128xf32>
    %29 = arith.addf %24, %28 : vector<256x128xf32>
    %c12 = arith.constant 12 : index
    %c0_30 = arith.constant 0 : index
    %30 = vector.load %arg6[%c12, %c0_30] : memref<288x128xbf16, #tpu.memory_space<vmem>>, vector<256x128xbf16>
    %c5 = arith.constant 5 : index
    %c0_31 = arith.constant 0 : index
    %c0_32 = arith.constant 0 : index
    %31 = vector.load %arg3[%c5, %c0_31, %c0_32] : memref<9x128x128xbf16, #tpu.memory_space<vmem>>, vector<1x128x128xbf16>
    %32 = vector.shape_cast %31 : vector<1x128x128xbf16> to vector<128x128xbf16>
    %cst_33 = arith.constant dense<0.000000e+00> : vector<256x128xf32>
    %33 = tpu.matmul %30, %32, %cst_33 {dimension_numbers = #tpu.dot_dimension_numbers<[1], [0], [0], [1], [0, 0, 1, 1], [], []>} : vector<256x128xbf16>, vector<128x128xbf16>, vector<256x128xf32> -> vector<256x128xf32>
    %34 = arith.addf %29, %33 : vector<256x128xf32>
    %c20 = arith.constant 20 : index
    %c0_34 = arith.constant 0 : index
    %35 = vector.load %arg6[%c20, %c0_34] : memref<288x128xbf16, #tpu.memory_space<vmem>>, vector<256x128xbf16>
    %c6 = arith.constant 6 : index
    %c0_35 = arith.constant 0 : index
    %c0_36 = arith.constant 0 : index
    %36 = vector.load %arg3[%c6, %c0_35, %c0_36] : memref<9x128x128xbf16, #tpu.memory_space<vmem>>, vector<1x128x128xbf16>
    %37 = vector.shape_cast %36 : vector<1x128x128xbf16> to vector<128x128xbf16>
    %cst_37 = arith.constant dense<0.000000e+00> : vector<256x128xf32>
    %38 = tpu.matmul %35, %37, %cst_37 {dimension_numbers = #tpu.dot_dimension_numbers<[1], [0], [0], [1], [0, 0, 1, 1], [], []>} : vector<256x128xbf16>, vector<128x128xbf16>, vector<256x128xf32> -> vector<256x128xf32>
    %39 = arith.addf %34, %38 : vector<256x128xf32>
    %c21 = arith.constant 21 : index
    %c0_38 = arith.constant 0 : index
    %40 = vector.load %arg6[%c21, %c0_38] : memref<288x128xbf16, #tpu.memory_space<vmem>>, vector<256x128xbf16>
    %c7 = arith.constant 7 : index
    %c0_39 = arith.constant 0 : index
    %c0_40 = arith.constant 0 : index
    %41 = vector.load %arg3[%c7, %c0_39, %c0_40] : memref<9x128x128xbf16, #tpu.memory_space<vmem>>, vector<1x128x128xbf16>
    %42 = vector.shape_cast %41 : vector<1x128x128xbf16> to vector<128x128xbf16>
    %cst_41 = arith.constant dense<0.000000e+00> : vector<256x128xf32>
    %43 = tpu.matmul %40, %42, %cst_41 {dimension_numbers = #tpu.dot_dimension_numbers<[1], [0], [0], [1], [0, 0, 1, 1], [], []>} : vector<256x128xbf16>, vector<128x128xbf16>, vector<256x128xf32> -> vector<256x128xf32>
    %44 = arith.addf %39, %43 : vector<256x128xf32>
    %c22 = arith.constant 22 : index
    %c0_42 = arith.constant 0 : index
    %45 = vector.load %arg6[%c22, %c0_42] : memref<288x128xbf16, #tpu.memory_space<vmem>>, vector<256x128xbf16>
    %c8 = arith.constant 8 : index
    %c0_43 = arith.constant 0 : index
    %c0_44 = arith.constant 0 : index
    %46 = vector.load %arg3[%c8, %c0_43, %c0_44] : memref<9x128x128xbf16, #tpu.memory_space<vmem>>, vector<1x128x128xbf16>
    %47 = vector.shape_cast %46 : vector<1x128x128xbf16> to vector<128x128xbf16>
    %cst_45 = arith.constant dense<0.000000e+00> : vector<256x128xf32>
    %48 = tpu.matmul %45, %47, %cst_45 {dimension_numbers = #tpu.dot_dimension_numbers<[1], [0], [0], [1], [0, 0, 1, 1], [], []>} : vector<256x128xbf16>, vector<128x128xbf16>, vector<256x128xf32> -> vector<256x128xf32>
    %49 = arith.addf %44, %48 : vector<256x128xf32>
    %c0_46 = arith.constant 0 : index
    %c0_47 = arith.constant 0 : index
    %50 = vector.load %arg4[%c0_46, %c0_47] : memref<1x128xf32, #tpu.memory_space<vmem>>, vector<1x128xf32>
    %51 = vector.broadcast %50 : vector<1x128xf32> to vector<256x128xf32>
    %52 = arith.addf %49, %51 : vector<256x128xf32>
    %cst_48 = arith.constant 0.000000e+00 : f32
    %53 = vector.broadcast %cst_48 : f32 to vector<256x128xf32>
    %54 = arith.maximumf %52, %53 : vector<256x128xf32>
    %55 = arith.truncf %54 : vector<256x128xf32> to vector<256x128xbf16>
    %c0_49 = arith.constant 0 : index
    %c0_50 = arith.constant 0 : index
    %56 = vector.load %arg5[%c0_49, %c0_50] : memref<256x128xbf16, #tpu.memory_space<vmem>>, vector<256x128xbf16>
    tpu.vector_store %arg5[%c0_49, %c0_50], %55 {strides = array<i32>} : memref<256x128xbf16, #tpu.memory_space<vmem>>, vector<256x128xbf16>,
    return
  }
  func.func @transform_0(%arg0: i32) -> (i32, i32) {
    %c0_i32 = arith.constant 0 : i32
    %c0_i32_0 = arith.constant 0 : i32
    return %arg0, %c0_i32 : i32, i32
  }
  func.func @transform_1(%arg0: i32) -> (i32, i32) {
    %c1_i32 = arith.constant 1 : i32
    %0 = arith.addi %arg0, %c1_i32 : i32
    %c8_i32 = arith.constant 8 : i32
    %1 = arith.muli %0, %c8_i32 : i32
    %c0_i32 = arith.constant 0 : i32
    %c0_i32_0 = arith.constant 0 : i32
    return %1, %c0_i32 : i32, i32
  }
  func.func @transform_2(%arg0: i32) -> (i32, i32, i32) {
    %c0_i32 = arith.constant 0 : i32
    %c0_i32_0 = arith.constant 0 : i32
    %c0_i32_1 = arith.constant 0 : i32
    %c0_i32_2 = arith.constant 0 : i32
    return %c0_i32, %c0_i32_0, %c0_i32_1 : i32, i32, i32
  }
  func.func @transform_3(%arg0: i32) -> (i32, i32) {
    %c0_i32 = arith.constant 0 : i32
    %c0_i32_0 = arith.constant 0 : i32
    %c0_i32_1 = arith.constant 0 : i32
    return %c0_i32, %c0_i32_0 : i32, i32
  }
  func.func @transform_4(%arg0: i32) -> (i32, i32) {
    %c0_i32 = arith.constant 0 : i32
    %c0_i32_0 = arith.constant 0 : i32
    return %arg0, %c0_i32 : i32, i32
  }
}

</mosaic_0001>

<bundles_post_ra>
// kernel: _lambda_.9
= control target key start
LH: loop header
LB: loop body
LE: loop exit
PB: predicated region body
PF: predicated region fallthrough
CT: control target
= control target key end

     0   :  { %s478_s1 = inlined_call_operand.vmem [shape: bf16[128,128], index: 1, kind: input, shape index: {}]   ;;  %s479_s2 = inlined_call_operand.vmem [shape: f32[1,128], index: 2, kind: input, shape index: {}]   ;;  %s480_s0 = inlined_call_operand.vmem [shape: bf16[128,128], index: 0, kind: input, shape index: {}]   ;;  %s481_s3 = inlined_call_operand.vmem [shape: bf16[128,128], index: 3, kind: output, shape index: {}]  }
   0x1   :  { %v310_v0 = vld [vmem:[%s478_s1 + $0x38] sm:$0xff]  ;;  %v309_v1 = vld [vmem:[%s478_s1 + $0x30] sm:$0xff]  ;;  %v308_v2 = vld [vmem:[%s478_s1 + $0x28] sm:$0xff] }
   0x2   :  { %146 = vmatpush.bf16.msra.mxu0 %v310_v0  ;;  %358 = vmatpush.bf16.msra.mxu1 %v310_v0  ;;  %v307_v3 = vld [vmem:[%s478_s1 + $0x20] sm:$0xff]  ;;  %v306_v4 = vld [vmem:[%s478_s1 + $0x18] sm:$0xff]  ;;  %v305_v5 = vld [vmem:[%s478_s1 + $0x10] sm:$0xff] }
   0x3   :  { %359 = vmatpush.bf16.msra.mxu2 %v310_v0  ;;  %360 = vmatpush.bf16.msra.mxu3 %v310_v0  ;;  %v304_v6 = vld [vmem:[%s478_s1 + $0x8] sm:$0xff]  ;;  %v303_v7 = vld [vmem:[%s478_s1] sm:$0xff]  ;;  %v297_v9 = vld [vmem:[%s480_s0 + $0x10] sm:$0xff] }
   0x4   :  { %v295_v8 = vld [vmem:[%s480_s0] sm:$0xff]  ;;  %v301_v11 = vld [vmem:[%s480_s0 + $0x30] sm:$0xff]  ;;  %v296_v12 = vld [vmem:[%s480_s0 + $0x8] sm:$0xff] }
   0x5   :  { %v299_v10 = vld [vmem:[%s480_s0 + $0x20] sm:$0xff]  ;;  %v298_v13 = vld [vmem:[%s480_s0 + $0x18] sm:$0xff]  ;;  %v300_v14 = vld [vmem:[%s480_s0 + $0x28] sm:$0xff] }
   0x6   :  { %147 = vmatpush.bf16.msra.mxu0 %v309_v1  ;;  %361 = vmatpush.bf16.msra.mxu1 %v309_v1  ;;  %v302_v15 = vld [vmem:[%s480_s0 + $0x38] sm:$0xff]  ;;  %v382_v18 = vld [vmem:[%s479_s2] ss:$0 sm:$0xff] }
   0x7   :  { %362 = vmatpush.bf16.msra.mxu2 %v309_v1  ;;  %363 = vmatpush.bf16.msra.mxu3 %v309_v1 }
   0xa   :  { %148 = vmatpush.bf16.msra.mxu0 %v308_v2  ;;  %364 = vmatpush.bf16.msra.mxu1 %v308_v2 }
   0xb   :  { %365 = vmatpush.bf16.msra.mxu2 %v308_v2  ;;  %366 = vmatpush.bf16.msra.mxu3 %v308_v2 }
   0xe   :  { %149 = vmatpush.bf16.msra.mxu0 %v307_v3  ;;  %367 = vmatpush.bf16.msra.mxu1 %v307_v3 }
   0xf   :  { %368 = vmatpush.bf16.msra.mxu2 %v307_v3  ;;  %369 = vmatpush.bf16.msra.mxu3 %v307_v3 }
  0x12   :  { %150 = vmatpush.bf16.msra.mxu0 %v306_v4  ;;  %370 = vmatpush.bf16.msra.mxu1 %v306_v4 }
  0x13   :  { %371 = vmatpush.bf16.msra.mxu2 %v306_v4  ;;  %372 = vmatpush.bf16.msra.mxu3 %v306_v4 }
  0x16   :  { %151 = vmatpush.bf16.msra.mxu0 %v305_v5  ;;  %373 = vmatpush.bf16.msra.mxu1 %v305_v5 }
  0x17   :  { %374 = vmatpush.bf16.msra.mxu2 %v305_v5  ;;  %375 = vmatpush.bf16.msra.mxu3 %v305_v5 }
  0x1a   :  { %152 = vmatpush.bf16.msra.mxu0 %v304_v6  ;;  %376 = vmatpush.bf16.msra.mxu1 %v304_v6 }
  0x1b   :  { %377 = vmatpush.bf16.msra.mxu2 %v304_v6  ;;  %378 = vmatpush.bf16.msra.mxu3 %v304_v6 }
  0x1e   :  { %153 = vmatpush.bf16.msra.mxu0 %v303_v7  ;;  %379 = vmatpush.bf16.msra.mxu1 %v303_v7 }
  0x1f   :  { %380 = vmatpush.bf16.msra.mxu2 %v303_v7  ;;  %381 = vmatpush.bf16.msra.mxu3 %v303_v7 }
  0x21   :  { %154 = vmatmul.bf16.vlgmr.msra.gmra.mxu0 %v295_v8  ;;  %164 = vmatmul.bf16.vlgmr.msra.gmra.mxu1 %v297_v9 }
  0x22   :  { %174 = vmatmul.bf16.vlgmr.msra.gmra.mxu2 %v299_v10  ;;  %184 = vmatmul.bf16.vlgmr.msra.gmra.mxu3 %v301_v11 }
  0x31   :  { %159 = vmatmul.bf16.gmra.mxu0 %v296_v12  ;;  %169 = vmatmul.bf16.gmra.mxu1 %v298_v13 }
  0x32   :  { %179 = vmatmul.bf16.gmra.mxu2 %v300_v14  ;;  %189 = vmatmul.bf16.gmra.mxu3 %v302_v15 }
  0x9e   :  { %v155_v16 = vpop.f32.mrf.mxu0  ;;  %v165_v17 = vpop.f32.mrf.mxu1 }
  0x9f   :  { %v156_v23 = vadd.f32 %v382_v18, %v155_v16  ;;  %v166_v24 = vadd.f32 %v382_v18, %v165_v17 }
  0xa5   :  { %v175_v19 = vpop.f32.mrf.mxu2  ;;  %v185_v20 = vpop.f32.mrf.mxu3 }
  0xa6   :  { %v157_v21 = vpop.f32.mrf.mxu0  ;;  %v167_v22 = vpop.f32.mrf.mxu1  ;;  %v176_v31 = vadd.f32 %v382_v18, %v175_v19  ;;  %v186_v32 = vadd.f32 %v382_v18, %v185_v20 }
  0xa7   :  { %v158_v25 = vadd.f32 %v382_v18, %v157_v21  ;;  %v168_v26 = vadd.f32 %v382_v18, %v167_v22 }
  0xa9   :  { %v314_v27 = vpack.c.bf16 %v158_v25, %v156_v23  ;;  %v324_v28 = vpack.c.bf16 %v168_v26, %v166_v24 }
  0xab   :  { %315 = vst [vmem:[%s481_s3] sm:$0xff] %v314_v27  }
  0xac   :  { %352 = vst [vmem:[%s481_s3 + $0x10] sm:$0xff] %v324_v28  }
  0xad   :  { %v177_v29 = vpop.f32.mrf.mxu2  ;;  %v187_v30 = vpop.f32.mrf.mxu3 }
  0xae   :  { %v178_v33 = vadd.f32 %v382_v18, %v177_v29  ;;  %v188_v34 = vadd.f32 %v382_v18, %v187_v30  ;;  %v160_v35 = vpop.f32.mrf.mxu0  ;;  %v170_v36 = vpop.f32.mrf.mxu1 }
  0xaf   :  { %v161_v43 = vadd.f32 %v382_v18, %v160_v35  ;;  %v171_v44 = vadd.f32 %v382_v18, %v170_v36 }
  0xb0   :  { %v334_v37 = vpack.c.bf16 %v178_v33, %v176_v31  ;;  %v344_v38 = vpack.c.bf16 %v188_v34, %v186_v32 }
  0xb2   :  { %354 = vst [vmem:[%s481_s3 + $0x20] sm:$0xff] %v334_v37  }
  0xb3   :  { %356 = vst [vmem:[%s481_s3 + $0x30] sm:$0xff] %v344_v38  }
  0xb5   :  { %v180_v39 = vpop.f32.mrf.mxu2  ;;  %v190_v40 = vpop.f32.mrf.mxu3 }
  0xb6   :  { %v162_v41 = vpop.f32.mrf.mxu0  ;;  %v172_v42 = vpop.f32.mrf.mxu1  ;;  %v181_v51 = vadd.f32 %v382_v18, %v180_v39  ;;  %v191_v52 = vadd.f32 %v382_v18, %v190_v40 }
  0xb7   :  { %v163_v45 = vadd.f32 %v382_v18, %v162_v41  ;;  %v173_v46 = vadd.f32 %v382_v18, %v172_v42 }
  0xb9   :  { %v319_v47 = vpack.c.bf16 %v163_v45, %v161_v43  ;;  %v329_v48 = vpack.c.bf16 %v173_v46, %v171_v44 }
  0xbb   :  { %351 = vst [vmem:[%s481_s3 + $0x8] sm:$0xff] %v319_v47  }
  0xbc   :  { %353 = vst [vmem:[%s481_s3 + $0x18] sm:$0xff] %v329_v48  }
  0xbd   :  { %v182_v49 = vpop.f32.mrf.mxu2  ;;  %v192_v50 = vpop.f32.mrf.mxu3 }
  0xbe   :  { %v183_v53 = vadd.f32 %v382_v18, %v182_v49  ;;  %v193_v54 = vadd.f32 %v382_v18, %v192_v50 }
  0xc0   :  { %v339_v55 = vpack.c.bf16 %v183_v53, %v181_v51  ;;  %v349_v56 = vpack.c.bf16 %v193_v54, %v191_v52 }
  0xc2   :  { %355 = vst [vmem:[%s481_s3 + $0x28] sm:$0xff] %v339_v55  }
  0xc3   :  { %357 = vst [vmem:[%s481_s3 + $0x38] sm:$0xff] %v349_v56  }

// kernel: _lambda_.7
= control target key start
LH: loop header
LB: loop body
LE: loop exit
PB: predicated region body
PF: predicated region fallthrough
CT: control target
= control target key end

     0   :  { %s1424_s1 = inlined_call_operand.vmem [shape: bf16[128,128], index: 1, kind: input, shape index: {}]   ;;  %s1425_s2 = inlined_call_operand.vmem [shape: f32[1,128], index: 2, kind: input, shape index: {}]   ;;  %s1426_s0 = inlined_call_operand.vmem [shape: bf16[512,128], index: 0, kind: input, shape index: {}]   ;;  %s1427_s3 = inlined_call_operand.vmem [shape: bf16[512,128], index: 3, kind: output, shape index: {}]  }
   0x1   :  { %v902_v0 = vld [vmem:[%s1424_s1 + $0x38] sm:$0xff]  ;;  %v901_v1 = vld [vmem:[%s1424_s1 + $0x30] sm:$0xff]  ;;  %v900_v2 = vld [vmem:[%s1424_s1 + $0x28] sm:$0xff] }
   0x2   :  { %338 = vmatpush.bf16.msra.mxu0 %v902_v0  ;;  %1094 = vmatpush.bf16.msra.mxu1 %v902_v0  ;;  %v899_v3 = vld [vmem:[%s1424_s1 + $0x20] sm:$0xff]  ;;  %v898_v4 = vld [vmem:[%s1424_s1 + $0x18] sm:$0xff]  ;;  %v897_v5 = vld [vmem:[%s1424_s1 + $0x10] sm:$0xff] }
   0x3   :  { %1095 = vmatpush.bf16.msra.mxu2 %v902_v0  ;;  %1096 = vmatpush.bf16.msra.mxu3 %v902_v0  ;;  %v896_v6 = vld [vmem:[%s1424_s1 + $0x8] sm:$0xff]  ;;  %v895_v7 = vld [vmem:[%s1424_s1] sm:$0xff]  ;;  %v865_v16 = vld [vmem:[%s1426_s0 + $0x10] sm:$0xff] }
   0x4   :  { %v863_v8 = vld [vmem:[%s1426_s0] sm:$0xff]  ;;  %v864_v12 = vld [vmem:[%s1426_s0 + $0x8] sm:$0xff]  ;;  %v873_v17 = vld [vmem:[%s1426_s0 + $0x50] sm:$0xff] }
   0x5   :  { %v871_v9 = vld [vmem:[%s1426_s0 + $0x40] sm:$0xff]  ;;  %v872_v13 = vld [vmem:[%s1426_s0 + $0x48] sm:$0xff]  ;;  %v881_v18 = vld [vmem:[%s1426_s0 + $0x90] sm:$0xff] }
   0x6   :  { %339 = vmatpush.bf16.msra.mxu0 %v901_v1  ;;  %1097 = vmatpush.bf16.msra.mxu1 %v901_v1  ;;  %v879_v10 = vld [vmem:[%s1426_s0 + $0x80] sm:$0xff]  ;;  %v880_v14 = vld [vmem:[%s1426_s0 + $0x88] sm:$0xff]  ;;  %v889_v19 = vld [vmem:[%s1426_s0 + $0xd0] sm:$0xff] }
   0x7   :  { %1098 = vmatpush.bf16.msra.mxu2 %v901_v1  ;;  %1099 = vmatpush.bf16.msra.mxu3 %v901_v1  ;;  %v887_v11 = vld [vmem:[%s1426_s0 + $0xc0] sm:$0xff]  ;;  %v888_v15 = vld [vmem:[%s1426_s0 + $0xc8] sm:$0xff]  ;;  %v866_v20 = vld [vmem:[%s1426_s0 + $0x18] sm:$0xff] }
   0x8   :  { %v874_v21 = vld [vmem:[%s1426_s0 + $0x58] sm:$0xff]  ;;  %v867_v24 = vld [vmem:[%s1426_s0 + $0x20] sm:$0xff]  ;;  %v868_v28 = vld [vmem:[%s1426_s0 + $0x28] sm:$0xff] }
   0x9   :  { %v882_v22 = vld [vmem:[%s1426_s0 + $0x98] sm:$0xff]  ;;  %v875_v25 = vld [vmem:[%s1426_s0 + $0x60] sm:$0xff]  ;;  %v876_v29 = vld [vmem:[%s1426_s0 + $0x68] sm:$0xff] }
   0xa   :  { %340 = vmatpush.bf16.msra.mxu0 %v900_v2  ;;  %1100 = vmatpush.bf16.msra.mxu1 %v900_v2  ;;  %v890_v23 = vld [vmem:[%s1426_s0 + $0xd8] sm:$0xff]  ;;  %v883_v26 = vld [vmem:[%s1426_s0 + $0xa0] sm:$0xff]  ;;  %v884_v30 = vld [vmem:[%s1426_s0 + $0xa8] sm:$0xff] }
   0xb   :  { %1101 = vmatpush.bf16.msra.mxu2 %v900_v2  ;;  %1102 = vmatpush.bf16.msra.mxu3 %v900_v2  ;;  %v891_v27 = vld [vmem:[%s1426_s0 + $0xe0] sm:$0xff]  ;;  %v892_v31 = vld [vmem:[%s1426_s0 + $0xe8] sm:$0xff]  ;;  %v869_v32 = vld [vmem:[%s1426_s0 + $0x30] sm:$0xff] }
   0xc   :  { %v877_v33 = vld [vmem:[%s1426_s0 + $0x70] sm:$0xff]  ;;  %v870_v36 = vld [vmem:[%s1426_s0 + $0x38] sm:$0xff]  ;;  %v1262_v42 = vld [vmem:[%s1425_s2] ss:$0 sm:$0xff] }
   0xd   :  { %v885_v34 = vld [vmem:[%s1426_s0 + $0xb0] sm:$0xff]  ;;  %v878_v37 = vld [vmem:[%s1426_s0 + $0x78] sm:$0xff] }
   0xe   :  { %341 = vmatpush.bf16.msra.mxu0 %v899_v3  ;;  %1103 = vmatpush.bf16.msra.mxu1 %v899_v3  ;;  %v893_v35 = vld [vmem:[%s1426_s0 + $0xf0] sm:$0xff]  ;;  %v886_v38 = vld [vmem:[%s1426_s0 + $0xb8] sm:$0xff] }
   0xf   :  { %1104 = vmatpush.bf16.msra.mxu2 %v899_v3  ;;  %1105 = vmatpush.bf16.msra.mxu3 %v899_v3  ;;  %v894_v39 = vld [vmem:[%s1426_s0 + $0xf8] sm:$0xff] }
  0x12   :  { %342 = vmatpush.bf16.msra.mxu0 %v898_v4  ;;  %1106 = vmatpush.bf16.msra.mxu1 %v898_v4 }
  0x13   :  { %1107 = vmatpush.bf16.msra.mxu2 %v898_v4  ;;  %1108 = vmatpush.bf16.msra.mxu3 %v898_v4 }
  0x16   :  { %343 = vmatpush.bf16.msra.mxu0 %v897_v5  ;;  %1109 = vmatpush.bf16.msra.mxu1 %v897_v5 }
  0x17   :  { %1110 = vmatpush.bf16.msra.mxu2 %v897_v5  ;;  %1111 = vmatpush.bf16.msra.mxu3 %v897_v5 }
  0x1a   :  { %344 = vmatpush.bf16.msra.mxu0 %v896_v6  ;;  %1112 = vmatpush.bf16.msra.mxu1 %v896_v6 }
  0x1b   :  { %1113 = vmatpush.bf16.msra.mxu2 %v896_v6  ;;  %1114 = vmatpush.bf16.msra.mxu3 %v896_v6 }
  0x1e   :  { %345 = vmatpush.bf16.msra.mxu0 %v895_v7  ;;  %1115 = vmatpush.bf16.msra.mxu1 %v895_v7 }
  0x1f   :  { %1116 = vmatpush.bf16.msra.mxu2 %v895_v7  ;;  %1117 = vmatpush.bf16.msra.mxu3 %v895_v7 }
  0x21   :  { %346 = vmatmul.bf16.vlgmr.msra.gmra.mxu0 %v863_v8  ;;  %386 = vmatmul.bf16.vlgmr.msra.gmra.mxu1 %v871_v9 }
  0x22   :  { %426 = vmatmul.bf16.vlgmr.msra.gmra.mxu2 %v879_v10  ;;  %466 = vmatmul.bf16.vlgmr.msra.gmra.mxu3 %v887_v11 }
  0x31   :  { %351 = vmatmul.bf16.gmra.mxu0 %v864_v12  ;;  %391 = vmatmul.bf16.gmra.mxu1 %v872_v13 }
  0x32   :  { %431 = vmatmul.bf16.gmra.mxu2 %v880_v14  ;;  %471 = vmatmul.bf16.gmra.mxu3 %v888_v15 }
  0x41   :  { %356 = vmatmul.bf16.gmra.mxu0 %v865_v16  ;;  %396 = vmatmul.bf16.gmra.mxu1 %v873_v17 }
  0x42   :  { %436 = vmatmul.bf16.gmra.mxu2 %v881_v18  ;;  %476 = vmatmul.bf16.gmra.mxu3 %v889_v19 }
  0x51   :  { %361 = vmatmul.bf16.gmra.mxu0 %v866_v20  ;;  %401 = vmatmul.bf16.gmra.mxu1 %v874_v21 }
  0x52   :  { %441 = vmatmul.bf16.gmra.mxu2 %v882_v22  ;;  %481 = vmatmul.bf16.gmra.mxu3 %v890_v23 }
  0x61   :  { %366 = vmatmul.bf16.gmra.mxu0 %v867_v24  ;;  %406 = vmatmul.bf16.gmra.mxu1 %v875_v25 }
  0x62   :  { %446 = vmatmul.bf16.gmra.mxu2 %v883_v26  ;;  %486 = vmatmul.bf16.gmra.mxu3 %v891_v27 }
  0x71   :  { %371 = vmatmul.bf16.gmra.mxu0 %v868_v28  ;;  %411 = vmatmul.bf16.gmra.mxu1 %v876_v29 }
  0x72   :  { %451 = vmatmul.bf16.gmra.mxu2 %v884_v30  ;;  %491 = vmatmul.bf16.gmra.mxu3 %v892_v31 }
  0x81   :  { %376 = vmatmul.bf16.gmra.mxu0 %v869_v32  ;;  %416 = vmatmul.bf16.gmra.mxu1 %v877_v33 }
  0x82   :  { %456 = vmatmul.bf16.gmra.mxu2 %v885_v34  ;;  %496 = vmatmul.bf16.gmra.mxu3 %v893_v35 }
  0x91   :  { %381 = vmatmul.bf16.gmra.mxu0 %v870_v36  ;;  %421 = vmatmul.bf16.gmra.mxu1 %v878_v37 }
  0x92   :  { %461 = vmatmul.bf16.gmra.mxu2 %v886_v38  ;;  %501 = vmatmul.bf16.gmra.mxu3 %v894_v39 }
  0x9e   :  { %v347_v40 = vpop.f32.mrf.mxu0  ;;  %v387_v41 = vpop.f32.mrf.mxu1 }
  0x9f   :  { %v348_v43 = vadd.f32 %v1262_v42, %v347_v40  ;;  %v388_v44 = vadd.f32 %v1262_v42, %v387_v41 }
  0xa1   :  { %v507_v51 = vmax.f32 %v348_v43, 0.0  ;;  %v523_v52 = vmax.f32 %v388_v44, 0.0 }
  0xa5   :  { %v427_v45 = vpop.f32.mrf.mxu2  ;;  %v467_v46 = vpop.f32.mrf.mxu3 }
  0xa6   :  { %v349_v47 = vpop.f32.mrf.mxu0  ;;  %v389_v48 = vpop.f32.mrf.mxu1  ;;  %v428_v57 = vadd.f32 %v1262_v42, %v427_v45  ;;  %v468_v58 = vadd.f32 %v1262_v42, %v467_v46 }
  0xa7   :  { %v350_v49 = vadd.f32 %v1262_v42, %v349_v47  ;;  %v390_v50 = vadd.f32 %v1262_v42, %v389_v48 }
  0xa8   :  { %v539_v1 = vmax.f32 %v428_v57, 0.0  ;;  %v555_v2 = vmax.f32 %v468_v58, 0.0 }
  0xa9   :  { %v508_v53 = vmax.f32 %v350_v49, 0.0  ;;  %v524_v54 = vmax.f32 %v390_v50, 0.0 }
  0xab   :  { %v906_v55 = vpack.c.bf16 %v508_v53, %v507_v51  ;;  %v946_v56 = vpack.c.bf16 %v524_v54, %v523_v52 }
  0xad   :  { %907 = vst [vmem:[%s1427_s3] sm:$0xff] %v906_v55   ;;  %v429_v59 = vpop.f32.mrf.mxu2  ;;  %v469_v60 = vpop.f32.mrf.mxu3 }
  0xae   :  { %1070 = vst [vmem:[%s1427_s3 + $0x40] sm:$0xff] %v946_v56   ;;  %v430_v61 = vadd.f32 %v1262_v42, %v429_v59  ;;  %v470_v62 = vadd.f32 %v1262_v42, %v469_v60  ;;  %v352_v63 = vpop.f32.mrf.mxu0  ;;  %v392_v0 = vpop.f32.mrf.mxu1 }
  0xaf   :  { %v353_v7 = vadd.f32 %v1262_v42, %v352_v63  ;;  %v393_v8 = vadd.f32 %v1262_v42, %v392_v0 }
  0xb0   :  { %v540_v3 = vmax.f32 %v430_v61, 0.0  ;;  %v556_v4 = vmax.f32 %v470_v62, 0.0 }
  0xb1   :  { %v509_v15 = vmax.f32 %v353_v7, 0.0  ;;  %v525_v16 = vmax.f32 %v393_v8, 0.0 }
  0xb2   :  { %v986_v5 = vpack.c.bf16 %v540_v3, %v539_v1  ;;  %v1026_v6 = vpack.c.bf16 %v556_v4, %v555_v2 }
  0xb4   :  { %1078 = vst [vmem:[%s1427_s3 + $0x80] sm:$0xff] %v986_v5  }
  0xb5   :  { %1086 = vst [vmem:[%s1427_s3 + $0xc0] sm:$0xff] %v1026_v6   ;;  %v432_v9 = vpop.f32.mrf.mxu2  ;;  %v472_v10 = vpop.f32.mrf.mxu3 }
  0xb6   :  { %v354_v11 = vpop.f32.mrf.mxu0  ;;  %v394_v12 = vpop.f32.mrf.mxu1  ;;  %v433_v21 = vadd.f32 %v1262_v42, %v432_v9  ;;  %v473_v22 = vadd.f32 %v1262_v42, %v472_v10 }
  0xb7   :  { %v355_v13 = vadd.f32 %v1262_v42, %v354_v11  ;;  %v395_v14 = vadd.f32 %v1262_v42, %v394_v12 }
  0xb8   :  { %v541_v29 = vmax.f32 %v433_v21, 0.0  ;;  %v557_v30 = vmax.f32 %v473_v22, 0.0 }
  0xb9   :  { %v510_v17 = vmax.f32 %v355_v13, 0.0  ;;  %v526_v18 = vmax.f32 %v395_v14, 0.0 }
  0xbb   :  { %v911_v19 = vpack.c.bf16 %v510_v17, %v509_v15  ;;  %v951_v20 = vpack.c.bf16 %v526_v18, %v525_v16 }
  0xbd   :  { %1063 = vst [vmem:[%s1427_s3 + $0x8] sm:$0xff] %v911_v19   ;;  %v434_v23 = vpop.f32.mrf.mxu2  ;;  %v474_v24 = vpop.f32.mrf.mxu3 }
  0xbe   :  { %1071 = vst [vmem:[%s1427_s3 + $0x48] sm:$0xff] %v951_v20   ;;  %v435_v25 = vadd.f32 %v1262_v42, %v434_v23  ;;  %v475_v26 = vadd.f32 %v1262_v42, %v474_v24  ;;  %v357_v27 = vpop.f32.mrf.mxu0  ;;  %v397_v28 = vpop.f32.mrf.mxu1 }
  0xbf   :  { %v358_v35 = vadd.f32 %v1262_v42, %v357_v27  ;;  %v398_v36 = vadd.f32 %v1262_v42, %v397_v28 }
  0xc0   :  { %v542_v31 = vmax.f32 %v435_v25, 0.0  ;;  %v558_v32 = vmax.f32 %v475_v26, 0.0 }
  0xc1   :  { %v511_v44 = vmax.f32 %v358_v35, 0.0  ;;  %v527_v45 = vmax.f32 %v398_v36, 0.0 }
  0xc2   :  { %v991_v33 = vpack.c.bf16 %v542_v31, %v541_v29  ;;  %v1031_v34 = vpack.c.bf16 %v558_v32, %v557_v30 }
  0xc4   :  { %1079 = vst [vmem:[%s1427_s3 + $0x88] sm:$0xff] %v991_v33  }
  0xc5   :  { %1087 = vst [vmem:[%s1427_s3 + $0xc8] sm:$0xff] %v1031_v34   ;;  %v437_v37 = vpop.f32.mrf.mxu2  ;;  %v477_v38 = vpop.f32.mrf.mxu3 }
  0xc6   :  { %v359_v39 = vpop.f32.mrf.mxu0  ;;  %v399_v40 = vpop.f32.mrf.mxu1  ;;  %v438_v50 = vadd.f32 %v1262_v42, %v437_v37  ;;  %v478_v51 = vadd.f32 %v1262_v42, %v477_v38 }
  0xc7   :  { %v360_v41 = vadd.f32 %v1262_v42, %v359_v39  ;;  %v400_v43 = vadd.f32 %v1262_v42, %v399_v40 }
  0xc8   :  { %v543_v58 = vmax.f32 %v438_v50, 0.0  ;;  %v559_v59 = vmax.f32 %v478_v51, 0.0 }
  0xc9   :  { %v512_v46 = vmax.f32 %v360_v41, 0.0  ;;  %v528_v47 = vmax.f32 %v400_v43, 0.0 }
  0xcb   :  { %v916_v48 = vpack.c.bf16 %v512_v46, %v511_v44  ;;  %v956_v49 = vpack.c.bf16 %v528_v47, %v527_v45 }
  0xcd   :  { %1064 = vst [vmem:[%s1427_s3 + $0x10] sm:$0xff] %v916_v48   ;;  %v439_v52 = vpop.f32.mrf.mxu2  ;;  %v479_v53 = vpop.f32.mrf.mxu3 }
  0xce   :  { %1072 = vst [vmem:[%s1427_s3 + $0x50] sm:$0xff] %v956_v49   ;;  %v440_v54 = vadd.f32 %v1262_v42, %v439_v52  ;;  %v480_v55 = vadd.f32 %v1262_v42, %v479_v53  ;;  %v362_v56 = vpop.f32.mrf.mxu0  ;;  %v402_v57 = vpop.f32.mrf.mxu1 }
  0xcf   :  { %v363_v0 = vadd.f32 %v1262_v42, %v362_v56  ;;  %v403_v1 = vadd.f32 %v1262_v42, %v402_v57 }
  0xd0   :  { %v544_v60 = vmax.f32 %v440_v54, 0.0  ;;  %v560_v61 = vmax.f32 %v480_v55, 0.0 }
  0xd1   :  { %v513_v8 = vmax.f32 %v363_v0, 0.0  ;;  %v529_v9 = vmax.f32 %v403_v1, 0.0 }
  0xd2   :  { %v996_v62 = vpack.c.bf16 %v544_v60, %v543_v58  ;;  %v1036_v63 = vpack.c.bf16 %v560_v61, %v559_v59 }
  0xd4   :  { %1080 = vst [vmem:[%s1427_s3 + $0x90] sm:$0xff] %v996_v62  }
  0xd5   :  { %1088 = vst [vmem:[%s1427_s3 + $0xd0] sm:$0xff] %v1036_v63   ;;  %v442_v2 = vpop.f32.mrf.mxu2  ;;  %v482_v3 = vpop.f32.mrf.mxu3 }
  0xd6   :  { %v364_v4 = vpop.f32.mrf.mxu0  ;;  %v404_v5 = vpop.f32.mrf.mxu1  ;;  %v443_v14 = vadd.f32 %v1262_v42, %v442_v2  ;;  %v483_v15 = vadd.f32 %v1262_v42, %v482_v3 }
  0xd7   :  { %v365_v6 = vadd.f32 %v1262_v42, %v364_v4  ;;  %v405_v7 = vadd.f32 %v1262_v42, %v404_v5 }
  0xd8   :  { %v545_v22 = vmax.f32 %v443_v14, 0.0  ;;  %v561_v23 = vmax.f32 %v483_v15, 0.0 }
  0xd9   :  { %v514_v10 = vmax.f32 %v365_v6, 0.0  ;;  %v530_v11 = vmax.f32 %v405_v7, 0.0 }
  0xdb   :  { %v921_v12 = vpack.c.bf16 %v514_v10, %v513_v8  ;;  %v961_v13 = vpack.c.bf16 %v530_v11, %v529_v9 }
  0xdd   :  { %1065 = vst [vmem:[%s1427_s3 + $0x18] sm:$0xff] %v921_v12   ;;  %v444_v16 = vpop.f32.mrf.mxu2  ;;  %v484_v17 = vpop.f32.mrf.mxu3 }
  0xde   :  { %1073 = vst [vmem:[%s1427_s3 + $0x58] sm:$0xff] %v961_v13   ;;  %v445_v18 = vadd.f32 %v1262_v42, %v444_v16  ;;  %v485_v19 = vadd.f32 %v1262_v42, %v484_v17  ;;  %v367_v20 = vpop.f32.mrf.mxu0  ;;  %v407_v21 = vpop.f32.mrf.mxu1 }
  0xdf   :  { %v368_v28 = vadd.f32 %v1262_v42, %v367_v20  ;;  %v408_v29 = vadd.f32 %v1262_v42, %v407_v21 }
  0xe0   :  { %v546_v24 = vmax.f32 %v445_v18, 0.0  ;;  %v562_v25 = vmax.f32 %v485_v19, 0.0 }
  0xe1   :  { %v515_v36 = vmax.f32 %v368_v28, 0.0  ;;  %v531_v37 = vmax.f32 %v408_v29, 0.0 }
  0xe2   :  { %v1001_v26 = vpack.c.bf16 %v546_v24, %v545_v22  ;;  %v1041_v27 = vpack.c.bf16 %v562_v25, %v561_v23 }
  0xe4   :  { %1081 = vst [vmem:[%s1427_s3 + $0x98] sm:$0xff] %v1001_v26  }
  0xe5   :  { %1089 = vst [vmem:[%s1427_s3 + $0xd8] sm:$0xff] %v1041_v27   ;;  %v447_v30 = vpop.f32.mrf.mxu2  ;;  %v487_v31 = vpop.f32.mrf.mxu3 }
  0xe6   :  { %v369_v32 = vpop.f32.mrf.mxu0  ;;  %v409_v33 = vpop.f32.mrf.mxu1  ;;  %v448_v43 = vadd.f32 %v1262_v42, %v447_v30  ;;  %v488_v44 = vadd.f32 %v1262_v42, %v487_v31 }
  0xe7   :  { %v370_v34 = vadd.f32 %v1262_v42, %v369_v32  ;;  %v410_v35 = vadd.f32 %v1262_v42, %v409_v33 }
  0xe8   :  { %v547_v51 = vmax.f32 %v448_v43, 0.0  ;;  %v563_v52 = vmax.f32 %v488_v44, 0.0 }
  0xe9   :  { %v516_v38 = vmax.f32 %v370_v34, 0.0  ;;  %v532_v39 = vmax.f32 %v410_v35, 0.0 }
  0xeb   :  { %v926_v40 = vpack.c.bf16 %v516_v38, %v515_v36  ;;  %v966_v41 = vpack.c.bf16 %v532_v39, %v531_v37 }
  0xed   :  { %1066 = vst [vmem:[%s1427_s3 + $0x20] sm:$0xff] %v926_v40   ;;  %v449_v45 = vpop.f32.mrf.mxu2  ;;  %v489_v46 = vpop.f32.mrf.mxu3 }
  0xee   :  { %1074 = vst [vmem:[%s1427_s3 + $0x60] sm:$0xff] %v966_v41   ;;  %v450_v47 = vadd.f32 %v1262_v42, %v449_v45  ;;  %v490_v48 = vadd.f32 %v1262_v42, %v489_v46  ;;  %v372_v49 = vpop.f32.mrf.mxu0  ;;  %v412_v50 = vpop.f32.mrf.mxu1 }
  0xef   :  { %v373_v57 = vadd.f32 %v1262_v42, %v372_v49  ;;  %v413_v58 = vadd.f32 %v1262_v42, %v412_v50 }
  0xf0   :  { %v548_v53 = vmax.f32 %v450_v47, 0.0  ;;  %v564_v54 = vmax.f32 %v490_v48, 0.0 }
  0xf1   :  { %v517_v1 = vmax.f32 %v373_v57, 0.0  ;;  %v533_v2 = vmax.f32 %v413_v58, 0.0 }
  0xf2   :  { %v1006_v55 = vpack.c.bf16 %v548_v53, %v547_v51  ;;  %v1046_v56 = vpack.c.bf16 %v564_v54, %v563_v52 }
  0xf4   :  { %1082 = vst [vmem:[%s1427_s3 + $0xa0] sm:$0xff] %v1006_v55  }
  0xf5   :  { %1090 = vst [vmem:[%s1427_s3 + $0xe0] sm:$0xff] %v1046_v56   ;;  %v452_v59 = vpop.f32.mrf.mxu2  ;;  %v492_v60 = vpop.f32.mrf.mxu3 }
  0xf6   :  { %v374_v61 = vpop.f32.mrf.mxu0  ;;  %v414_v62 = vpop.f32.mrf.mxu1  ;;  %v453_v7 = vadd.f32 %v1262_v42, %v452_v59  ;;  %v493_v8 = vadd.f32 %v1262_v42, %v492_v60 }
  0xf7   :  { %v375_v63 = vadd.f32 %v1262_v42, %v374_v61  ;;  %v415_v0 = vadd.f32 %v1262_v42, %v414_v62 }
  0xf8   :  { %v549_v15 = vmax.f32 %v453_v7, 0.0  ;;  %v565_v16 = vmax.f32 %v493_v8, 0.0 }
  0xf9   :  { %v518_v3 = vmax.f32 %v375_v63, 0.0  ;;  %v534_v4 = vmax.f32 %v415_v0, 0.0 }
  0xfb   :  { %v931_v5 = vpack.c.bf16 %v518_v3, %v517_v1  ;;  %v971_v6 = vpack.c.bf16 %v534_v4, %v533_v2 }
  0xfd   :  { %1067 = vst [vmem:[%s1427_s3 + $0x28] sm:$0xff] %v931_v5   ;;  %v454_v9 = vpop.f32.mrf.mxu2  ;;  %v494_v10 = vpop.f32.mrf.mxu3 }
  0xfe   :  { %1075 = vst [vmem:[%s1427_s3 + $0x68] sm:$0xff] %v971_v6   ;;  %v455_v11 = vadd.f32 %v1262_v42, %v454_v9  ;;  %v495_v12 = vadd.f32 %v1262_v42, %v494_v10  ;;  %v377_v13 = vpop.f32.mrf.mxu0  ;;  %v417_v14 = vpop.f32.mrf.mxu1 }
  0xff   :  { %v378_v21 = vadd.f32 %v1262_v42, %v377_v13  ;;  %v418_v22 = vadd.f32 %v1262_v42, %v417_v14 }
 0x100   :  { %v550_v17 = vmax.f32 %v455_v11, 0.0  ;;  %v566_v18 = vmax.f32 %v495_v12, 0.0 }
 0x101   :  { %v519_v29 = vmax.f32 %v378_v21, 0.0  ;;  %v535_v30 = vmax.f32 %v418_v22, 0.0 }
 0x102   :  { %v1011_v19 = vpack.c.bf16 %v550_v17, %v549_v15  ;;  %v1051_v20 = vpack.c.bf16 %v566_v18, %v565_v16 }
 0x104   :  { %1083 = vst [vmem:[%s1427_s3 + $0xa8] sm:$0xff] %v1011_v19  }
 0x105   :  { %1091 = vst [vmem:[%s1427_s3 + $0xe8] sm:$0xff] %v1051_v20   ;;  %v457_v23 = vpop.f32.mrf.mxu2  ;;  %v497_v24 = vpop.f32.mrf.mxu3 }
 0x106   :  { %v379_v25 = vpop.f32.mrf.mxu0  ;;  %v419_v26 = vpop.f32.mrf.mxu1  ;;  %v458_v35 = vadd.f32 %v1262_v42, %v457_v23  ;;  %v498_v36 = vadd.f32 %v1262_v42, %v497_v24 }
 0x107   :  { %v380_v27 = vadd.f32 %v1262_v42, %v379_v25  ;;  %v420_v28 = vadd.f32 %v1262_v42, %v419_v26 }
 0x108   :  { %v551_v44 = vmax.f32 %v458_v35, 0.0  ;;  %v567_v45 = vmax.f32 %v498_v36, 0.0 }
 0x109   :  { %v520_v31 = vmax.f32 %v380_v27, 0.0  ;;  %v536_v32 = vmax.f32 %v420_v28, 0.0 }
 0x10b   :  { %v936_v33 = vpack.c.bf16 %v520_v31, %v519_v29  ;;  %v976_v34 = vpack.c.bf16 %v536_v32, %v535_v30 }
 0x10d   :  { %1068 = vst [vmem:[%s1427_s3 + $0x30] sm:$0xff] %v936_v33   ;;  %v459_v37 = vpop.f32.mrf.mxu2  ;;  %v499_v38 = vpop.f32.mrf.mxu3 }
 0x10e   :  { %1076 = vst [vmem:[%s1427_s3 + $0x70] sm:$0xff] %v976_v34   ;;  %v460_v39 = vadd.f32 %v1262_v42, %v459_v37  ;;  %v500_v40 = vadd.f32 %v1262_v42, %v499_v38  ;;  %v382_v41 = vpop.f32.mrf.mxu0  ;;  %v422_v43 = vpop.f32.mrf.mxu1 }
 0x10f   :  { %v383_v50 = vadd.f32 %v1262_v42, %v382_v41  ;;  %v423_v51 = vadd.f32 %v1262_v42, %v422_v43 }
 0x110   :  { %v552_v46 = vmax.f32 %v460_v39, 0.0  ;;  %v568_v47 = vmax.f32 %v500_v40, 0.0 }
 0x111   :  { %v521_v58 = vmax.f32 %v383_v50, 0.0  ;;  %v537_v59 = vmax.f32 %v423_v51, 0.0 }
 0x112   :  { %v1016_v48 = vpack.c.bf16 %v552_v46, %v551_v44  ;;  %v1056_v49 = vpack.c.bf16 %v568_v47, %v567_v45 }
 0x114   :  { %1084 = vst [vmem:[%s1427_s3 + $0xb0] sm:$0xff] %v1016_v48  }
 0x115   :  { %1092 = vst [vmem:[%s1427_s3 + $0xf0] sm:$0xff] %v1056_v49   ;;  %v462_v52 = vpop.f32.mrf.mxu2  ;;  %v502_v53 = vpop.f32.mrf.mxu3 }
 0x116   :  { %v384_v54 = vpop.f32.mrf.mxu0  ;;  %v424_v55 = vpop.f32.mrf.mxu1  ;;  %v463_v0 = vadd.f32 %v1262_v42, %v462_v52  ;;  %v503_v1 = vadd.f32 %v1262_v42, %v502_v53 }
 0x117   :  { %v385_v56 = vadd.f32 %v1262_v42, %v384_v54  ;;  %v425_v57 = vadd.f32 %v1262_v42, %v424_v55 }
 0x118   :  { %v553_v6 = vmax.f32 %v463_v0, 0.0  ;;  %v569_v7 = vmax.f32 %v503_v1, 0.0 }
 0x119   :  { %v522_v60 = vmax.f32 %v385_v56, 0.0  ;;  %v538_v61 = vmax.f32 %v425_v57, 0.0 }
 0x11b   :  { %v941_v62 = vpack.c.bf16 %v522_v60, %v521_v58  ;;  %v981_v63 = vpack.c.bf16 %v538_v61, %v537_v59 }
 0x11d   :  { %1069 = vst [vmem:[%s1427_s3 + $0x38] sm:$0xff] %v941_v62   ;;  %v464_v2 = vpop.f32.mrf.mxu2  ;;  %v504_v3 = vpop.f32.mrf.mxu3 }
 0x11e   :  { %1077 = vst [vmem:[%s1427_s3 + $0x78] sm:$0xff] %v981_v63   ;;  %v465_v4 = vadd.f32 %v1262_v42, %v464_v2  ;;  %v505_v5 = vadd.f32 %v1262_v42, %v504_v3 }
 0x120   :  { %v554_v8 = vmax.f32 %v465_v4, 0.0  ;;  %v570_v9 = vmax.f32 %v505_v5, 0.0 }
 0x122   :  { %v1021_v10 = vpack.c.bf16 %v554_v8, %v553_v6  ;;  %v1061_v11 = vpack.c.bf16 %v570_v9, %v569_v7 }
 0x124   :  { %1085 = vst [vmem:[%s1427_s3 + $0xb8] sm:$0xff] %v1021_v10  }
 0x125   :  { %1093 = vst [vmem:[%s1427_s3 + $0xf8] sm:$0xff] %v1061_v11  }

// kernel: _lambda_.10
= control target key start
LH: loop header
LB: loop body
LE: loop exit
PB: predicated region body
PF: predicated region fallthrough
CT: control target
= control target key end

     0   :  { %s631_s1 = inlined_call_operand.vmem [shape: bf16[128,128], index: 1, kind: input, shape index: {}]   ;;  %s632_s2 = inlined_call_operand.vmem [shape: f32[1,128], index: 2, kind: input, shape index: {}]   ;;  %s633_s0 = inlined_call_operand.vmem [shape: bf16[128,128], index: 0, kind: input, shape index: {}]   ;;  %s634_s3 = inlined_call_operand.vmem [shape: bf16[128,128], index: 3, kind: input, shape index: {}]   ;;  %s635_s4 = inlined_call_operand.vmem [shape: bf16[128,128], index: 4, kind: output, shape index: {}]  }
   0x1   :  { %v377_v0 = vld [vmem:[%s631_s1 + $0x38] sm:$0xff]  ;;  %v376_v1 = vld [vmem:[%s631_s1 + $0x30] sm:$0xff]  ;;  %v375_v2 = vld [vmem:[%s631_s1 + $0x28] sm:$0xff] }
   0x2   :  { %149 = vmatpush.bf16.msra.mxu0 %v377_v0  ;;  %464 = vmatpush.bf16.msra.mxu1 %v377_v0  ;;  %v374_v3 = vld [vmem:[%s631_s1 + $0x20] sm:$0xff]  ;;  %v373_v4 = vld [vmem:[%s631_s1 + $0x18] sm:$0xff]  ;;  %v372_v5 = vld [vmem:[%s631_s1 + $0x10] sm:$0xff] }
   0x3   :  { %465 = vmatpush.bf16.msra.mxu2 %v377_v0  ;;  %466 = vmatpush.bf16.msra.mxu3 %v377_v0  ;;  %v371_v6 = vld [vmem:[%s631_s1 + $0x8] sm:$0xff]  ;;  %v370_v7 = vld [vmem:[%s631_s1] sm:$0xff]  ;;  %v364_v9 = vld [vmem:[%s633_s0 + $0x10] sm:$0xff] }
   0x4   :  { %v362_v8 = vld [vmem:[%s633_s0] sm:$0xff]  ;;  %v368_v11 = vld [vmem:[%s633_s0 + $0x30] sm:$0xff]  ;;  %v363_v12 = vld [vmem:[%s633_s0 + $0x8] sm:$0xff] }
   0x5   :  { %v366_v10 = vld [vmem:[%s633_s0 + $0x20] sm:$0xff]  ;;  %v365_v13 = vld [vmem:[%s633_s0 + $0x18] sm:$0xff]  ;;  %v367_v14 = vld [vmem:[%s633_s0 + $0x28] sm:$0xff] }
   0x6   :  { %150 = vmatpush.bf16.msra.mxu0 %v376_v1  ;;  %467 = vmatpush.bf16.msra.mxu1 %v376_v1  ;;  %v369_v15 = vld [vmem:[%s633_s0 + $0x38] sm:$0xff]  ;;  %v565_v18 = vld [vmem:[%s632_s2] ss:$0 sm:$0xff]  ;;  %v451_v20 = vld [vmem:[%s634_s3 + $0x10] sm:$0xff]  }
   0x7   :  { %468 = vmatpush.bf16.msra.mxu2 %v376_v1  ;;  %469 = vmatpush.bf16.msra.mxu3 %v376_v1  ;;  %v379_v19 = vld [vmem:[%s634_s3] sm:$0xff]   ;;  %v388_v24 = vunpack.c.l.bf16 %v451_v20  ;;  %v389_v28 = vunpack.c.h.bf16 %v451_v20  ;;  %v455_v34 = vld [vmem:[%s634_s3 + $0x30] sm:$0xff]   ;;  %v450_v61 = vld [vmem:[%s634_s3 + $0x8] sm:$0xff]  }
   0x8   :  { %v380_v22 = vunpack.c.l.bf16 %v379_v19  ;;  %v381_v27 = vunpack.c.h.bf16 %v379_v19  ;;  %v453_v33 = vld [vmem:[%s634_s3 + $0x20] sm:$0xff]   ;;  %v404_v42 = vunpack.c.l.bf16 %v455_v34  ;;  %v405_v48 = vunpack.c.h.bf16 %v455_v34  ;;  %v452_v62 = vld [vmem:[%s634_s3 + $0x18] sm:$0xff]  }
   0x9   :  { %v396_v40 = vunpack.c.l.bf16 %v453_v33  ;;  %v397_v47 = vunpack.c.h.bf16 %v453_v33  ;;  %v456_v19 = vld [vmem:[%s634_s3 + $0x38] sm:$0xff]  }
   0xa   :  { %151 = vmatpush.bf16.msra.mxu0 %v375_v2  ;;  %470 = vmatpush.bf16.msra.mxu1 %v375_v2  ;;  %v409_v33 = vunpack.c.h.bf16 %v456_v19 }
   0xb   :  { %471 = vmatpush.bf16.msra.mxu2 %v375_v2  ;;  %472 = vmatpush.bf16.msra.mxu3 %v375_v2 }
   0xe   :  { %152 = vmatpush.bf16.msra.mxu0 %v374_v3  ;;  %473 = vmatpush.bf16.msra.mxu1 %v374_v3 }
   0xf   :  { %474 = vmatpush.bf16.msra.mxu2 %v374_v3  ;;  %475 = vmatpush.bf16.msra.mxu3 %v374_v3 }
  0x12   :  { %153 = vmatpush.bf16.msra.mxu0 %v373_v4  ;;  %476 = vmatpush.bf16.msra.mxu1 %v373_v4 }
  0x13   :  { %477 = vmatpush.bf16.msra.mxu2 %v373_v4  ;;  %478 = vmatpush.bf16.msra.mxu3 %v373_v4  ;;  %v384_v4 = vunpack.c.l.bf16 %v450_v61 }
  0x16   :  { %154 = vmatpush.bf16.msra.mxu0 %v372_v5  ;;  %479 = vmatpush.bf16.msra.mxu1 %v372_v5 }
  0x17   :  { %480 = vmatpush.bf16.msra.mxu2 %v372_v5  ;;  %481 = vmatpush.bf16.msra.mxu3 %v372_v5 }
  0x1a   :  { %155 = vmatpush.bf16.msra.mxu0 %v371_v6  ;;  %482 = vmatpush.bf16.msra.mxu1 %v371_v6 }
  0x1b   :  { %483 = vmatpush.bf16.msra.mxu2 %v371_v6  ;;  %484 = vmatpush.bf16.msra.mxu3 %v371_v6  ;;  %v392_v6 = vunpack.c.l.bf16 %v452_v62 }
  0x1e   :  { %156 = vmatpush.bf16.msra.mxu0 %v370_v7  ;;  %485 = vmatpush.bf16.msra.mxu1 %v370_v7 }
  0x1f   :  { %486 = vmatpush.bf16.msra.mxu2 %v370_v7  ;;  %487 = vmatpush.bf16.msra.mxu3 %v370_v7 }
  0x21   :  { %157 = vmatmul.bf16.vlgmr.msra.gmra.mxu0 %v362_v8  ;;  %167 = vmatmul.bf16.vlgmr.msra.gmra.mxu1 %v364_v9 }
  0x22   :  { %177 = vmatmul.bf16.vlgmr.msra.gmra.mxu2 %v366_v10  ;;  %187 = vmatmul.bf16.vlgmr.msra.gmra.mxu3 %v368_v11  ;;  %v385_v11 = vunpack.c.h.bf16 %v450_v61 }
  0x31   :  { %162 = vmatmul.bf16.gmra.mxu0 %v363_v12  ;;  %172 = vmatmul.bf16.gmra.mxu1 %v365_v13  ;;  %v393_v12 = vunpack.c.h.bf16 %v452_v62 }
  0x32   :  { %182 = vmatmul.bf16.gmra.mxu2 %v367_v14  ;;  %192 = vmatmul.bf16.gmra.mxu3 %v369_v15 }
  0x9e   :  { %v158_v16 = vpop.f32.mrf.mxu0  ;;  %v168_v17 = vpop.f32.mrf.mxu1 }
  0x9f   :  { %v159_v21 = vadd.f32 %v565_v18, %v158_v16  ;;  %v169_v23 = vadd.f32 %v565_v18, %v168_v17  ;;  %v454_v17 = vld [vmem:[%s634_s3 + $0x28] sm:$0xff]  }
  0xa1   :  { %v230_v31 = vadd.f32 %v380_v22, %v159_v21  ;;  %v234_v32 = vadd.f32 %v388_v24, %v169_v23 }
  0xa3   :  { %v246_v43 = vmax.f32 %v230_v31, 0.0  ;;  %v250_v44 = vmax.f32 %v234_v32, 0.0  ;;  %v401_v32 = vunpack.c.h.bf16 %v454_v17 }
  0xa5   :  { %v178_v25 = vpop.f32.mrf.mxu2  ;;  %v188_v26 = vpop.f32.mrf.mxu3 }
  0xa6   :  { %v160_v29 = vpop.f32.mrf.mxu0  ;;  %v170_v30 = vpop.f32.mrf.mxu1  ;;  %v179_v39 = vadd.f32 %v565_v18, %v178_v25  ;;  %v189_v41 = vadd.f32 %v565_v18, %v188_v26  ;;  %v400_v25 = vunpack.c.l.bf16 %v454_v17 }
  0xa7   :  { %v161_v35 = vadd.f32 %v565_v18, %v160_v29  ;;  %v171_v36 = vadd.f32 %v565_v18, %v170_v30 }
  0xa8   :  { %v238_v53 = vadd.f32 %v396_v40, %v179_v39  ;;  %v242_v54 = vadd.f32 %v404_v42, %v189_v41 }
  0xa9   :  { %v231_v37 = vadd.f32 %v381_v27, %v161_v35  ;;  %v235_v38 = vadd.f32 %v389_v28, %v171_v36  ;;  %v408_v27 = vunpack.c.l.bf16 %v456_v19 }
  0xaa   :  { %v254_v63 = vmax.f32 %v238_v53, 0.0  ;;  %v258_v0 = vmax.f32 %v242_v54, 0.0 }
  0xab   :  { %v247_v45 = vmax.f32 %v231_v37, 0.0  ;;  %v251_v46 = vmax.f32 %v235_v38, 0.0 }
  0xad   :  { %v413_v49 = vpack.c.bf16 %v247_v45, %v246_v43  ;;  %v423_v50 = vpack.c.bf16 %v251_v46, %v250_v44  ;;  %v180_v51 = vpop.f32.mrf.mxu2  ;;  %v190_v52 = vpop.f32.mrf.mxu3 }
  0xae   :  { %v181_v55 = vadd.f32 %v565_v18, %v180_v51  ;;  %v191_v56 = vadd.f32 %v565_v18, %v190_v52  ;;  %v163_v57 = vpop.f32.mrf.mxu0  ;;  %v173_v58 = vpop.f32.mrf.mxu1 }
  0xaf   :  { %414 = vst [vmem:[%s635_s4] sm:$0xff] %v413_v49   ;;  %v164_v3 = vadd.f32 %v565_v18, %v163_v57  ;;  %v174_v5 = vadd.f32 %v565_v18, %v173_v58 }
  0xb0   :  { %458 = vst [vmem:[%s635_s4 + $0x10] sm:$0xff] %v423_v50   ;;  %v239_v59 = vadd.f32 %v397_v47, %v181_v55  ;;  %v243_v60 = vadd.f32 %v405_v48, %v191_v56 }
  0xb1   :  { %v232_v15 = vadd.f32 %v384_v4, %v164_v3  ;;  %v236_v16 = vadd.f32 %v392_v6, %v174_v5 }
  0xb2   :  { %v255_v1 = vmax.f32 %v239_v59, 0.0  ;;  %v259_v2 = vmax.f32 %v243_v60, 0.0 }
  0xb3   :  { %v248_v28 = vmax.f32 %v232_v15, 0.0  ;;  %v252_v29 = vmax.f32 %v236_v16, 0.0 }
  0xb4   :  { %v433_v7 = vpack.c.bf16 %v255_v1, %v254_v63  ;;  %v443_v8 = vpack.c.bf16 %v259_v2, %v258_v0 }
  0xb5   :  { %v183_v9 = vpop.f32.mrf.mxu2  ;;  %v193_v10 = vpop.f32.mrf.mxu3 }
  0xb6   :  { %460 = vst [vmem:[%s635_s4 + $0x20] sm:$0xff] %v433_v7   ;;  %v165_v13 = vpop.f32.mrf.mxu0  ;;  %v175_v14 = vpop.f32.mrf.mxu1  ;;  %v184_v24 = vadd.f32 %v565_v18, %v183_v9  ;;  %v194_v26 = vadd.f32 %v565_v18, %v193_v10 }
  0xb7   :  { %462 = vst [vmem:[%s635_s4 + $0x30] sm:$0xff] %v443_v8   ;;  %v166_v20 = vadd.f32 %v565_v18, %v165_v13  ;;  %v176_v21 = vadd.f32 %v565_v18, %v175_v14 }
  0xb8   :  { %v240_v38 = vadd.f32 %v400_v25, %v184_v24  ;;  %v244_v39 = vadd.f32 %v408_v27, %v194_v26 }
  0xb9   :  { %v233_v22 = vadd.f32 %v385_v11, %v166_v20  ;;  %v237_v23 = vadd.f32 %v393_v12, %v176_v21 }
  0xba   :  { %v256_v44 = vmax.f32 %v240_v38, 0.0  ;;  %v260_v45 = vmax.f32 %v244_v39, 0.0 }
  0xbb   :  { %v249_v30 = vmax.f32 %v233_v22, 0.0  ;;  %v253_v31 = vmax.f32 %v237_v23, 0.0 }
  0xbd   :  { %v418_v34 = vpack.c.bf16 %v249_v30, %v248_v28  ;;  %v428_v35 = vpack.c.bf16 %v253_v31, %v252_v29  ;;  %v185_v36 = vpop.f32.mrf.mxu2  ;;  %v195_v37 = vpop.f32.mrf.mxu3 }
  0xbe   :  { %v186_v40 = vadd.f32 %v565_v18, %v185_v36  ;;  %v196_v41 = vadd.f32 %v565_v18, %v195_v37 }
  0xbf   :  { %457 = vst [vmem:[%s635_s4 + $0x8] sm:$0xff] %v418_v34  }
  0xc0   :  { %459 = vst [vmem:[%s635_s4 + $0x18] sm:$0xff] %v428_v35   ;;  %v241_v42 = vadd.f32 %v401_v32, %v186_v40  ;;  %v245_v43 = vadd.f32 %v409_v33, %v196_v41 }
  0xc2   :  { %v257_v46 = vmax.f32 %v241_v42, 0.0  ;;  %v261_v47 = vmax.f32 %v245_v43, 0.0 }
  0xc4   :  { %v438_v48 = vpack.c.bf16 %v257_v46, %v256_v44  ;;  %v448_v49 = vpack.c.bf16 %v261_v47, %v260_v45 }
  0xc6   :  { %461 = vst [vmem:[%s635_s4 + $0x28] sm:$0xff] %v438_v48  }
  0xc7   :  { %463 = vst [vmem:[%s635_s4 + $0x38] sm:$0xff] %v448_v49  }

// kernel: _lambda_.11
= control target key start
LH: loop header
LB: loop body
LE: loop exit
PB: predicated region body
PF: predicated region fallthrough
CT: control target
= control target key end

     0   :  { %s494_s1 = inlined_call_operand.vmem [shape: bf16[128,128], index: 1, kind: input, shape index: {}]   ;;  %s495_s2 = inlined_call_operand.vmem [shape: f32[1,128], index: 2, kind: input, shape index: {}]   ;;  %s496_s0 = inlined_call_operand.vmem [shape: bf16[128,128], index: 0, kind: input, shape index: {}]   ;;  %s497_s3 = inlined_call_operand.vmem [shape: bf16[128,128], index: 3, kind: output, shape index: {}]  }
   0x1   :  { %v326_v0 = vld [vmem:[%s494_s1 + $0x38] sm:$0xff]  ;;  %v325_v1 = vld [vmem:[%s494_s1 + $0x30] sm:$0xff]  ;;  %v324_v2 = vld [vmem:[%s494_s1 + $0x28] sm:$0xff] }
   0x2   :  { %146 = vmatpush.bf16.msra.mxu0 %v326_v0  ;;  %374 = vmatpush.bf16.msra.mxu1 %v326_v0  ;;  %v323_v3 = vld [vmem:[%s494_s1 + $0x20] sm:$0xff]  ;;  %v322_v4 = vld [vmem:[%s494_s1 + $0x18] sm:$0xff]  ;;  %v321_v5 = vld [vmem:[%s494_s1 + $0x10] sm:$0xff] }
   0x3   :  { %375 = vmatpush.bf16.msra.mxu2 %v326_v0  ;;  %376 = vmatpush.bf16.msra.mxu3 %v326_v0  ;;  %v320_v6 = vld [vmem:[%s494_s1 + $0x8] sm:$0xff]  ;;  %v319_v7 = vld [vmem:[%s494_s1] sm:$0xff]  ;;  %v313_v9 = vld [vmem:[%s496_s0 + $0x10] sm:$0xff] }
   0x4   :  { %v311_v8 = vld [vmem:[%s496_s0] sm:$0xff]  ;;  %v317_v11 = vld [vmem:[%s496_s0 + $0x30] sm:$0xff]  ;;  %v312_v12 = vld [vmem:[%s496_s0 + $0x8] sm:$0xff] }
   0x5   :  { %v315_v10 = vld [vmem:[%s496_s0 + $0x20] sm:$0xff]  ;;  %v314_v13 = vld [vmem:[%s496_s0 + $0x18] sm:$0xff]  ;;  %v316_v14 = vld [vmem:[%s496_s0 + $0x28] sm:$0xff] }
   0x6   :  { %147 = vmatpush.bf16.msra.mxu0 %v325_v1  ;;  %377 = vmatpush.bf16.msra.mxu1 %v325_v1  ;;  %v318_v15 = vld [vmem:[%s496_s0 + $0x38] sm:$0xff]  ;;  %v398_v18 = vld [vmem:[%s495_s2] ss:$0 sm:$0xff] }
   0x7   :  { %378 = vmatpush.bf16.msra.mxu2 %v325_v1  ;;  %379 = vmatpush.bf16.msra.mxu3 %v325_v1 }
   0xa   :  { %148 = vmatpush.bf16.msra.mxu0 %v324_v2  ;;  %380 = vmatpush.bf16.msra.mxu1 %v324_v2 }
   0xb   :  { %381 = vmatpush.bf16.msra.mxu2 %v324_v2  ;;  %382 = vmatpush.bf16.msra.mxu3 %v324_v2 }
   0xe   :  { %149 = vmatpush.bf16.msra.mxu0 %v323_v3  ;;  %383 = vmatpush.bf16.msra.mxu1 %v323_v3 }
   0xf   :  { %384 = vmatpush.bf16.msra.mxu2 %v323_v3  ;;  %385 = vmatpush.bf16.msra.mxu3 %v323_v3 }
  0x12   :  { %150 = vmatpush.bf16.msra.mxu0 %v322_v4  ;;  %386 = vmatpush.bf16.msra.mxu1 %v322_v4 }
  0x13   :  { %387 = vmatpush.bf16.msra.mxu2 %v322_v4  ;;  %388 = vmatpush.bf16.msra.mxu3 %v322_v4 }
  0x16   :  { %151 = vmatpush.bf16.msra.mxu0 %v321_v5  ;;  %389 = vmatpush.bf16.msra.mxu1 %v321_v5 }
  0x17   :  { %390 = vmatpush.bf16.msra.mxu2 %v321_v5  ;;  %391 = vmatpush.bf16.msra.mxu3 %v321_v5 }
  0x1a   :  { %152 = vmatpush.bf16.msra.mxu0 %v320_v6  ;;  %392 = vmatpush.bf16.msra.mxu1 %v320_v6 }
  0x1b   :  { %393 = vmatpush.bf16.msra.mxu2 %v320_v6  ;;  %394 = vmatpush.bf16.msra.mxu3 %v320_v6 }
  0x1e   :  { %153 = vmatpush.bf16.msra.mxu0 %v319_v7  ;;  %395 = vmatpush.bf16.msra.mxu1 %v319_v7 }
  0x1f   :  { %396 = vmatpush.bf16.msra.mxu2 %v319_v7  ;;  %397 = vmatpush.bf16.msra.mxu3 %v319_v7 }
  0x21   :  { %154 = vmatmul.bf16.vlgmr.msra.gmra.mxu0 %v311_v8  ;;  %164 = vmatmul.bf16.vlgmr.msra.gmra.mxu1 %v313_v9 }
  0x22   :  { %174 = vmatmul.bf16.vlgmr.msra.gmra.mxu2 %v315_v10  ;;  %184 = vmatmul.bf16.vlgmr.msra.gmra.mxu3 %v317_v11 }
  0x31   :  { %159 = vmatmul.bf16.gmra.mxu0 %v312_v12  ;;  %169 = vmatmul.bf16.gmra.mxu1 %v314_v13 }
  0x32   :  { %179 = vmatmul.bf16.gmra.mxu2 %v316_v14  ;;  %189 = vmatmul.bf16.gmra.mxu3 %v318_v15 }
  0x9e   :  { %v155_v16 = vpop.f32.mrf.mxu0  ;;  %v165_v17 = vpop.f32.mrf.mxu1 }
  0x9f   :  { %v156_v19 = vadd.f32 %v398_v18, %v155_v16  ;;  %v166_v20 = vadd.f32 %v398_v18, %v165_v17 }
  0xa1   :  { %v195_v27 = vmax.f32 %v156_v19, 0.0  ;;  %v199_v28 = vmax.f32 %v166_v20, 0.0 }
  0xa5   :  { %v175_v21 = vpop.f32.mrf.mxu2  ;;  %v185_v22 = vpop.f32.mrf.mxu3 }
  0xa6   :  { %v157_v23 = vpop.f32.mrf.mxu0  ;;  %v167_v24 = vpop.f32.mrf.mxu1  ;;  %v176_v33 = vadd.f32 %v398_v18, %v175_v21  ;;  %v186_v34 = vadd.f32 %v398_v18, %v185_v22 }
  0xa7   :  { %v158_v25 = vadd.f32 %v398_v18, %v157_v23  ;;  %v168_v26 = vadd.f32 %v398_v18, %v167_v24 }
  0xa8   :  { %v203_v41 = vmax.f32 %v176_v33, 0.0  ;;  %v207_v42 = vmax.f32 %v186_v34, 0.0 }
  0xa9   :  { %v196_v29 = vmax.f32 %v158_v25, 0.0  ;;  %v200_v30 = vmax.f32 %v168_v26, 0.0 }
  0xab   :  { %v330_v31 = vpack.c.bf16 %v196_v29, %v195_v27  ;;  %v340_v32 = vpack.c.bf16 %v200_v30, %v199_v28 }
  0xad   :  { %331 = vst [vmem:[%s497_s3] sm:$0xff] %v330_v31   ;;  %v177_v35 = vpop.f32.mrf.mxu2  ;;  %v187_v36 = vpop.f32.mrf.mxu3 }
  0xae   :  { %368 = vst [vmem:[%s497_s3 + $0x10] sm:$0xff] %v340_v32   ;;  %v178_v37 = vadd.f32 %v398_v18, %v177_v35  ;;  %v188_v38 = vadd.f32 %v398_v18, %v187_v36  ;;  %v160_v39 = vpop.f32.mrf.mxu0  ;;  %v170_v40 = vpop.f32.mrf.mxu1 }
  0xaf   :  { %v161_v47 = vadd.f32 %v398_v18, %v160_v39  ;;  %v171_v48 = vadd.f32 %v398_v18, %v170_v40 }
  0xb0   :  { %v204_v43 = vmax.f32 %v178_v37, 0.0  ;;  %v208_v44 = vmax.f32 %v188_v38, 0.0 }
  0xb1   :  { %v197_v55 = vmax.f32 %v161_v47, 0.0  ;;  %v201_v56 = vmax.f32 %v171_v48, 0.0 }
  0xb2   :  { %v350_v45 = vpack.c.bf16 %v204_v43, %v203_v41  ;;  %v360_v46 = vpack.c.bf16 %v208_v44, %v207_v42 }
  0xb4   :  { %370 = vst [vmem:[%s497_s3 + $0x20] sm:$0xff] %v350_v45  }
  0xb5   :  { %372 = vst [vmem:[%s497_s3 + $0x30] sm:$0xff] %v360_v46   ;;  %v180_v49 = vpop.f32.mrf.mxu2  ;;  %v190_v50 = vpop.f32.mrf.mxu3 }
  0xb6   :  { %v162_v51 = vpop.f32.mrf.mxu0  ;;  %v172_v52 = vpop.f32.mrf.mxu1  ;;  %v181_v61 = vadd.f32 %v398_v18, %v180_v49  ;;  %v191_v62 = vadd.f32 %v398_v18, %v190_v50 }
  0xb7   :  { %v163_v53 = vadd.f32 %v398_v18, %v162_v51  ;;  %v173_v54 = vadd.f32 %v398_v18, %v172_v52 }
  0xb8   :  { %v205_v3 = vmax.f32 %v181_v61, 0.0  ;;  %v209_v4 = vmax.f32 %v191_v62, 0.0 }
  0xb9   :  { %v198_v57 = vmax.f32 %v163_v53, 0.0  ;;  %v202_v58 = vmax.f32 %v173_v54, 0.0 }
  0xbb   :  { %v335_v59 = vpack.c.bf16 %v198_v57, %v197_v55  ;;  %v345_v60 = vpack.c.bf16 %v202_v58, %v201_v56 }
  0xbd   :  { %367 = vst [vmem:[%s497_s3 + $0x8] sm:$0xff] %v335_v59   ;;  %v182_v63 = vpop.f32.mrf.mxu2  ;;  %v192_v0 = vpop.f32.mrf.mxu3 }
  0xbe   :  { %369 = vst [vmem:[%s497_s3 + $0x18] sm:$0xff] %v345_v60   ;;  %v183_v1 = vadd.f32 %v398_v18, %v182_v63  ;;  %v193_v2 = vadd.f32 %v398_v18, %v192_v0 }
  0xc0   :  { %v206_v5 = vmax.f32 %v183_v1, 0.0  ;;  %v210_v6 = vmax.f32 %v193_v2, 0.0 }
  0xc2   :  { %v355_v7 = vpack.c.bf16 %v206_v5, %v205_v3  ;;  %v365_v8 = vpack.c.bf16 %v210_v6, %v209_v4 }
  0xc4   :  { %371 = vst [vmem:[%s497_s3 + $0x28] sm:$0xff] %v355_v7  }
  0xc5   :  { %373 = vst [vmem:[%s497_s3 + $0x38] sm:$0xff] %v365_v8  }

// kernel: _lambda_.8
= control target key start
LH: loop header
LB: loop body
LE: loop exit
PB: predicated region body
PF: predicated region fallthrough
CT: control target
= control target key end

     0   :  { %s3124_s1 = inlined_call_operand.vmem [shape: bf16[1152,128], index: 1, kind: input, shape index: {}]   ;;  %s3125_s2 = inlined_call_operand.vmem [shape: f32[1,128], index: 2, kind: input, shape index: {}]   ;;  %s3126_s0 = inlined_call_operand.vmem [shape: bf16[128,1152], index: 0, kind: input, shape index: {}]   ;;  %s3127_s3 = inlined_call_operand.vmem [shape: bf16[128,128], index: 3, kind: output, shape index: {}]  }
   0x1   :  { %v2190_v0 = vld [vmem:[%s3124_s1 + $0x38] sm:$0xff]  ;;  %v2189_v1 = vld [vmem:[%s3124_s1 + $0x30] sm:$0xff]  ;;  %v2188_v2 = vld [vmem:[%s3124_s1 + $0x28] sm:$0xff] }
   0x2   :  { %2302 = vmatpush.bf16.msra.mxu1 %v2190_v0  ;;  %2303 = vmatpush.bf16.msra.mxu2 %v2190_v0  ;;  %v2187_v3 = vld [vmem:[%s3124_s1 + $0x20] sm:$0xff]  ;;  %v2186_v4 = vld [vmem:[%s3124_s1 + $0x18] sm:$0xff]  ;;  %v2185_v5 = vld [vmem:[%s3124_s1 + $0x10] sm:$0xff] }
   0x3   :  { %2304 = vmatpush.bf16.msra.mxu3 %v2190_v0  ;;  %1042 = vmatpush.bf16.msra.mxu0 %v2190_v0  ;;  %v2184_v6 = vld [vmem:[%s3124_s1 + $0x8] sm:$0xff]  ;;  %v2183_v7 = vld [vmem:[%s3124_s1] sm:$0xff]  ;;  %v1609_v8 = vld [vmem:[%s3126_s0 + $0x90] sm:$0xf] }
   0x4   :  { %v2133_v9 = vld [vmem:[%s3126_s0 + $0xb0] sm:$0xf0]  ;;  %v1681_v10 = vld [vmem:[%s3126_s0 + $0x120] sm:$0xf]  ;;  %v2151_v11 = vld [vmem:[%s3126_s0 + $0x140] sm:$0xf0] }
   0x5   :  { %v1753_v12 = vld [vmem:[%s3126_s0 + $0x1b0] sm:$0xf]  ;;  %v2169_v13 = vld [vmem:[%s3126_s0 + $0x1d0] sm:$0xf0]  ;;  %v1537_v14 = vld [vmem:[%s3126_s0] sm:$0xf]  ;;  %v1610_v18 = vor.u32 %v2133_v9, %v1609_v8  ;;  %v1682_v19 = vor.u32 %v2151_v11, %v1681_v10 }
   0x6   :  { %2305 = vmatpush.bf16.msra.mxu1 %v2189_v1  ;;  %2306 = vmatpush.bf16.msra.mxu2 %v2189_v1  ;;  %v2115_v15 = vld [vmem:[%s3126_s0 + $0x20] sm:$0xf0]  ;;  %v2206_v16 = vld [vmem:[%s3124_s1 + $0xb8] sm:$0xff]  ;;  %v1754_v20 = vor.u32 %v2169_v13, %v1753_v12  ;;  %v2205_v24 = vld [vmem:[%s3124_s1 + $0xb0] sm:$0xff] }
   0x7   :  { %2307 = vmatpush.bf16.msra.mxu3 %v2189_v1  ;;  %1043 = vmatpush.bf16.msra.mxu0 %v2189_v1  ;;  %v2198_v17 = vld [vmem:[%s3124_s1 + $0x78] sm:$0xff]  ;;  %v1538_v21 = vor.u32 %v2115_v15, %v1537_v14  ;;  %v2197_v25 = vld [vmem:[%s3124_s1 + $0x70] sm:$0xff]  ;;  %v2204_v28 = vld [vmem:[%s3124_s1 + $0xa8] sm:$0xff] }
   0x8   :  { %v2214_v22 = vld [vmem:[%s3124_s1 + $0xf8] sm:$0xff]  ;;  %v2213_v26 = vld [vmem:[%s3124_s1 + $0xf0] sm:$0xff]  ;;  %v2196_v29 = vld [vmem:[%s3124_s1 + $0x68] sm:$0xff] }
   0x9   :  { %v2222_v23 = vld [vmem:[%s3124_s1 + $0x138] sm:$0xff]  ;;  %v2221_v27 = vld [vmem:[%s3124_s1 + $0x130] sm:$0xff]  ;;  %v2212_v30 = vld [vmem:[%s3124_s1 + $0xe8] sm:$0xff] }
   0xa   :  { %2308 = vmatpush.bf16.msra.mxu1 %v2188_v2  ;;  %2309 = vmatpush.bf16.msra.mxu2 %v2188_v2  ;;  %v2220_v31 = vld [vmem:[%s3124_s1 + $0x128] sm:$0xff]  ;;  %v2203_v32 = vld [vmem:[%s3124_s1 + $0xa0] sm:$0xff]  ;;  %v1645_v36 = vld [vmem:[%s3126_s0 + $0xd8] sm:$0xf] }
   0xb   :  { %2310 = vmatpush.bf16.msra.mxu3 %v2188_v2  ;;  %1044 = vmatpush.bf16.msra.mxu0 %v2188_v2  ;;  %v2195_v33 = vld [vmem:[%s3124_s1 + $0x60] sm:$0xff]  ;;  %v2142_v37 = vld [vmem:[%s3126_s0 + $0xf8] sm:$0xf0]  ;;  %v1717_v38 = vld [vmem:[%s3126_s0 + $0x168] sm:$0xf] }
   0xc   :  { %v2211_v34 = vld [vmem:[%s3124_s1 + $0xe0] sm:$0xff]  ;;  %v2160_v39 = vld [vmem:[%s3126_s0 + $0x188] sm:$0xf0]  ;;  %v1789_v40 = vld [vmem:[%s3126_s0 + $0x1f8] sm:$0xf]  ;;  %v1646_v46 = vor.u32 %v2142_v37, %v1645_v36 }
   0xd   :  { %v2219_v35 = vld [vmem:[%s3124_s1 + $0x120] sm:$0xff]  ;;  %v2178_v41 = vld [vmem:[%s3126_s0 + $0x218] sm:$0xf0]  ;;  %v1573_v42 = vld [vmem:[%s3126_s0 + $0x48] sm:$0xf]  ;;  %v1718_v47 = vor.u32 %v2160_v39, %v1717_v38 }
   0xe   :  { %2311 = vmatpush.bf16.msra.mxu1 %v2187_v3  ;;  %2312 = vmatpush.bf16.msra.mxu2 %v2187_v3  ;;  %v2124_v43 = vld [vmem:[%s3126_s0 + $0x68] sm:$0xf0]  ;;  %v2202_v44 = vld [vmem:[%s3124_s1 + $0x98] sm:$0xff]  ;;  %v1790_v48 = vor.u32 %v2178_v41, %v1789_v40  ;;  %v2201_v52 = vld [vmem:[%s3124_s1 + $0x90] sm:$0xff] }
   0xf   :  { %2313 = vmatpush.bf16.msra.mxu3 %v2187_v3  ;;  %1045 = vmatpush.bf16.msra.mxu0 %v2187_v3  ;;  %v2194_v45 = vld [vmem:[%s3124_s1 + $0x58] sm:$0xff]  ;;  %v1574_v49 = vor.u32 %v2124_v43, %v1573_v42  ;;  %v2193_v53 = vld [vmem:[%s3124_s1 + $0x50] sm:$0xff]  ;;  %v2200_v56 = vld [vmem:[%s3124_s1 + $0x88] sm:$0xff] }
  0x10   :  { %v2210_v50 = vld [vmem:[%s3124_s1 + $0xd8] sm:$0xff]  ;;  %v2209_v54 = vld [vmem:[%s3124_s1 + $0xd0] sm:$0xff]  ;;  %v2192_v57 = vld [vmem:[%s3124_s1 + $0x48] sm:$0xff] }
  0x11   :  { %v2218_v51 = vld [vmem:[%s3124_s1 + $0x118] sm:$0xff]  ;;  %v2217_v55 = vld [vmem:[%s3124_s1 + $0x110] sm:$0xff]  ;;  %v2208_v58 = vld [vmem:[%s3124_s1 + $0xc8] sm:$0xff] }
  0x12   :  { %2314 = vmatpush.bf16.msra.mxu1 %v2186_v4  ;;  %2315 = vmatpush.bf16.msra.mxu2 %v2186_v4  ;;  %v2216_v59 = vld [vmem:[%s3124_s1 + $0x108] sm:$0xff]  ;;  %v2199_v60 = vld [vmem:[%s3124_s1 + $0x80] sm:$0xff]  ;;  %v2238_v2 = vld [vmem:[%s3124_s1 + $0x1b8] sm:$0xff] }
  0x13   :  { %2316 = vmatpush.bf16.msra.mxu3 %v2186_v4  ;;  %1046 = vmatpush.bf16.msra.mxu0 %v2186_v4  ;;  %v2191_v61 = vld [vmem:[%s3124_s1 + $0x40] sm:$0xff]  ;;  %v1539_v1 = vld [vmem:[%s3126_s0 + $0x24] sm:$0xf0]  ;;  %v2230_v3 = vld [vmem:[%s3124_s1 + $0x178] sm:$0xff] }
  0x14   :  { %v2111_v62 = vld [vmem:[%s3126_s0 + $0x4] sm:$0xf]  ;;  %v1545_v4 = vld [vmem:[%s3126_s0 + $0x8] sm:$0xf]  ;;  %v1553_v8 = vld [vmem:[%s3126_s0 + $0x10] sm:$0xf] }
  0x15   :  { %v2207_v63 = vld [vmem:[%s3124_s1 + $0xc0] sm:$0xff]  ;;  %v2117_v9 = vld [vmem:[%s3126_s0 + $0x30] sm:$0xf0]  ;;  %v2246_v10 = vld [vmem:[%s3124_s1 + $0x1f8] sm:$0xff]  ;;  %v1542_v12 = vor.u32 %v2111_v62, %v1539_v1 }
  0x16   :  { %2317 = vmatpush.bf16.msra.mxu1 %v2185_v5  ;;  %2318 = vmatpush.bf16.msra.mxu2 %v2185_v5  ;;  %v2215_v0 = vld [vmem:[%s3124_s1 + $0x100] sm:$0xff]  ;;  %v2254_v11 = vld [vmem:[%s3124_s1 + $0x238] sm:$0xff]  ;;  %v1554_v15 = vor.u32 %v2117_v9, %v1553_v8  ;;  %v2129_v40 = vld [vmem:[%s3126_s0 + $0x94] sm:$0xf] }
  0x17   :  { %2319 = vmatpush.bf16.msra.mxu3 %v2185_v5  ;;  %1047 = vmatpush.bf16.msra.mxu0 %v2185_v5  ;;  %v2116_v5 = vld [vmem:[%s3126_s0 + $0x28] sm:$0xf0]  ;;  %v2235_v36 = vld [vmem:[%s3124_s1 + $0x1a0] sm:$0xff]  ;;  %v1611_v41 = vld [vmem:[%s3126_s0 + $0xb4] sm:$0xf0] }
  0x18   :  { %v1546_v13 = vor.u32 %v2116_v5, %v1545_v4  ;;  %v2243_v37 = vld [vmem:[%s3124_s1 + $0x1e0] sm:$0xff]  ;;  %v1617_v42 = vld [vmem:[%s3126_s0 + $0x98] sm:$0xf]  ;;  %v2134_v43 = vld [vmem:[%s3126_s0 + $0xb8] sm:$0xf0] }
  0x19   :  { %v2227_v38 = vld [vmem:[%s3124_s1 + $0x160] sm:$0xff]  ;;  %v1661_v62 = vld [vmem:[%s3126_s0 + $0xe8] sm:$0xf]  ;;  %v2233_v4 = vld [vmem:[%s3124_s1 + $0x190] sm:$0xff] }
  0x1a   :  { %2320 = vmatpush.bf16.msra.mxu1 %v2184_v6  ;;  %2321 = vmatpush.bf16.msra.mxu2 %v2184_v6  ;;  %v2251_v39 = vld [vmem:[%s3124_s1 + $0x220] sm:$0xff]  ;;  %v2241_v5 = vld [vmem:[%s3124_s1 + $0x1d0] sm:$0xff]  ;;  %v1683_v9 = vld [vmem:[%s3126_s0 + $0x144] sm:$0xf0] }
  0x1b   :  { %2322 = vmatpush.bf16.msra.mxu3 %v2184_v6  ;;  %1048 = vmatpush.bf16.msra.mxu0 %v2184_v6  ;;  %v2112_v6 = vld [vmem:[%s3126_s0 + $0xc] sm:$0xf]  ;;  %v2147_v8 = vld [vmem:[%s3126_s0 + $0x124] sm:$0xf] }
  0x1e   :  { %2323 = vmatpush.bf16.msra.mxu1 %v2183_v7  ;;  %2324 = vmatpush.bf16.msra.mxu2 %v2183_v7 }
  0x1f   :  { %2325 = vmatpush.bf16.msra.mxu3 %v2183_v7  ;;  %1049 = vmatpush.bf16.msra.mxu0 %v2183_v7  ;;  %v1547_v7 = vld [vmem:[%s3126_s0 + $0x2c] sm:$0xf0] }
  0x20   :  { %v1550_v14 = vor.u32 %v2112_v6, %v1547_v7  ;;  %v2225_v6 = vld [vmem:[%s3124_s1 + $0x150] sm:$0xff] }
  0x21   :  { %1060 = vmatmul.bf16.vlgmr.msra.gmra.mxu1 %v1610_v18  ;;  %1070 = vmatmul.bf16.vlgmr.msra.gmra.mxu2 %v1682_v19  ;;  %v2245_v18 = vld [vmem:[%s3124_s1 + $0x1f0] sm:$0xff] }
  0x22   :  { %1140 = vmatpush.bf16.msrb.mxu2 %v2206_v16  ;;  %1091 = vmatpush.bf16.msrb.mxu1 %v2198_v17  ;;  %v2237_v16 = vld [vmem:[%s3124_s1 + $0x1b0] sm:$0xff] }
  0x23   :  { %1080 = vmatmul.bf16.vlgmr.msra.gmra.mxu3 %v1754_v20  ;;  %1050 = vmatmul.bf16.vlgmr.msra.gmra.mxu0 %v1538_v21  ;;  %v2229_v17 = vld [vmem:[%s3124_s1 + $0x170] sm:$0xff]  ;;  %v2236_v20 = vld [vmem:[%s3124_s1 + $0x1a8] sm:$0xff] }
  0x24   :  { %1189 = vmatpush.bf16.msrb.mxu3 %v2214_v22  ;;  %1238 = vmatpush.bf16.msrb.mxu0 %v2222_v23  ;;  %v2253_v19 = vld [vmem:[%s3124_s1 + $0x230] sm:$0xff]  ;;  %v2228_v21 = vld [vmem:[%s3124_s1 + $0x168] sm:$0xff] }
  0x25   :  { %v2244_v22 = vld [vmem:[%s3124_s1 + $0x1e8] sm:$0xff]  ;;  %v2249_v7 = vld [vmem:[%s3124_s1 + $0x210] sm:$0xff] }
  0x26   :  { %1141 = vmatpush.bf16.msrb.mxu2 %v2205_v24  ;;  %1092 = vmatpush.bf16.msrb.mxu1 %v2197_v25  ;;  %v2252_v23 = vld [vmem:[%s3124_s1 + $0x228] sm:$0xff]  ;;  %v1575_v25 = vld [vmem:[%s3126_s0 + $0x6c] sm:$0xf0] }
  0x27   :  { %v2120_v24 = vld [vmem:[%s3126_s0 + $0x4c] sm:$0xf] }
  0x28   :  { %1190 = vmatpush.bf16.msrb.mxu3 %v2213_v26  ;;  %1239 = vmatpush.bf16.msrb.mxu0 %v2221_v27  ;;  %v1581_v26 = vld [vmem:[%s3126_s0 + $0x50] sm:$0xf]  ;;  %v2125_v27 = vld [vmem:[%s3126_s0 + $0x70] sm:$0xf0] }
  0x2a   :  { %1142 = vmatpush.bf16.msrb.mxu2 %v2204_v28  ;;  %1093 = vmatpush.bf16.msrb.mxu1 %v2196_v29  ;;  %v2121_v28 = vld [vmem:[%s3126_s0 + $0x54] sm:$0xf]  ;;  %v1583_v29 = vld [vmem:[%s3126_s0 + $0x74] sm:$0xf0] }
  0x2c   :  { %1191 = vmatpush.bf16.msrb.mxu3 %v2212_v30  ;;  %1240 = vmatpush.bf16.msrb.mxu0 %v2220_v31  ;;  %v1589_v30 = vld [vmem:[%s3126_s0 + $0x58] sm:$0xf]  ;;  %v2126_v31 = vld [vmem:[%s3126_s0 + $0x78] sm:$0xf0] }
  0x2e   :  { %1143 = vmatpush.bf16.msrb.mxu2 %v2203_v32  ;;  %1094 = vmatpush.bf16.msrb.mxu1 %v2195_v33  ;;  %v1578_v32 = vor.u32 %v2120_v24, %v1575_v25  ;;  %v1582_v33 = vor.u32 %v2125_v27, %v1581_v26  ;;  %v2156_v24 = vld [vmem:[%s3126_s0 + $0x16c] sm:$0xf]  ;;  %v1719_v25 = vld [vmem:[%s3126_s0 + $0x18c] sm:$0xf0]  ;;  %v2161_v27 = vld [vmem:[%s3126_s0 + $0x190] sm:$0xf0] }
  0x2f   :  { %v1725_v26 = vld [vmem:[%s3126_s0 + $0x170] sm:$0xf] }
  0x30   :  { %1192 = vmatpush.bf16.msrb.mxu3 %v2211_v34  ;;  %1241 = vmatpush.bf16.msrb.mxu0 %v2219_v35  ;;  %v1586_v34 = vor.u32 %v2121_v28, %v1583_v29  ;;  %v1590_v35 = vor.u32 %v2126_v31, %v1589_v30  ;;  %v2157_v28 = vld [vmem:[%s3126_s0 + $0x174] sm:$0xf]  ;;  %v1727_v29 = vld [vmem:[%s3126_s0 + $0x194] sm:$0xf0]  ;;  %v2162_v31 = vld [vmem:[%s3126_s0 + $0x198] sm:$0xf0] }
  0x31   :  { %1065 = vmatmul.bf16.gmra.mxu1 %v1646_v46  ;;  %1075 = vmatmul.bf16.gmra.mxu2 %v1718_v47  ;;  %v1625_v46 = vld [vmem:[%s3126_s0 + $0xa0] sm:$0xf]  ;;  %v2135_v47 = vld [vmem:[%s3126_s0 + $0xc0] sm:$0xf0]  ;;  %v1733_v30 = vld [vmem:[%s3126_s0 + $0x178] sm:$0xf] }
  0x32   :  { %1144 = vmatpush.bf16.msrb.mxu2 %v2202_v44  ;;  %1095 = vmatpush.bf16.msrb.mxu1 %v2194_v45  ;;  %v2130_v44 = vld [vmem:[%s3126_s0 + $0x9c] sm:$0xf]  ;;  %v1619_v45 = vld [vmem:[%s3126_s0 + $0xbc] sm:$0xf0] }
  0x33   :  { %1085 = vmatmul.bf16.gmra.mxu3 %v1790_v48  ;;  %1055 = vmatmul.bf16.gmra.mxu0 %v1574_v49  ;;  %v1614_v48 = vor.u32 %v2129_v40, %v1611_v41  ;;  %v1618_v49 = vor.u32 %v2134_v43, %v1617_v42  ;;  %v2165_v40 = vld [vmem:[%s3126_s0 + $0x1b4] sm:$0xf]  ;;  %v1755_v41 = vld [vmem:[%s3126_s0 + $0x1d4] sm:$0xf0]  ;;  %v2170_v43 = vld [vmem:[%s3126_s0 + $0x1d8] sm:$0xf0] }
  0x34   :  { %1193 = vmatpush.bf16.msrb.mxu3 %v2210_v50  ;;  %1242 = vmatpush.bf16.msrb.mxu0 %v2218_v51  ;;  %v1622_v50 = vor.u32 %v2130_v44, %v1619_v45  ;;  %v1626_v51 = vor.u32 %v2135_v47, %v1625_v46  ;;  %v1761_v42 = vld [vmem:[%s3126_s0 + $0x1b8] sm:$0xf]  ;;  %v2166_v44 = vld [vmem:[%s3126_s0 + $0x1bc] sm:$0xf]  ;;  %v1763_v45 = vld [vmem:[%s3126_s0 + $0x1dc] sm:$0xf0] }
  0x35   :  { %v1769_v46 = vld [vmem:[%s3126_s0 + $0x1c0] sm:$0xf]  ;;  %v2171_v47 = vld [vmem:[%s3126_s0 + $0x1e0] sm:$0xf0] }
  0x36   :  { %1145 = vmatpush.bf16.msrb.mxu2 %v2201_v52  ;;  %1096 = vmatpush.bf16.msrb.mxu1 %v2193_v53  ;;  %v2234_v52 = vld [vmem:[%s3124_s1 + $0x198] sm:$0xff] }
  0x37   :  { %v2242_v53 = vld [vmem:[%s3124_s1 + $0x1d8] sm:$0xff] }
  0x38   :  { %1194 = vmatpush.bf16.msrb.mxu3 %v2209_v54  ;;  %1243 = vmatpush.bf16.msrb.mxu0 %v2217_v55  ;;  %v2226_v54 = vld [vmem:[%s3124_s1 + $0x158] sm:$0xff] }
  0x39   :  { %v2250_v55 = vld [vmem:[%s3124_s1 + $0x218] sm:$0xff] }
  0x3a   :  { %1146 = vmatpush.bf16.msrb.mxu2 %v2200_v56  ;;  %1097 = vmatpush.bf16.msrb.mxu1 %v2192_v57  ;;  %v2138_v56 = vld [vmem:[%s3126_s0 + $0xdc] sm:$0xf]  ;;  %v1647_v57 = vld [vmem:[%s3126_s0 + $0xfc] sm:$0xf0] }
  0x3c   :  { %1195 = vmatpush.bf16.msrb.mxu3 %v2208_v58  ;;  %1244 = vmatpush.bf16.msrb.mxu0 %v2216_v59  ;;  %v1653_v58 = vld [vmem:[%s3126_s0 + $0xe0] sm:$0xf]  ;;  %v2143_v59 = vld [vmem:[%s3126_s0 + $0x100] sm:$0xf0] }
  0x3d   :  { %v1654_v1 = vor.u32 %v2143_v59, %v1653_v58 }
  0x3e   :  { %1147 = vmatpush.bf16.msrb.mxu2 %v2199_v60  ;;  %1098 = vmatpush.bf16.msrb.mxu1 %v2191_v61  ;;  %v2139_v60 = vld [vmem:[%s3126_s0 + $0xe4] sm:$0xf]  ;;  %v1655_v61 = vld [vmem:[%s3126_s0 + $0x104] sm:$0xf0] }
  0x40   :  { %1196 = vmatpush.bf16.msrb.mxu3 %v2207_v63  ;;  %1245 = vmatpush.bf16.msrb.mxu0 %v2215_v0  ;;  %v2144_v63 = vld [vmem:[%s3126_s0 + $0x108] sm:$0xf0]  ;;  %v1650_v0 = vor.u32 %v2138_v56, %v1647_v57 }
  0x41   :  { %1099 = vmatmul.bf16.vlgmr.msrb.gmra.mxu1 %v1542_v12  ;;  %1148 = vmatmul.bf16.vlgmr.msrb.gmra.mxu2 %v1546_v13  ;;  %v2148_v12 = vld [vmem:[%s3126_s0 + $0x12c] sm:$0xf]  ;;  %v1691_v13 = vld [vmem:[%s3126_s0 + $0x14c] sm:$0xf0] }
  0x42   :  { %1336 = vmatpush.bf16.msra.mxu2 %v2238_v2  ;;  %1287 = vmatpush.bf16.msra.mxu1 %v2230_v3  ;;  %v1658_v2 = vor.u32 %v2139_v60, %v1655_v61  ;;  %v1662_v3 = vor.u32 %v2144_v63, %v1661_v62  ;;  %v2174_v61 = vld [vmem:[%s3126_s0 + $0x1fc] sm:$0xf]  ;;  %v1791_v62 = vld [vmem:[%s3126_s0 + $0x21c] sm:$0xf0] }
  0x43   :  { %1197 = vmatmul.bf16.vlgmr.msrb.gmra.mxu3 %v1550_v14  ;;  %1246 = vmatmul.bf16.vlgmr.msrb.gmra.mxu0 %v1554_v15  ;;  %v1697_v14 = vld [vmem:[%s3126_s0 + $0x130] sm:$0xf]  ;;  %v2153_v15 = vld [vmem:[%s3126_s0 + $0x150] sm:$0xf0]  ;;  %v1797_v63 = vld [vmem:[%s3126_s0 + $0x200] sm:$0xf] }
  0x44   :  { %1385 = vmatpush.bf16.msra.mxu3 %v2246_v10  ;;  %1434 = vmatpush.bf16.msra.mxu0 %v2254_v11  ;;  %v1689_v10 = vld [vmem:[%s3126_s0 + $0x128] sm:$0xf]  ;;  %v2152_v11 = vld [vmem:[%s3126_s0 + $0x148] sm:$0xf0] }
  0x46   :  { %1337 = vmatpush.bf16.msra.mxu2 %v2237_v16  ;;  %1288 = vmatpush.bf16.msra.mxu1 %v2229_v17  ;;  %v1686_v16 = vor.u32 %v2147_v8, %v1683_v9  ;;  %v1690_v17 = vor.u32 %v2152_v11, %v1689_v10  ;;  %v1794_v8 = vor.u32 %v2174_v61, %v1791_v62  ;;  %v1605_v61 = vld [vmem:[%s3126_s0 + $0x68] sm:$0xf]  ;;  %v2128_v62 = vld [vmem:[%s3126_s0 + $0x88] sm:$0xf0] }
  0x48   :  { %1386 = vmatpush.bf16.msra.mxu3 %v2245_v18  ;;  %1435 = vmatpush.bf16.msra.mxu0 %v2253_v19  ;;  %v1694_v18 = vor.u32 %v2148_v12, %v1691_v13  ;;  %v1698_v19 = vor.u32 %v2153_v15, %v1697_v14 }
  0x4a   :  { %1338 = vmatpush.bf16.msra.mxu2 %v2236_v20  ;;  %1289 = vmatpush.bf16.msra.mxu1 %v2228_v21  ;;  %v2232_v20 = vld [vmem:[%s3124_s1 + $0x188] sm:$0xff] }
  0x4b   :  { %v2240_v21 = vld [vmem:[%s3124_s1 + $0x1c8] sm:$0xff] }
  0x4c   :  { %1387 = vmatpush.bf16.msra.mxu3 %v2244_v22  ;;  %1436 = vmatpush.bf16.msra.mxu0 %v2252_v23  ;;  %v2224_v22 = vld [vmem:[%s3124_s1 + $0x148] sm:$0xff] }
  0x4d   :  { %v2248_v23 = vld [vmem:[%s3124_s1 + $0x208] sm:$0xff] }
  0x4e   :  { %1339 = vmatpush.bf16.msra.mxu2 %v2235_v36  ;;  %1290 = vmatpush.bf16.msra.mxu1 %v2227_v38  ;;  %v2231_v36 = vld [vmem:[%s3124_s1 + $0x180] sm:$0xff] }
  0x4f   :  { %v2223_v38 = vld [vmem:[%s3124_s1 + $0x140] sm:$0xff] }
  0x50   :  { %1388 = vmatpush.bf16.msra.mxu3 %v2243_v37  ;;  %1437 = vmatpush.bf16.msra.mxu0 %v2251_v39  ;;  %v2239_v37 = vld [vmem:[%s3124_s1 + $0x1c0] sm:$0xff] }
  0x51   :  { %1104 = vmatmul.bf16.gmra.mxu1 %v1578_v32  ;;  %1153 = vmatmul.bf16.gmra.mxu2 %v1582_v33  ;;  %v1722_v32 = vor.u32 %v2156_v24, %v1719_v25  ;;  %v1726_v33 = vor.u32 %v2161_v27, %v1725_v26  ;;  %v2247_v39 = vld [vmem:[%s3124_s1 + $0x200] sm:$0xff]  ;;  %v2118_v24 = vld [vmem:[%s3126_s0 + $0x38] sm:$0xf0] }
  0x52   :  { %1340 = vmatpush.bf16.msra.mxu2 %v2234_v52  ;;  %1291 = vmatpush.bf16.msra.mxu1 %v2226_v54  ;;  %v1770_v52 = vor.u32 %v2171_v47, %v1769_v46  ;;  %v2784_v54 = vld [vmem:[%s3125_s2] ss:$0 sm:$0xff]  ;;  %v2114_v25 = vld [vmem:[%s3126_s0 + $0x1c] sm:$0xf] }
  0x53   :  { %1202 = vmatmul.bf16.gmra.mxu3 %v1586_v34  ;;  %1251 = vmatmul.bf16.gmra.mxu0 %v1590_v35  ;;  %v1730_v34 = vor.u32 %v2157_v28, %v1727_v29  ;;  %v1734_v35 = vor.u32 %v2162_v31, %v1733_v30  ;;  %v1563_v26 = vld [vmem:[%s3126_s0 + $0x3c] sm:$0xf0]  ;;  %v2119_v28 = vld [vmem:[%s3126_s0 + $0x40] sm:$0xf0] }
  0x54   :  { %1389 = vmatpush.bf16.msra.mxu3 %v2242_v53  ;;  %1438 = vmatpush.bf16.msra.mxu0 %v2250_v55  ;;  %v1569_v27 = vld [vmem:[%s3126_s0 + $0x20] sm:$0xf] }
  0x56   :  { %1341 = vmatpush.bf16.msra.mxu2 %v2233_v4  ;;  %1292 = vmatpush.bf16.msra.mxu1 %v2225_v6  ;;  %v2180_v4 = vld [vmem:[%s3126_s0 + $0x228] sm:$0xf0] }
  0x58   :  { %1390 = vmatpush.bf16.msra.mxu3 %v2241_v5  ;;  %1439 = vmatpush.bf16.msra.mxu0 %v2249_v7 }
  0x5a   :  { %1342 = vmatpush.bf16.msra.mxu2 %v2232_v20  ;;  %1293 = vmatpush.bf16.msra.mxu1 %v2224_v22  ;;  %v1555_v22 = vld [vmem:[%s3126_s0 + $0x34] sm:$0xf0] }
  0x5c   :  { %1391 = vmatpush.bf16.msra.mxu3 %v2240_v21  ;;  %1440 = vmatpush.bf16.msra.mxu0 %v2248_v23  ;;  %v2113_v21 = vld [vmem:[%s3126_s0 + $0x14] sm:$0xf]  ;;  %v1561_v23 = vld [vmem:[%s3126_s0 + $0x18] sm:$0xf] }
  0x5e   :  { %1343 = vmatpush.bf16.msra.mxu2 %v2231_v36  ;;  %1294 = vmatpush.bf16.msra.mxu1 %v2223_v38  ;;  %v1570_v38 = vor.u32 %v2119_v28, %v1569_v27  ;;  %v2131_v27 = vld [vmem:[%s3126_s0 + $0xa4] sm:$0xf]  ;;  %v1627_v28 = vld [vmem:[%s3126_s0 + $0xc4] sm:$0xf0] }
  0x60   :  { %1392 = vmatpush.bf16.msra.mxu3 %v2239_v37  ;;  %1441 = vmatpush.bf16.msra.mxu0 %v2247_v39  ;;  %v1566_v37 = vor.u32 %v2114_v25, %v1563_v26 }
  0x61   :  { %1109 = vmatmul.bf16.gmra.mxu1 %v1614_v48  ;;  %1158 = vmatmul.bf16.gmra.mxu2 %v1618_v49  ;;  %v1758_v48 = vor.u32 %v2165_v40, %v1755_v41  ;;  %v1762_v49 = vor.u32 %v2170_v43, %v1761_v42 }
  0x63   :  { %1207 = vmatmul.bf16.gmra.mxu3 %v1622_v50  ;;  %1256 = vmatmul.bf16.gmra.mxu0 %v1626_v51  ;;  %v1766_v51 = vor.u32 %v2166_v44, %v1763_v45 }
  0x71   :  { %1114 = vmatmul.bf16.gmra.mxu1 %v1650_v0  ;;  %1163 = vmatmul.bf16.gmra.mxu2 %v1654_v1  ;;  %v2179_v0 = vld [vmem:[%s3126_s0 + $0x220] sm:$0xf0] }
  0x72   :  { %v2175_v1 = vld [vmem:[%s3126_s0 + $0x204] sm:$0xf]  ;;  %v1798_v9 = vor.u32 %v2179_v0, %v1797_v63 }
  0x73   :  { %1212 = vmatmul.bf16.gmra.mxu3 %v1658_v2  ;;  %1261 = vmatmul.bf16.gmra.mxu0 %v1662_v3  ;;  %v1799_v2 = vld [vmem:[%s3126_s0 + $0x224] sm:$0xf0] }
  0x74   :  { %v1805_v3 = vld [vmem:[%s3126_s0 + $0x208] sm:$0xf]  ;;  %v1802_v12 = vor.u32 %v2175_v1, %v1799_v2 }
  0x75   :  { %v1806_v13 = vor.u32 %v2180_v4, %v1805_v3 }
  0x81   :  { %1119 = vmatmul.bf16.gmra.mxu1 %v1686_v16  ;;  %1168 = vmatmul.bf16.gmra.mxu2 %v1690_v17 }
  0x83   :  { %1217 = vmatmul.bf16.gmra.mxu3 %v1694_v18  ;;  %1266 = vmatmul.bf16.gmra.mxu0 %v1698_v19 }
  0x91   :  { %1124 = vmatmul.bf16.gmra.mxu1 %v1722_v32  ;;  %1173 = vmatmul.bf16.gmra.mxu2 %v1726_v33  ;;  %v1558_v33 = vor.u32 %v2113_v21, %v1555_v22 }
  0x93   :  { %1222 = vmatmul.bf16.gmra.mxu3 %v1730_v34  ;;  %1271 = vmatmul.bf16.gmra.mxu0 %v1734_v35  ;;  %v1562_v34 = vor.u32 %v2118_v24, %v1561_v23 }
  0x9e   :  { %v2779_v50 = vpop.f32.mrf.mxu1 }
  0xa0   :  { %v1051_v53 = vpop.f32.mrf.mxu0 }
  0xa1   :  { %1129 = vmatmul.bf16.gmra.mxu1 %v1758_v48  ;;  %1178 = vmatmul.bf16.gmra.mxu2 %v1762_v49  ;;  %v1052_v30 = vadd.f32 %v2784_v54, %v1051_v53  ;;  %v2122_v49 = vld [vmem:[%s3126_s0 + $0x5c] sm:$0xf]  ;;  %v1597_v53 = vld [vmem:[%s3126_s0 + $0x60] sm:$0xf] }
  0xa3   :  { %1227 = vmatmul.bf16.gmra.mxu3 %v1766_v51  ;;  %1276 = vmatmul.bf16.gmra.mxu0 %v1770_v52  ;;  %v1591_v51 = vld [vmem:[%s3126_s0 + $0x7c] sm:$0xf0] }
  0xa4   :  { %v1071_v55 = vpop.f32.mrf.mxu2  ;;  %v1594_v3 = vor.u32 %v2122_v49, %v1591_v51 }
  0xa5   :  { %v2787_v56 = vadd.f32 %v2784_v54, %v1071_v55  ;;  %v2127_v55 = vld [vmem:[%s3126_s0 + $0x80] sm:$0xf0] }
  0xa6   :  { %v1081_v57 = vpop.f32.mrf.mxu3  ;;  %v2792_v59 = vpop.f32.mrf.mxu1  ;;  %v1598_v4 = vor.u32 %v2127_v55, %v1597_v53 }
  0xa7   :  { %v2790_v58 = vadd.f32 %v2784_v54, %v1081_v57  ;;  %v2123_v57 = vld [vmem:[%s3126_s0 + $0x64] sm:$0xf] }
  0xa8   :  { %v1053_v60 = vpop.f32.mrf.mxu0 }
  0xa9   :  { %v1054_v42 = vadd.f32 %v2784_v54, %v1053_v60  ;;  %v1599_v60 = vld [vmem:[%s3126_s0 + $0x84] sm:$0xf0] }
  0xac   :  { %v1073_v5 = vpop.f32.mrf.mxu2 }
  0xad   :  { %v2819_v6 = vadd.f32 %v2784_v54, %v1073_v5 }
  0xae   :  { %v1083_v7 = vpop.f32.mrf.mxu3  ;;  %v2824_v11 = vpop.f32.mrf.mxu1 }
  0xaf   :  { %v2822_v10 = vadd.f32 %v2784_v54, %v1083_v7  ;;  %v1602_v7 = vor.u32 %v2123_v57, %v1599_v60 }
  0xb0   :  { %v1056_v14 = vpop.f32.mrf.mxu0 }
  0xb1   :  { %1134 = vmatmul.bf16.gmra.mxu1 %v1794_v8  ;;  %1183 = vmatmul.bf16.gmra.mxu2 %v1798_v9  ;;  %v1057_v0 = vadd.f32 %v2784_v54, %v1056_v14  ;;  %v1606_v8 = vor.u32 %v2128_v62, %v1605_v61 }
  0xb3   :  { %1232 = vmatmul.bf16.gmra.mxu3 %v1802_v12  ;;  %1281 = vmatmul.bf16.gmra.mxu0 %v1806_v13 }
  0xb4   :  { %v1076_v15 = vpop.f32.mrf.mxu2 }
  0xb5   :  { %v2827_v16 = vadd.f32 %v2784_v54, %v1076_v15 }
  0xb6   :  { %v1086_v17 = vpop.f32.mrf.mxu3  ;;  %v2832_v19 = vpop.f32.mrf.mxu1 }
  0xb7   :  { %v2830_v18 = vadd.f32 %v2784_v54, %v1086_v17 }
  0xb8   :  { %v1058_v20 = vpop.f32.mrf.mxu0 }
  0xb9   :  { %v1059_v21 = vadd.f32 %v2784_v54, %v1058_v20  ;;  %v1633_v20 = vld [vmem:[%s3126_s0 + $0xa8] sm:$0xf] }
  0xbc   :  { %v1078_v29 = vpop.f32.mrf.mxu2 }
  0xbd   :  { %v2860_v31 = vadd.f32 %v2784_v54, %v1078_v29 }
  0xbe   :  { %v1088_v32 = vpop.f32.mrf.mxu3  ;;  %v1100_v36 = vpop.f32.mrf.mxu1 }
  0xbf   :  { %v2863_v35 = vadd.f32 %v2784_v54, %v1088_v32  ;;  %v1101_v39 = vadd.f32 %v1100_v36, %v1052_v30  ;;  %v2136_v30 = vld [vmem:[%s3126_s0 + $0xc8] sm:$0xf0]  ;;  %v2137_v36 = vld [vmem:[%s3126_s0 + $0xd0] sm:$0xf0] }
  0xc0   :  { %v1247_v40 = vpop.f32.mrf.mxu0  ;;  %v2132_v32 = vld [vmem:[%s3126_s0 + $0xac] sm:$0xf] }
  0xc1   :  { %1295 = vmatmul.bf16.vlgmr.msra.gmra.mxu1 %v1558_v33  ;;  %1344 = vmatmul.bf16.vlgmr.msra.gmra.mxu2 %v1562_v34  ;;  %v1635_v33 = vld [vmem:[%s3126_s0 + $0xcc] sm:$0xf0] }
  0xc2   :  { %v1641_v34 = vld [vmem:[%s3126_s0 + $0xb0] sm:$0xf] }
  0xc3   :  { %1393 = vmatmul.bf16.vlgmr.msra.gmra.mxu3 %v1566_v37  ;;  %1442 = vmatmul.bf16.vlgmr.msra.gmra.mxu0 %v1570_v38  ;;  %v1062_v38 = vadd.f32 %v2784_v54, %v2779_v50  ;;  %v1064_v50 = vadd.f32 %v2784_v54, %v2792_v59  ;;  %v1669_v59 = vld [vmem:[%s3126_s0 + $0xf0] sm:$0xf] }
  0xc4   :  { %v1149_v41 = vpop.f32.mrf.mxu2 }
  0xc5   :  { %v1150_v43 = vadd.f32 %v1149_v41, %v1101_v39  ;;  %v1630_v41 = vor.u32 %v2131_v27, %v1627_v28 }
  0xc6   :  { %v1198_v44 = vpop.f32.mrf.mxu3  ;;  %v1102_v45 = vpop.f32.mrf.mxu1 }
  0xc7   :  { %v1199_v46 = vadd.f32 %v1198_v44, %v1150_v43  ;;  %v1103_v47 = vadd.f32 %v1102_v45, %v1054_v42  ;;  %v1634_v42 = vor.u32 %v2136_v30, %v1633_v20  ;;  %v1638_v44 = vor.u32 %v2132_v32, %v1635_v33 }
  0xc8   :  { %v1249_v48 = vpop.f32.mrf.mxu0  ;;  %v1642_v45 = vor.u32 %v2137_v36, %v1641_v34 }
  0xc9   :  { %v2872_v52 = vadd.f32 %v1247_v40, %v1199_v46 }
  0xcc   :  { %v1151_v63 = vpop.f32.mrf.mxu2 }
  0xcd   :  { %v1152_v1 = vadd.f32 %v1151_v63, %v1103_v47  ;;  %v2140_v63 = vld [vmem:[%s3126_s0 + $0xec] sm:$0xf] }
  0xce   :  { %v1200_v2 = vpop.f32.mrf.mxu3  ;;  %v1105_v5 = vpop.f32.mrf.mxu1 }
  0xcf   :  { %v1201_v9 = vadd.f32 %v1200_v2, %v1152_v1  ;;  %v1106_v12 = vadd.f32 %v1105_v5, %v1057_v0  ;;  %v1663_v0 = vld [vmem:[%s3126_s0 + $0x10c] sm:$0xf0]  ;;  %v2145_v2 = vld [vmem:[%s3126_s0 + $0x110] sm:$0xf0]  ;;  %v1677_v5 = vld [vmem:[%s3126_s0 + $0xf8] sm:$0xf] }
  0xd0   :  { %v1252_v13 = vpop.f32.mrf.mxu0 }
  0xd1   :  { %1300 = vmatmul.bf16.gmra.mxu1 %v1594_v3  ;;  %1349 = vmatmul.bf16.gmra.mxu2 %v1598_v4  ;;  %v2893_v15 = vadd.f32 %v1249_v48, %v1201_v9  ;;  %v2141_v3 = vld [vmem:[%s3126_s0 + $0xf4] sm:$0xf]  ;;  %v1671_v4 = vld [vmem:[%s3126_s0 + $0x114] sm:$0xf0]  ;;  %v1067_v9 = vadd.f32 %v2784_v54, %v2824_v11  ;;  %v1069_v11 = vadd.f32 %v2784_v54, %v2832_v19  ;;  %v2154_v19 = vld [vmem:[%s3126_s0 + $0x158] sm:$0xf0] }
  0xd2   :  { %v1705_v54 = vld [vmem:[%s3126_s0 + $0x138] sm:$0xf] }
  0xd3   :  { %1398 = vmatmul.bf16.gmra.mxu3 %v1602_v7  ;;  %1447 = vmatmul.bf16.gmra.mxu0 %v1606_v8  ;;  %v2146_v7 = vld [vmem:[%s3126_s0 + $0x118] sm:$0xf0] }
  0xd4   :  { %v1154_v17 = vpop.f32.mrf.mxu2 }
  0xd5   :  { %v1155_v14 = vadd.f32 %v1154_v17, %v1106_v12  ;;  %v1666_v17 = vor.u32 %v2140_v63, %v1663_v0 }
  0xd6   :  { %v1203_v22 = vpop.f32.mrf.mxu3  ;;  %v1107_v23 = vpop.f32.mrf.mxu1 }
  0xd7   :  { %v1204_v24 = vadd.f32 %v1203_v22, %v1155_v14  ;;  %v1108_v25 = vadd.f32 %v1107_v23, %v1059_v21  ;;  %v1670_v21 = vor.u32 %v2145_v2, %v1669_v59  ;;  %v1674_v22 = vor.u32 %v2141_v3, %v1671_v4 }
  0xd8   :  { %v1254_v26 = vpop.f32.mrf.mxu0  ;;  %v1678_v23 = vor.u32 %v2146_v7, %v1677_v5  ;;  %v2158_v5 = vld [vmem:[%s3126_s0 + $0x17c] sm:$0xf] }
  0xd9   :  { %v2902_v29 = vadd.f32 %v1252_v13, %v1204_v24 }
  0xdc   :  { %v1156_v37 = vpop.f32.mrf.mxu2 }
  0xdd   :  { %v1157_v39 = vadd.f32 %v1156_v37, %v1108_v25  ;;  %v2149_v37 = vld [vmem:[%s3126_s0 + $0x134] sm:$0xf] }
  0xde   :  { %v1205_v40 = vpop.f32.mrf.mxu3  ;;  %v1110_v43 = vpop.f32.mrf.mxu1 }
  0xdf   :  { %v1206_v46 = vadd.f32 %v1205_v40, %v1157_v39  ;;  %v1111_v47 = vadd.f32 %v1110_v43, %v1062_v38  ;;  %v1699_v38 = vld [vmem:[%s3126_s0 + $0x154] sm:$0xf0]  ;;  %v2150_v40 = vld [vmem:[%s3126_s0 + $0x13c] sm:$0xf]  ;;  %v2155_v43 = vld [vmem:[%s3126_s0 + $0x160] sm:$0xf0] }
  0xe0   :  { %v1257_v48 = vpop.f32.mrf.mxu0 }
  0xe1   :  { %1305 = vmatmul.bf16.gmra.mxu1 %v1630_v41  ;;  %1354 = vmatmul.bf16.gmra.mxu2 %v1634_v42  ;;  %v2924_v49 = vadd.f32 %v1254_v26, %v1206_v46  ;;  %v1707_v41 = vld [vmem:[%s3126_s0 + $0x15c] sm:$0xf0] }
  0xe2   :  { %v1713_v42 = vld [vmem:[%s3126_s0 + $0x140] sm:$0xf] }
  0xe3   :  { %1403 = vmatmul.bf16.gmra.mxu3 %v1638_v44  ;;  %1452 = vmatmul.bf16.gmra.mxu0 %v1642_v45 }
  0xe4   :  { %v1159_v51 = vpop.f32.mrf.mxu2 }
  0xe5   :  { %v1160_v53 = vadd.f32 %v1159_v51, %v1111_v47  ;;  %v1702_v47 = vor.u32 %v2149_v37, %v1699_v38 }
  0xe6   :  { %v1208_v55 = vpop.f32.mrf.mxu3  ;;  %v1112_v57 = vpop.f32.mrf.mxu1 }
  0xe7   :  { %v1209_v60 = vadd.f32 %v1208_v55, %v1160_v53  ;;  %v1113_v61 = vadd.f32 %v1112_v57, %v1064_v50  ;;  %v1710_v50 = vor.u32 %v2150_v40, %v1707_v41  ;;  %v1714_v53 = vor.u32 %v2155_v43, %v1713_v42  ;;  %v2167_v40 = vld [vmem:[%s3126_s0 + $0x1c4] sm:$0xf]  ;;  %v1777_v42 = vld [vmem:[%s3126_s0 + $0x1c8] sm:$0xf]  ;;  %v2172_v43 = vld [vmem:[%s3126_s0 + $0x1e8] sm:$0xf0] }
  0xe8   :  { %v1259_v62 = vpop.f32.mrf.mxu0 }
  0xe9   :  { %v2934_v1 = vadd.f32 %v1257_v48, %v1209_v60  ;;  %v1706_v48 = vor.u32 %v2154_v19, %v1705_v54 }
  0xec   :  { %v1161_v8 = vpop.f32.mrf.mxu2 }
  0xed   :  { %v1162_v12 = vadd.f32 %v1161_v8, %v1113_v61  ;;  %v1741_v8 = vld [vmem:[%s3126_s0 + $0x180] sm:$0xf] }
  0xee   :  { %v1210_v13 = vpop.f32.mrf.mxu3  ;;  %v1115_v14 = vpop.f32.mrf.mxu1 }
  0xef   :  { %v1211_v24 = vadd.f32 %v1210_v13, %v1162_v12  ;;  %v1116_v25 = vadd.f32 %v1115_v14, %v1067_v9  ;;  %v2163_v9 = vld [vmem:[%s3126_s0 + $0x1a0] sm:$0xf0]  ;;  %v1743_v12 = vld [vmem:[%s3126_s0 + $0x1a4] sm:$0xf0] }
  0xf0   :  { %v1262_v26 = vpop.f32.mrf.mxu0  ;;  %v1749_v13 = vld [vmem:[%s3126_s0 + $0x188] sm:$0xf] }
  0xf1   :  { %1310 = vmatmul.bf16.gmra.mxu1 %v1666_v17  ;;  %1359 = vmatmul.bf16.gmra.mxu2 %v1670_v21  ;;  %v2956_v27 = vadd.f32 %v1259_v62, %v1211_v24  ;;  %v2164_v17 = vld [vmem:[%s3126_s0 + $0x1a8] sm:$0xf0]  ;;  %v1742_v24 = vor.u32 %v2163_v9, %v1741_v8 }
  0xf3   :  { %1408 = vmatmul.bf16.gmra.mxu3 %v1674_v22  ;;  %1457 = vmatmul.bf16.gmra.mxu0 %v1678_v23 }
  0xf4   :  { %v1164_v28 = vpop.f32.mrf.mxu2 }
  0xf5   :  { %v1165_v20 = vadd.f32 %v1164_v28, %v1116_v25  ;;  %v1750_v28 = vor.u32 %v2164_v17, %v1749_v13  ;;  %v1813_v13 = vld [vmem:[%s3126_s0 + $0x210] sm:$0xf]  ;;  %v2181_v17 = vld [vmem:[%s3126_s0 + $0x230] sm:$0xf0] }
  0xf6   :  { %v1213_v30 = vpop.f32.mrf.mxu3  ;;  %v1117_v32 = vpop.f32.mrf.mxu1 }
  0xf7   :  { %v1214_v33 = vadd.f32 %v1213_v30, %v1165_v20  ;;  %v1118_v34 = vadd.f32 %v1117_v32, %v1069_v11 }
  0xf8   :  { %v1264_v36 = vpop.f32.mrf.mxu0 }
  0xf9   :  { %v2966_v39 = vadd.f32 %v1262_v26, %v1214_v33 }
  0xfc   :  { %v1166_v44 = vpop.f32.mrf.mxu2 }
  0xfd   :  { %v1167_v45 = vadd.f32 %v1166_v44, %v1118_v34  ;;  %v1779_v44 = vld [vmem:[%s3126_s0 + $0x1ec] sm:$0xf0] }
  0xfe   :  { %v1215_v46 = vpop.f32.mrf.mxu3  ;;  %v1120_v51 = vpop.f32.mrf.mxu1 }
  0xff   :  { %v1216_v55 = vadd.f32 %v1215_v46, %v1167_v45  ;;  %v1121_v57 = vadd.f32 %v1120_v51, %v2787_v56  ;;  %v1735_v56 = vld [vmem:[%s3126_s0 + $0x19c] sm:$0xf0]  ;;  %v1785_v45 = vld [vmem:[%s3126_s0 + $0x1d0] sm:$0xf]  ;;  %v2173_v46 = vld [vmem:[%s3126_s0 + $0x1f0] sm:$0xf0] }
 0x100   :  { %v1267_v60 = vpop.f32.mrf.mxu0  ;;  %v1738_v23 = vor.u32 %v2158_v5, %v1735_v56 }
 0x101   :  { %1315 = vmatmul.bf16.gmra.mxu1 %v1702_v47  ;;  %1364 = vmatmul.bf16.gmra.mxu2 %v1706_v48  ;;  %v2987_v61 = vadd.f32 %v1264_v36, %v1216_v55 }
 0x103   :  { %1413 = vmatmul.bf16.gmra.mxu3 %v1710_v50  ;;  %1462 = vmatmul.bf16.gmra.mxu0 %v1714_v53  ;;  %v1778_v53 = vor.u32 %v2172_v43, %v1777_v42 }
 0x104   :  { %v1169_v62 = vpop.f32.mrf.mxu2 }
 0x105   :  { %v1170_v63 = vadd.f32 %v1169_v62, %v1121_v57 }
 0x106   :  { %v1218_v0 = vpop.f32.mrf.mxu3  ;;  %v1122_v59 = vpop.f32.mrf.mxu1 }
 0x107   :  { %v1219_v2 = vadd.f32 %v1218_v0, %v1170_v63  ;;  %v1123_v3 = vadd.f32 %v1122_v59, %v2819_v6  ;;  %v2159_v6 = vld [vmem:[%s3126_s0 + $0x184] sm:$0xf] }
 0x108   :  { %v1269_v4 = vpop.f32.mrf.mxu0  ;;  %v1746_v26 = vor.u32 %v2159_v6, %v1743_v12  ;;  %v2176_v6 = vld [vmem:[%s3126_s0 + $0x20c] sm:$0xf] }
 0x109   :  { %v2996_v7 = vadd.f32 %v1267_v60, %v1219_v2  ;;  %v1786_v60 = vor.u32 %v2173_v46, %v1785_v45 }
 0x10c   :  { %v1171_v21 = vpop.f32.mrf.mxu2 }
 0x10d   :  { %v1172_v14 = vadd.f32 %v1171_v21, %v1123_v3  ;;  %v1815_v21 = vld [vmem:[%s3126_s0 + $0x234] sm:$0xf0] }
 0x10e   :  { %v1220_v22 = vpop.f32.mrf.mxu3  ;;  %v1125_v25 = vpop.f32.mrf.mxu1 }
 0x10f   :  { %v1221_v11 = vadd.f32 %v1220_v22, %v1172_v14  ;;  %v1126_v20 = vadd.f32 %v1125_v25, %v2827_v16  ;;  %v1771_v16 = vld [vmem:[%s3126_s0 + $0x1e4] sm:$0xf0]  ;;  %v1821_v14 = vld [vmem:[%s3126_s0 + $0x218] sm:$0xf]  ;;  %v2182_v22 = vld [vmem:[%s3126_s0 + $0x238] sm:$0xf0] }
 0x110   :  { %v1272_v30 = vpop.f32.mrf.mxu0  ;;  %v1774_v50 = vor.u32 %v2167_v40, %v1771_v16 }
 0x111   :  { %1320 = vmatmul.bf16.gmra.mxu1 %v1738_v23  ;;  %1369 = vmatmul.bf16.gmra.mxu2 %v1742_v24  ;;  %v3017_v32 = vadd.f32 %v1269_v4, %v1221_v11 }
 0x113   :  { %1418 = vmatmul.bf16.gmra.mxu3 %v1746_v26  ;;  %1467 = vmatmul.bf16.gmra.mxu0 %v1750_v28  ;;  %v1814_v28 = vor.u32 %v2181_v17, %v1813_v13 }
 0x114   :  { %v1174_v33 = vpop.f32.mrf.mxu2 }
 0x115   :  { %v1175_v34 = vadd.f32 %v1174_v33, %v1126_v20 }
 0x116   :  { %v1223_v36 = vpop.f32.mrf.mxu3  ;;  %v1127_v37 = vpop.f32.mrf.mxu1 }
 0x117   :  { %v1224_v38 = vadd.f32 %v1223_v36, %v1175_v34  ;;  %v1128_v54 = vadd.f32 %v1127_v37, %v2860_v31  ;;  %v2168_v31 = vld [vmem:[%s3126_s0 + $0x1cc] sm:$0xf] }
 0x118   :  { %v1274_v19 = vpop.f32.mrf.mxu0  ;;  %v1782_v57 = vor.u32 %v2168_v31, %v1779_v44 }
 0x119   :  { %v3026_v41 = vadd.f32 %v1272_v30, %v1224_v38  ;;  %v1822_v30 = vor.u32 %v2182_v22, %v1821_v14 }
 0x11c   :  { %v1176_v47 = vpop.f32.mrf.mxu2 }
 0x11d   :  { %v1177_v48 = vadd.f32 %v1176_v47, %v1128_v54 }
 0x11e   :  { %v1225_v51 = vpop.f32.mrf.mxu3  ;;  %v1130_v55 = vpop.f32.mrf.mxu1 }
 0x11f   :  { %v1226_v62 = vadd.f32 %v1225_v51, %v1177_v48  ;;  %v1131_v63 = vadd.f32 %v1130_v55, %v2790_v58  ;;  %v1807_v58 = vld [vmem:[%s3126_s0 + $0x22c] sm:$0xf0] }
 0x120   :  { %v1277_v0 = vpop.f32.mrf.mxu0  ;;  %v1810_v26 = vor.u32 %v2176_v6, %v1807_v58 }
 0x121   :  { %1325 = vmatmul.bf16.gmra.mxu1 %v1774_v50  ;;  %1374 = vmatmul.bf16.gmra.mxu2 %v1778_v53  ;;  %v3047_v59 = vadd.f32 %v1274_v19, %v1226_v62 }
 0x123   :  { %1423 = vmatmul.bf16.gmra.mxu3 %v1782_v57  ;;  %1472 = vmatmul.bf16.gmra.mxu0 %v1786_v60 }
 0x124   :  { %v1179_v2 = vpop.f32.mrf.mxu2 }
 0x125   :  { %v1180_v3 = vadd.f32 %v1179_v2, %v1131_v63 }
 0x126   :  { %v1228_v4 = vpop.f32.mrf.mxu3  ;;  %v1132_v5 = vpop.f32.mrf.mxu1 }
 0x127   :  { %v1229_v56 = vadd.f32 %v1228_v4, %v1180_v3  ;;  %v1133_v8 = vadd.f32 %v1132_v5, %v2822_v10  ;;  %v2177_v10 = vld [vmem:[%s3126_s0 + $0x214] sm:$0xf] }
 0x128   :  { %v1279_v9 = vpop.f32.mrf.mxu0  ;;  %v1818_v20 = vor.u32 %v2177_v10, %v1815_v21 }
 0x129   :  { %v3056_v12 = vadd.f32 %v1277_v0, %v1229_v56 }
 0x12c   :  { %v1181_v23 = vpop.f32.mrf.mxu2 }
 0x12d   :  { %v1182_v24 = vadd.f32 %v1181_v23, %v1133_v8 }
 0x12e   :  { %v1230_v25 = vpop.f32.mrf.mxu3  ;;  %v1135_v11 = vpop.f32.mrf.mxu1 }
 0x12f   :  { %v1231_v33 = vadd.f32 %v1230_v25, %v1182_v24  ;;  %v1136_v34 = vadd.f32 %v1135_v11, %v2830_v18 }
 0x130   :  { %v1282_v36 = vpop.f32.mrf.mxu0 }
 0x131   :  { %1330 = vmatmul.bf16.gmra.mxu1 %v1810_v26  ;;  %1379 = vmatmul.bf16.gmra.mxu2 %v1814_v28  ;;  %v3077_v37 = vadd.f32 %v1279_v9, %v1231_v33 }
 0x133   :  { %1428 = vmatmul.bf16.gmra.mxu3 %v1818_v20  ;;  %1477 = vmatmul.bf16.gmra.mxu0 %v1822_v30 }
 0x134   :  { %v1184_v38 = vpop.f32.mrf.mxu2 }
 0x135   :  { %v1185_v54 = vadd.f32 %v1184_v38, %v1136_v34 }
 0x136   :  { %v1233_v19 = vpop.f32.mrf.mxu3  ;;  %v1137_v40 = vpop.f32.mrf.mxu1 }
 0x137   :  { %v1234_v16 = vadd.f32 %v1233_v19, %v1185_v54  ;;  %v1138_v42 = vadd.f32 %v1137_v40, %v2863_v35 }
 0x138   :  { %v1284_v43 = vpop.f32.mrf.mxu0 }
 0x139   :  { %v3080_v31 = vadd.f32 %v1282_v36, %v1234_v16 }
 0x13c   :  { %v1186_v44 = vpop.f32.mrf.mxu2 }
 0x13d   :  { %v1187_v45 = vadd.f32 %v1186_v44, %v1138_v42 }
 0x13e   :  { %v1235_v18 = vpop.f32.mrf.mxu3  ;;  %v1296_v46 = vpop.f32.mrf.mxu1 }
 0x13f   :  { %v1236_v47 = vadd.f32 %v1235_v18, %v1187_v45  ;;  %v1297_v53 = vadd.f32 %v1296_v46, %v2872_v52 }
 0x140   :  { %v1443_v48 = vpop.f32.mrf.mxu0 }
 0x141   :  { %v3082_v51 = vadd.f32 %v1284_v43, %v1236_v47 }
 0x144   :  { %v1345_v50 = vpop.f32.mrf.mxu2 }
 0x145   :  { %v1346_v60 = vadd.f32 %v1345_v50, %v1297_v53 }
 0x146   :  { %v1394_v55 = vpop.f32.mrf.mxu3  ;;  %v1298_v57 = vpop.f32.mrf.mxu1 }
 0x147   :  { %v1395_v63 = vadd.f32 %v1394_v55, %v1346_v60  ;;  %v1299_v35 = vadd.f32 %v1298_v57, %v2893_v15 }
 0x148   :  { %v1445_v62 = vpop.f32.mrf.mxu0 }
 0x149   :  { %v1444_v5 = vadd.f32 %v1443_v48, %v1395_v63 }
 0x14b   :  { %v1483_v6 = vmax.f32 %v1444_v5, 0.0 }
 0x14c   :  { %v1347_v0 = vpop.f32.mrf.mxu2 }
 0x14d   :  { %v1348_v2 = vadd.f32 %v1347_v0, %v1299_v35 }
 0x14e   :  { %v1396_v3 = vpop.f32.mrf.mxu3  ;;  %v1301_v4 = vpop.f32.mrf.mxu1 }
 0x14f   :  { %v1397_v56 = vadd.f32 %v1396_v3, %v1348_v2  ;;  %v1302_v52 = vadd.f32 %v1301_v4, %v2902_v29 }
 0x150   :  { %v1448_v8 = vpop.f32.mrf.mxu0 }
 0x151   :  { %v1446_v9 = vadd.f32 %v1445_v62, %v1397_v56 }
 0x153   :  { %v1484_v58 = vmax.f32 %v1446_v9, 0.0 }
 0x154   :  { %v1350_v13 = vpop.f32.mrf.mxu2 }
 0x155   :  { %v2258_v17 = vpack.c.bf16 %v1484_v58, %v1483_v6  ;;  %v1351_v15 = vadd.f32 %v1350_v13, %v1302_v52 }
 0x156   :  { %v1399_v10 = vpop.f32.mrf.mxu3  ;;  %v1303_v21 = vpop.f32.mrf.mxu1 }
 0x157   :  { %2259 = vst [vmem:[%s3127_s3] sm:$0xff] %v2258_v17   ;;  %v1400_v22 = vadd.f32 %v1399_v10, %v1351_v15  ;;  %v1304_v23 = vadd.f32 %v1303_v21, %v2924_v49 }
 0x158   :  { %v1450_v14 = vpop.f32.mrf.mxu0 }
 0x159   :  { %v1449_v11 = vadd.f32 %v1448_v8, %v1400_v22 }
 0x15b   :  { %v1485_v29 = vmax.f32 %v1449_v11, 0.0 }
 0x15c   :  { %v1352_v24 = vpop.f32.mrf.mxu2 }
 0x15d   :  { %v1353_v25 = vadd.f32 %v1352_v24, %v1304_v23 }
 0x15e   :  { %v1401_v26 = vpop.f32.mrf.mxu3  ;;  %v1306_v28 = vpop.f32.mrf.mxu1 }
 0x15f   :  { %v1402_v20 = vadd.f32 %v1401_v26, %v1353_v25  ;;  %v1307_v54 = vadd.f32 %v1306_v28, %v2934_v1 }
 0x160   :  { %v1453_v30 = vpop.f32.mrf.mxu0 }
 0x161   :  { %v1451_v33 = vadd.f32 %v1450_v14, %v1402_v20 }
 0x163   :  { %v1486_v34 = vmax.f32 %v1451_v33, 0.0 }
 0x164   :  { %v1355_v36 = vpop.f32.mrf.mxu2 }
 0x165   :  { %v2263_v38 = vpack.c.bf16 %v1486_v34, %v1485_v29  ;;  %v1356_v49 = vadd.f32 %v1355_v36, %v1307_v54 }
 0x166   :  { %v1404_v19 = vpop.f32.mrf.mxu3  ;;  %v1308_v40 = vpop.f32.mrf.mxu1 }
 0x167   :  { %2295 = vst [vmem:[%s3127_s3 + $0x8] sm:$0xff] %v2263_v38   ;;  %v1405_v42 = vadd.f32 %v1404_v19, %v1356_v49  ;;  %v1309_v43 = vadd.f32 %v1308_v40, %v2956_v27 }
 0x168   :  { %v1455_v16 = vpop.f32.mrf.mxu0 }
 0x169   :  { %v1454_v47 = vadd.f32 %v1453_v30, %v1405_v42 }
 0x16b   :  { %v1487_v1 = vmax.f32 %v1454_v47, 0.0 }
 0x16c   :  { %v1357_v44 = vpop.f32.mrf.mxu2 }
 0x16d   :  { %v1358_v45 = vadd.f32 %v1357_v44, %v1309_v43 }
 0x16e   :  { %v1406_v18 = vpop.f32.mrf.mxu3  ;;  %v1311_v46 = vpop.f32.mrf.mxu1 }
 0x16f   :  { %v1407_v48 = vadd.f32 %v1406_v18, %v1358_v45  ;;  %v1312_v62 = vadd.f32 %v1311_v46, %v2966_v39 }
 0x170   :  { %v1458_v50 = vpop.f32.mrf.mxu0 }
 0x171   :  { %v1456_v53 = vadd.f32 %v1455_v16, %v1407_v48 }
 0x173   :  { %v1488_v55 = vmax.f32 %v1456_v53, 0.0 }
 0x174   :  { %v1360_v57 = vpop.f32.mrf.mxu2 }
 0x175   :  { %v2268_v60 = vpack.c.bf16 %v1488_v55, %v1487_v1  ;;  %v1361_v27 = vadd.f32 %v1360_v57, %v1312_v62 }
 0x176   :  { %v1409_v63 = vpop.f32.mrf.mxu3  ;;  %v1313_v35 = vpop.f32.mrf.mxu1 }
 0x177   :  { %2296 = vst [vmem:[%s3127_s3 + $0x10] sm:$0xff] %v2268_v60   ;;  %v1410_v2 = vadd.f32 %v1409_v63, %v1361_v27  ;;  %v1314_v3 = vadd.f32 %v1313_v35, %v2987_v61 }
 0x178   :  { %v1460_v0 = vpop.f32.mrf.mxu0 }
 0x179   :  { %v1459_v9 = vadd.f32 %v1458_v50, %v1410_v2 }
 0x17b   :  { %v1489_v39 = vmax.f32 %v1459_v9, 0.0 }
 0x17c   :  { %v1362_v4 = vpop.f32.mrf.mxu2 }
 0x17d   :  { %v1363_v5 = vadd.f32 %v1362_v4, %v1314_v3 }
 0x17e   :  { %v1411_v56 = vpop.f32.mrf.mxu3  ;;  %v1316_v8 = vpop.f32.mrf.mxu1 }
 0x17f   :  { %v1412_v6 = vadd.f32 %v1411_v56, %v1363_v5  ;;  %v1317_v21 = vadd.f32 %v1316_v8, %v2996_v7 }
 0x180   :  { %v1463_v58 = vpop.f32.mrf.mxu0 }
 0x181   :  { %v1461_v13 = vadd.f32 %v1460_v0, %v1412_v6 }
 0x183   :  { %v1490_v17 = vmax.f32 %v1461_v13, 0.0 }
 0x184   :  { %v1365_v52 = vpop.f32.mrf.mxu2 }
 0x185   :  { %v2273_v10 = vpack.c.bf16 %v1490_v17, %v1489_v39  ;;  %v1366_v61 = vadd.f32 %v1365_v52, %v1317_v21 }
 0x186   :  { %v1414_v15 = vpop.f32.mrf.mxu3  ;;  %v1318_v14 = vpop.f32.mrf.mxu1 }
 0x187   :  { %2297 = vst [vmem:[%s3127_s3 + $0x18] sm:$0xff] %v2273_v10   ;;  %v1415_v23 = vadd.f32 %v1414_v15, %v1366_v61  ;;  %v1319_v24 = vadd.f32 %v1318_v14, %v3017_v32 }
 0x188   :  { %v1465_v22 = vpop.f32.mrf.mxu0 }
 0x189   :  { %v1464_v20 = vadd.f32 %v1463_v58, %v1415_v23 }
 0x18b   :  { %v1491_v7 = vmax.f32 %v1464_v20, 0.0 }
 0x18c   :  { %v1367_v25 = vpop.f32.mrf.mxu2 }
 0x18d   :  { %v1368_v26 = vadd.f32 %v1367_v25, %v1319_v24 }
 0x18e   :  { %v1416_v28 = vpop.f32.mrf.mxu3  ;;  %v1321_v11 = vpop.f32.mrf.mxu1 }
 0x18f   :  { %v1417_v30 = vadd.f32 %v1416_v28, %v1368_v26  ;;  %v1322_v54 = vadd.f32 %v1321_v11, %v3026_v41 }
 0x190   :  { %v1468_v33 = vpop.f32.mrf.mxu0 }
 0x191   :  { %v1466_v29 = vadd.f32 %v1465_v22, %v1417_v30 }
 0x193   :  { %v1492_v34 = vmax.f32 %v1466_v29, 0.0 }
 0x194   :  { %v1370_v36 = vpop.f32.mrf.mxu2 }
 0x195   :  { %v2278_v38 = vpack.c.bf16 %v1492_v34, %v1491_v7  ;;  %v1371_v32 = vadd.f32 %v1370_v36, %v1322_v54 }
 0x196   :  { %v1419_v19 = vpop.f32.mrf.mxu3  ;;  %v1323_v40 = vpop.f32.mrf.mxu1 }
 0x197   :  { %2298 = vst [vmem:[%s3127_s3 + $0x20] sm:$0xff] %v2278_v38   ;;  %v1420_v16 = vadd.f32 %v1419_v19, %v1371_v32  ;;  %v1324_v42 = vadd.f32 %v1323_v40, %v3047_v59 }
 0x198   :  { %v1470_v49 = vpop.f32.mrf.mxu0 }
 0x199   :  { %v1469_v46 = vadd.f32 %v1468_v33, %v1420_v16 }
 0x19b   :  { %v1493_v41 = vmax.f32 %v1469_v46, 0.0 }
 0x19c   :  { %v1372_v43 = vpop.f32.mrf.mxu2 }
 0x19d   :  { %v1373_v44 = vadd.f32 %v1372_v43, %v1324_v42 }
 0x19e   :  { %v1421_v45 = vpop.f32.mrf.mxu3  ;;  %v1326_v18 = vpop.f32.mrf.mxu1 }
 0x19f   :  { %v1422_v47 = vadd.f32 %v1421_v45, %v1373_v44  ;;  %v1327_v57 = vadd.f32 %v1326_v18, %v3056_v12 }
 0x1a0   :  { %v1473_v50 = vpop.f32.mrf.mxu0 }
 0x1a1   :  { %v1471_v48 = vadd.f32 %v1470_v49, %v1422_v47 }
 0x1a3   :  { %v1494_v53 = vmax.f32 %v1471_v48, 0.0 }
 0x1a4   :  { %v1375_v1 = vpop.f32.mrf.mxu2 }
 0x1a5   :  { %v2283_v55 = vpack.c.bf16 %v1494_v53, %v1493_v41  ;;  %v1376_v59 = vadd.f32 %v1375_v1, %v1327_v57 }
 0x1a6   :  { %v1424_v60 = vpop.f32.mrf.mxu3  ;;  %v1328_v62 = vpop.f32.mrf.mxu1 }
 0x1a7   :  { %2299 = vst [vmem:[%s3127_s3 + $0x28] sm:$0xff] %v2283_v55   ;;  %v1425_v63 = vadd.f32 %v1424_v60, %v1376_v59  ;;  %v1329_v35 = vadd.f32 %v1328_v62, %v3077_v37 }
 0x1a8   :  { %v1475_v27 = vpop.f32.mrf.mxu0 }
 0x1a9   :  { %v1474_v5 = vadd.f32 %v1473_v50, %v1425_v63 }
 0x1ab   :  { %v1495_v9 = vmax.f32 %v1474_v5, 0.0 }
 0x1ac   :  { %v1377_v0 = vpop.f32.mrf.mxu2 }
 0x1ad   :  { %v1378_v2 = vadd.f32 %v1377_v0, %v1329_v35 }
 0x1ae   :  { %v1426_v3 = vpop.f32.mrf.mxu3  ;;  %v1331_v4 = vpop.f32.mrf.mxu1 }
 0x1af   :  { %v1427_v56 = vadd.f32 %v1426_v3, %v1378_v2  ;;  %v1332_v13 = vadd.f32 %v1331_v4, %v3080_v31 }
 0x1b0   :  { %v1478_v17 = vpop.f32.mrf.mxu0 }
 0x1b1   :  { %v1476_v8 = vadd.f32 %v1475_v27, %v1427_v56 }
 0x1b3   :  { %v1496_v12 = vmax.f32 %v1476_v8, 0.0 }
 0x1b4   :  { %v1380_v6 = vpop.f32.mrf.mxu2 }
 0x1b5   :  { %v2288_v58 = vpack.c.bf16 %v1496_v12, %v1495_v9  ;;  %v1381_v37 = vadd.f32 %v1380_v6, %v1332_v13 }
 0x1b6   :  { %v1429_v39 = vpop.f32.mrf.mxu3  ;;  %v1333_v52 = vpop.f32.mrf.mxu1 }
 0x1b7   :  { %2300 = vst [vmem:[%s3127_s3 + $0x30] sm:$0xff] %v2288_v58   ;;  %v1430_v10 = vadd.f32 %v1429_v39, %v1381_v37  ;;  %v1334_v21 = vadd.f32 %v1333_v52, %v3082_v51 }
 0x1b8   :  { %v1480_v24 = vpop.f32.mrf.mxu0 }
 0x1b9   :  { %v1479_v22 = vadd.f32 %v1478_v17, %v1430_v10 }
 0x1bb   :  { %v1497_v26 = vmax.f32 %v1479_v22, 0.0 }
 0x1bc   :  { %v1382_v15 = vpop.f32.mrf.mxu2 }
 0x1bd   :  { %v1383_v14 = vadd.f32 %v1382_v15, %v1334_v21 }
 0x1be   :  { %v1431_v61 = vpop.f32.mrf.mxu3 }
 0x1bf   :  { %v1432_v23 = vadd.f32 %v1431_v61, %v1383_v14 }
 0x1c1   :  { %v1481_v25 = vadd.f32 %v1480_v24, %v1432_v23 }
 0x1c3   :  { %v1498_v31 = vmax.f32 %v1481_v25, 0.0 }
 0x1c5   :  { %v2293_v28 = vpack.c.bf16 %v1498_v31, %v1497_v26 }
 0x1c7   :  { %2301 = vst [vmem:[%s3127_s3 + $0x38] sm:$0xff] %v2293_v28  }

// kernel: _lambda_.12
= control target key start
LH: loop header
LB: loop body
LE: loop exit
PB: predicated region body
PF: predicated region fallthrough
CT: control target
= control target key end

     0   :  { %vm265_vm0 = vsmask.f32 7424  ;;  %vm725_vm1 = vcmask 1046528   ;;  %vm1316_vm2 = vsmask.f32 6400  ;;  %vm1675_vm3 = vcmask 1045504   ;;  %s4794_s2 = inlined_call_operand.vmem [shape: bf16[9,128,128], index: 2, kind: input, shape index: {}]   ;;  %s4795_s0 = inlined_call_operand.vmem [shape: bf16[288,128], index: 0, kind: input, shape index: {}, may-alias: {0,1}]   ;;  %s4796_s1 = inlined_call_operand.vmem [shape: bf16[288,128], index: 1, kind: input, shape index: {}, may-alias: {0,1}]   ;;  %s4797_s3 = inlined_call_operand.vmem [shape: f32[1,128], index: 3, kind: input, shape index: {}]   ;;  %s4798_s4 = inlined_call_operand.vmem [shape: bf16[256,128], index: 4, kind: output, shape index: {}]  }
   0x1   :  { %v3616_v0 = vld [vmem:[%s4794_s2 + $0x78] sm:$0xff]  ;;  %v3615_v1 = vld [vmem:[%s4794_s2 + $0x70] sm:$0xff]  ;;  %v52_v2 = vld [vmem:[%s4795_s0 + $0x20] sm:$0xff]   ;;  %vm2266_vm4 = vsmask.f32 5376  ;;  %vm2625_vm5 = vcmask 1044480  }
   0x2   :  { %3805 = vmatpush.bf16.msra.mxu1 %v3616_v0  ;;  %3806 = vmatpush.bf16.msra.mxu2 %v3616_v0  ;;  %v54_v3 = vld [vmem:[%s4795_s0 + $0x28] sm:$0xff]   ;;  %84 = vst [vmem:[#allocation2 + $0x20] sm:$0xff] %v52_v2   ;;  %v60_v4 = vld [vmem:[%s4795_s0 + $0x40] sm:$0xff]   ;;  %v56_v11 = vld [vmem:[%s4795_s0 + $0x30] sm:$0xff]  }
   0x3   :  { %3807 = vmatpush.bf16.msra.mxu3 %v3616_v0  ;;  %462 = vmatpush.bf16.msra.mxu0 %v3616_v0  ;;  %v62_v5 = vld [vmem:[%s4795_s0 + $0x48] sm:$0xff]   ;;  %86 = vst [vmem:[#allocation2 + $0x28] sm:$0xff] %v54_v3   ;;  %v68_v6 = vld [vmem:[%s4795_s0 + $0x60] sm:$0xff]   ;;  %v64_v12 = vld [vmem:[%s4795_s0 + $0x50] sm:$0xff]  }
   0x4   :  { %92 = vst [vmem:[#allocation2 + $0x40] sm:$0xff] %v60_v4   ;;  %v70_v7 = vld [vmem:[%s4795_s0 + $0x68] sm:$0xff]   ;;  %v44_v9 = vld [vmem:[%s4795_s0] sm:$0xff]   ;;  %v72_v14 = vld [vmem:[%s4795_s0 + $0x70] sm:$0xff]  }
   0x5   :  { %v3614_v8 = vld [vmem:[%s4794_s2 + $0x68] sm:$0xff]  ;;  %94 = vst [vmem:[#allocation2 + $0x48] sm:$0xff] %v62_v5   ;;  %v3613_v13 = vld [vmem:[%s4794_s2 + $0x60] sm:$0xff]  ;;  %v48_v15 = vld [vmem:[%s4795_s0 + $0x10] sm:$0xff]  }
   0x6   :  { %3808 = vmatpush.bf16.msra.mxu1 %v3615_v1  ;;  %3809 = vmatpush.bf16.msra.mxu2 %v3615_v1  ;;  %100 = vst [vmem:[#allocation2 + $0x60] sm:$0xff] %v68_v6   ;;  %v46_v10 = vld [vmem:[%s4795_s0 + $0x8] sm:$0xff]   ;;  %v3612_v17 = vld [vmem:[%s4794_s2 + $0x58] sm:$0xff]  ;;  %v3611_v24 = vld [vmem:[%s4794_s2 + $0x50] sm:$0xff] }
   0x7   :  { %3810 = vmatpush.bf16.msra.mxu3 %v3615_v1  ;;  %463 = vmatpush.bf16.msra.mxu0 %v3615_v1  ;;  %102 = vst [vmem:[#allocation2 + $0x68] sm:$0xff] %v70_v7   ;;  %v3610_v31 = vld [vmem:[%s4794_s2 + $0x48] sm:$0xff]  ;;  %v58_v39 = vld [vmem:[%s4795_s0 + $0x38] sm:$0xff]   ;;  %v3609_v47 = vld [vmem:[%s4794_s2 + $0x40] sm:$0xff] }
   0x8   :  { %76 = vst [vmem:[#allocation2] sm:$0xff] %v44_v9   ;;  %v66_v40 = vld [vmem:[%s4795_s0 + $0x58] sm:$0xff]   ;;  %v3623_v0 = vld [vmem:[%s4794_s2 + $0xb0] sm:$0xff]  ;;  %v2986_v2 = vld [vmem:[%s4796_s1 + $0x80] sm:$0xf] }
   0x9   :  { %78 = vst [vmem:[#allocation2 + $0x8] sm:$0xff] %v46_v10   ;;  %v3920_v16 = vld [vmem:[#allocation2 + $0x20] sm:$0xff]  ;;  %v74_v41 = vld [vmem:[%s4795_s0 + $0x78] sm:$0xff]   ;;  %v3646_v1 = vld [vmem:[%s4794_s2 + $0xf0] sm:$0xff] }
   0xa   :  { %3811 = vmatpush.bf16.msra.mxu1 %v3614_v8  ;;  %3812 = vmatpush.bf16.msra.mxu2 %v3614_v8  ;;  %88 = vst [vmem:[#allocation2 + $0x30] sm:$0xff] %v56_v11   ;;  %v3929_v21 = vld [vmem:[#allocation2 + $0x28] sm:$0xff]  ;;  %v298_v22 = vshll.u32 %v3920_v16, 16  ;;  %v302_v30 = vshrl.u32 %v3920_v16, 16  ;;  %v50_v46 = vld [vmem:[%s4795_s0 + $0x18] sm:$0xff]   ;;  %v3607_v3 = vld [vmem:[%s4794_s2 + $0x30] sm:$0xff] }
   0xb   :  { %3813 = vmatpush.bf16.msra.mxu3 %v3614_v8  ;;  %464 = vmatpush.bf16.msra.mxu0 %v3614_v8  ;;  %96 = vst [vmem:[#allocation2 + $0x50] sm:$0xff] %v64_v12   ;;  %v3925_v18 = vld [vmem:[#allocation2 + $0x40] sm:$0xff]  ;;  %v306_v33 = vshll.u32 %v3929_v21, 16  ;;  %v3624_v56 = vld [vmem:[%s4794_s2 + $0xb8] sm:$0xff]  ;;  %v3654_v8 = vld [vmem:[%s4794_s2 + $0x130] sm:$0xff]  ;;  %v310_v11 = vshrl.u32 %v3929_v21, 16 }
   0xc   :  { %104 = vst [vmem:[#allocation2 + $0x70] sm:$0xff] %v72_v14   ;;  %v3932_v23 = vld [vmem:[#allocation2 + $0x48] sm:$0xff]  ;;  %v330_v25 = vshll.u32 %v3925_v18, 16  ;;  %v3947_v32 = vrot.slane %v298_v22, 1  ;;  %v334_v34 = vshrl.u32 %v3925_v18, 16  ;;  %v3647_v57 = vld [vmem:[%s4794_s2 + $0xf8] sm:$0xff] }
   0xd   :  { %80 = vst [vmem:[#allocation2 + $0x10] sm:$0xff] %v48_v15   ;;  %v3597_v19 = vld [vmem:[#allocation2 + $0x60] sm:$0xff]  ;;  %v338_v35 = vshll.u32 %v3932_v23, 16  ;;  %v308_v49 = vrot.slane %v306_v33, 1  ;;  %v3608_v62 = vld [vmem:[%s4794_s2 + $0x38] sm:$0xff]  ;;  %v3622_v9 = vld [vmem:[%s4794_s2 + $0xa8] sm:$0xff] }
   0xe   :  { %3814 = vmatpush.bf16.msra.mxu1 %v3613_v13  ;;  %3815 = vmatpush.bf16.msra.mxu2 %v3613_v13  ;;  %v3938_v26 = vld [vmem:[#allocation2 + $0x68] sm:$0xff]  ;;  %v362_v27 = vshll.u32 %v3597_v19, 16  ;;  %v3952_v36 = vrot.slane %v330_v25, 1  ;;  %v366_v37 = vshrl.u32 %v3597_v19, 16  ;;  %90 = vst [vmem:[#allocation2 + $0x38] sm:$0xff] %v58_v39   ;;  %v304_v48 = vor.u32 %v302_v30, %v3947_v32  ;;  %v3655_v63 = vld [vmem:[%s4794_s2 + $0x138] sm:$0xff] }
   0xf   :  { %3816 = vmatpush.bf16.msra.mxu3 %v3613_v13  ;;  %465 = vmatpush.bf16.msra.mxu0 %v3613_v13  ;;  %v3927_v20 = vld [vmem:[#allocation2] sm:$0xff]   ;;  %v370_v38 = vshll.u32 %v3938_v26, 16  ;;  %98 = vst [vmem:[#allocation2 + $0x58] sm:$0xff] %v66_v40   ;;  %v340_v51 = vrot.slane %v338_v35, 1  ;;  %v3645_v10 = vld [vmem:[%s4794_s2 + $0xe8] sm:$0xff]  ;;  %v342_v13 = vshrl.u32 %v3932_v23, 16 }
  0x10   :  { %v3940_v28 = vld [vmem:[#allocation2 + $0x8] sm:$0xff]  ;;  %v269_v29 = vshll.u32 %v3927_v20, 16  ;;  %v3964_v42 = vrot.slane %v362_v27, 1  ;;  %v267_v43 = vshrl.u32 %v3927_v20, 16  ;;  %106 = vst [vmem:[#allocation2 + $0x78] sm:$0xff] %v74_v41   ;;  %v336_v50 = vor.u32 %v334_v34, %v3952_v36  ;;  %v3644_v27 = vld [vmem:[%s4794_s2 + $0xe0] sm:$0xff] }
  0x11   :  { %v274_v45 = vshll.u32 %v3940_v28, 16  ;;  %82 = vst [vmem:[#allocation2 + $0x18] sm:$0xff] %v50_v46   ;;  %v372_v53 = vrot.slane %v370_v38, 1  ;;  %v309_v58 = vsel %vm265_vm0, %v304_v48, %v308_v49  ;;  %v4005_v4 = vld [vmem:[#allocation2 + $0x30] sm:$0xff]  ;;  %v374_v15 = vshrl.u32 %v3938_v26, 16  ;;  %v3653_v25 = vld [vmem:[%s4794_s2 + $0x128] sm:$0xff] }
  0x12   :  { %3817 = vmatpush.bf16.msra.mxu1 %v3612_v17  ;;  %3818 = vmatpush.bf16.msra.mxu2 %v3612_v17  ;;  %v271_v44 = vrot.slane %v269_v29, 1  ;;  %v368_v52 = vor.u32 %v366_v37, %v3964_v42  ;;  %v341_v59 = vsel %vm265_vm0, %v336_v50, %v340_v51  ;;  %112 = vst [vmem:[#allocation2 + $0x80] sm:$0xf] %v2986_v2  ;;  %v4007_v5 = vld [vmem:[#allocation2 + $0x50] sm:$0xff]  ;;  %v314_v12 = vshll.u32 %v4005_v4, 16  ;;  %v3621_v26 = vld [vmem:[%s4794_s2 + $0xa0] sm:$0xff] }
  0x13   :  { %3819 = vmatpush.bf16.msra.mxu3 %v3612_v17  ;;  %466 = vmatpush.bf16.msra.mxu0 %v3612_v17  ;;  %v276_v55 = vrot.slane %v274_v45, 1  ;;  %v4009_v6 = vld [vmem:[#allocation2 + $0x70] sm:$0xff]  ;;  %v346_v14 = vshll.u32 %v4007_v5, 16  ;;  %v278_v19 = vshrl.u32 %v3940_v28, 16  ;;  %v312_v29 = vor.u32 %v310_v11, %v308_v49  ;;  %v3605_v39 = vld [vmem:[%s4794_s2 + $0x20] sm:$0xff]  ;;  %v3620_v41 = vld [vmem:[%s4794_s2 + $0x98] sm:$0xff] }
  0x14   :  { %v272_v54 = vor.u32 %v271_v44, %v267_v43  ;;  %v373_v60 = vsel %vm265_vm0, %v368_v52, %v372_v53  ;;  %v4011_v7 = vld [vmem:[#allocation2 + $0x10] sm:$0xff]  ;;  %v378_v17 = vshll.u32 %v4009_v6, 16  ;;  %v316_v30 = vrot.slane %v314_v12, 1  ;;  %v3652_v40 = vld [vmem:[%s4794_s2 + $0x120] sm:$0xff]  ;;  %v3643_v43 = vld [vmem:[%s4794_s2 + $0xd8] sm:$0xff] }
  0x15   :  { %v282_v22 = vshll.u32 %v4011_v7, 16  ;;  %v348_v33 = vrot.slane %v346_v14, 1  ;;  %v376_v34 = vor.u32 %v374_v15, %v372_v53  ;;  %v280_v37 = vor.u32 %v278_v19, %v276_v55  ;;  %v3604_v48 = vld [vmem:[%s4794_s2 + $0x18] sm:$0xff]  ;;  %v3619_v50 = vld [vmem:[%s4794_s2 + $0x90] sm:$0xff] }
  0x16   :  { %3820 = vmatpush.bf16.msra.mxu1 %v3611_v24  ;;  %3821 = vmatpush.bf16.msra.mxu2 %v3611_v24  ;;  %v277_v61 = vsel %vm265_vm0, %v272_v54, %v276_v55  ;;  %v380_v35 = vrot.slane %v378_v17, 1  ;;  %v317_v44 = vsel %vm265_vm0, %v312_v29, %v316_v30  ;;  %v3651_v49 = vld [vmem:[%s4794_s2 + $0x118] sm:$0xff]  ;;  %v286_v2 = vshrl.u32 %v4011_v7, 16 }
  0x17   :  { %3822 = vmatpush.bf16.msra.mxu3 %v3611_v24  ;;  %467 = vmatpush.bf16.msra.mxu0 %v3611_v24  ;;  %v3606_v24 = vld [vmem:[%s4794_s2 + $0x28] sm:$0xff]  ;;  %v284_v38 = vrot.slane %v282_v22, 1  ;;  %v4070_v52 = vld [vmem:[#allocation2 + $0x38] sm:$0xff] }
  0x18   :  { %v381_v46 = vsel %vm265_vm0, %v376_v34, %v380_v35  ;;  %v4072_v53 = vld [vmem:[#allocation2 + $0x58] sm:$0xff] }
  0x19   :  { %v4074_v54 = vld [vmem:[#allocation2 + $0x78] sm:$0xff]  ;;  %v288_v19 = vor.u32 %v286_v2, %v284_v38  ;;  %v3788_v2 = vld [vmem:[#allocation2] sm:$0xe] }
  0x1a   :  { %3823 = vmatpush.bf16.msra.mxu1 %v3610_v31  ;;  %3824 = vmatpush.bf16.msra.mxu2 %v3610_v31  ;;  %v4076_v55 = vld [vmem:[#allocation2 + $0x18] sm:$0xff] }
  0x1b   :  { %3825 = vmatpush.bf16.msra.mxu3 %v3610_v31  ;;  %468 = vmatpush.bf16.msra.mxu0 %v3610_v31  ;;  %v344_v31 = vor.u32 %v342_v13, %v340_v51  ;;  %v3642_v51 = vld [vmem:[%s4794_s2 + $0xd0] sm:$0xff]  ;;  %v3686_v34 = vld [vmem:[%s4794_s2 + $0x1b8] sm:$0xff] }
  0x1d   :  { %v349_v45 = vsel %vm265_vm0, %v344_v31, %v348_v33 }
  0x1e   :  { %3826 = vmatpush.bf16.msra.mxu1 %v3609_v47  ;;  %3827 = vmatpush.bf16.msra.mxu2 %v3609_v47 }
  0x1f   :  { %3828 = vmatpush.bf16.msra.mxu3 %v3609_v47  ;;  %469 = vmatpush.bf16.msra.mxu0 %v3609_v47  ;;  %v285_v47 = vsel %vm265_vm0, %v280_v37, %v284_v38  ;;  %v3663_v37 = vld [vmem:[%s4794_s2 + $0x178] sm:$0xff] }
  0x21   :  { %490 = vmatmul.bf16.vlgmr.msra.gmra.mxu1 %v309_v58  ;;  %510 = vmatmul.bf16.vlgmr.msra.gmra.mxu2 %v341_v59  ;;  %v3618_v58 = vld [vmem:[%s4794_s2 + $0x88] sm:$0xff] }
  0x22   :  { %823 = vmatpush.bf16.msrb.mxu2 %v3624_v56  ;;  %530 = vmatmul.bf16.vlgmr.msra.gmra.mxu3 %v373_v60  ;;  %v3603_v56 = vld [vmem:[%s4794_s2 + $0x10] sm:$0xff]  ;;  %v3641_v59 = vld [vmem:[%s4794_s2 + $0xc8] sm:$0xff]  ;;  %v318_v60 = vshrl.u32 %v4005_v4, 16 }
  0x23   :  { %1174 = vmatpush.bf16.msrb.mxu3 %v3647_v57  ;;  %470 = vmatmul.bf16.vlgmr.msra.gmra.mxu0 %v277_v61  ;;  %v3650_v57 = vld [vmem:[%s4794_s2 + $0x110] sm:$0xff]  ;;  %v322_v61 = vshll.u32 %v4070_v52, 16 }
  0x24   :  { %615 = vmatpush.bf16.msrb.mxu1 %v3608_v62  ;;  %1533 = vmatpush.bf16.msrb.mxu0 %v3655_v63  ;;  %v350_v62 = vshrl.u32 %v4007_v5, 16  ;;  %v354_v63 = vshll.u32 %v4072_v53, 16  ;;  %v320_v11 = vor.u32 %v318_v60, %v316_v30 }
  0x25   :  { %v324_v12 = vrot.slane %v322_v61, 1 }
  0x26   :  { %824 = vmatpush.bf16.msrb.mxu2 %v3623_v0  ;;  %v382_v0 = vshrl.u32 %v4009_v6, 16  ;;  %v3617_v6 = vld [vmem:[%s4794_s2 + $0x80] sm:$0xff]  ;;  %v352_v13 = vor.u32 %v350_v62, %v348_v33  ;;  %v356_v14 = vrot.slane %v354_v63, 1  ;;  %v4149_v63 = vld [vmem:[#allocation2 + $0xc] sm:$0xff] }
  0x27   :  { %1175 = vmatpush.bf16.msrb.mxu3 %v3646_v1  ;;  %v386_v1 = vshll.u32 %v4074_v54, 16 }
  0x28   :  { %616 = vmatpush.bf16.msrb.mxu1 %v3607_v3  ;;  %1534 = vmatpush.bf16.msrb.mxu0 %v3654_v8  ;;  %v290_v3 = vshll.u32 %v4076_v55, 16  ;;  %v3602_v8 = vld [vmem:[%s4794_s2 + $0x8] sm:$0xff]  ;;  %v384_v15 = vor.u32 %v382_v0, %v380_v35  ;;  %v357_v29 = vsel %vm265_vm0, %v352_v13, %v356_v14  ;;  %v3694_v35 = vld [vmem:[%s4794_s2 + $0x1f8] sm:$0xff]  ;;  %v727_v13 = vrot.slane %v3940_v28, 1 }
  0x29   :  { %v388_v17 = vrot.slane %v386_v1, 1  ;;  %v3787_v1 = vld [vmem:[#allocation2] sm:$0xf0] }
  0x2a   :  { %825 = vmatpush.bf16.msrb.mxu2 %v3622_v9  ;;  %v3649_v9 = vld [vmem:[%s4794_s2 + $0x108] sm:$0xff]  ;;  %v292_v22 = vrot.slane %v290_v3, 1 }
  0x2b   :  { %1176 = vmatpush.bf16.msrb.mxu3 %v3645_v10  ;;  %v3640_v10 = vld [vmem:[%s4794_s2 + $0xc0] sm:$0xff]  ;;  %v389_v30 = vsel %vm265_vm0, %v384_v15, %v388_v17  ;;  %v1078_v15 = vrot.slane %v4149_v63, 1 }
  0x2c   :  { %617 = vmatpush.bf16.msrb.mxu1 %v3606_v24  ;;  %1535 = vmatpush.bf16.msrb.mxu0 %v3653_v25  ;;  %v3601_v24 = vld [vmem:[%s4794_s2] sm:$0xff]  ;;  %v293_v31 = vsel %vm265_vm0, %v288_v19, %v292_v22 }
  0x2d   :  { %v3648_v25 = vld [vmem:[%s4794_s2 + $0x100] sm:$0xff] }
  0x2e   :  { %826 = vmatpush.bf16.msrb.mxu2 %v3621_v26  ;;  %v164_v26 = vld [vmem:[#allocation2 + $0x80] sm:$0x1] }
  0x2f   :  { %1177 = vmatpush.bf16.msrb.mxu3 %v3644_v27  ;;  %v325_v27 = vsel %vm265_vm0, %v320_v11, %v324_v12  ;;  %v247_v33 = vunpack.c.l.b16 %v164_v26  ;;  %v4160_v26 = vld [vmem:[#allocation2 + $0x14] sm:$0xff] }
  0x30   :  { %618 = vmatpush.bf16.msrb.mxu1 %v3605_v39  ;;  %1536 = vmatpush.bf16.msrb.mxu0 %v3652_v40  ;;  %v3702_v39 = vld [vmem:[%s4794_s2 + $0x238] sm:$0xff]  ;;  %v326_v40 = vshrl.u32 %v4070_v52, 16 }
  0x31   :  { %495 = vmatmul.bf16.gmra.mxu1 %v317_v44  ;;  %515 = vmatmul.bf16.gmra.mxu2 %v349_v45  ;;  %v4129_v38 = vpack.c.b16 %v247_v33, %v247_v33  ;;  %v294_v45 = vshrl.u32 %v4076_v55, 16  ;;  %v1338_v33 = vshll.u32 %v4160_v26, 16 }
  0x32   :  { %827 = vmatpush.bf16.msrb.mxu2 %v3620_v41  ;;  %535 = vmatmul.bf16.gmra.mxu3 %v381_v46  ;;  %v358_v41 = vshrl.u32 %v4072_v53, 16  ;;  %v944_v46 = vld [vmem:[#allocation2 + $0x4] sm:$0xe] }
  0x33   :  { %1178 = vmatpush.bf16.msrb.mxu3 %v3643_v43  ;;  %475 = vmatmul.bf16.gmra.mxu0 %v285_v47  ;;  %v390_v43 = vshrl.u32 %v4074_v54, 16  ;;  %v394_v44 = vshll.u32 %v4129_v38, 16  ;;  %v4139_v47 = vld [vmem:[#allocation2 + $0x8] sm:$0xf] }
  0x34   :  { %619 = vmatpush.bf16.msrb.mxu1 %v3604_v48  ;;  %1537 = vmatpush.bf16.msrb.mxu0 %v3651_v49  ;;  %v328_v48 = vor.u32 %v326_v40, %v324_v12  ;;  %v360_v49 = vor.u32 %v358_v41, %v356_v14 }
  0x36   :  { %828 = vmatpush.bf16.msrb.mxu2 %v3619_v50  ;;  %v392_v50 = vor.u32 %v390_v43, %v388_v17  ;;  %v365_v60 = vsel %vm265_vm0, %v360_v49, %v3964_v42  ;;  %v1326_v42 = vshrl.u32 %v4149_v63, 16 }
  0x37   :  { %1179 = vmatpush.bf16.msrb.mxu3 %v3642_v51  ;;  %v396_v51 = vrot.slane %v394_v44, 1 }
  0x38   :  { %620 = vmatpush.bf16.msrb.mxu1 %v3603_v56  ;;  %1538 = vmatpush.bf16.msrb.mxu0 %v3650_v57  ;;  %v296_v56 = vor.u32 %v294_v45, %v292_v22  ;;  %v1027_v57 = vunpack.c.l.b16 %v944_v46  ;;  %v3627_v45 = vld [vmem:[#allocation2 + $0x1c] sm:$0xff] }
  0x39   :  { %v397_v61 = vsel %vm265_vm0, %v392_v50, %v396_v51  ;;  %v1344_v46 = vshrl.u32 %v3627_v45, 16  ;;  %v731_v51 = vrot.slane %v4076_v55, 1 }
  0x3a   :  { %829 = vmatpush.bf16.msrb.mxu2 %v3618_v58  ;;  %v4799_v58 = vunpack.c.l.b16 %v4139_v47  ;;  %v301_v62 = vsel %vm265_vm0, %v296_v56, %v3947_v32  ;;  %v1082_v56 = vrot.slane %v3627_v45, 1 }
  0x3b   :  { %1180 = vmatpush.bf16.msrb.mxu3 %v3641_v59  ;;  %v333_v59 = vsel %vm265_vm0, %v328_v48, %v3952_v36  ;;  %v1347_v48 = vshll.u32 %v3627_v45, 16  ;;  %v1346_v49 = vrot.slane %v1344_v46, 1  ;;  %v3699_v45 = vld [vmem:[%s4794_s2 + $0x220] sm:$0xff]  ;;  %v737_v46 = vrot.slane %v4005_v4, 1 }
  0x3c   :  { %621 = vmatpush.bf16.msrb.mxu1 %v3602_v8  ;;  %1539 = vmatpush.bf16.msrb.mxu0 %v3649_v9  ;;  %v1060_v0 = vpack.c.b16 %v4799_v58, %v1027_v57  ;;  %v1329_v8 = vshll.u32 %v4149_v63, 16  ;;  %v3789_v9 = vor.u32 %v3788_v2, %v3787_v1 }
  0x3d   :  { %v1349_v50 = vrot.slane %v1347_v48, 2 }
  0x3e   :  { %830 = vmatpush.bf16.msrb.mxu2 %v3617_v6  ;;  %v1318_v36 = vshrl.u32 %v1060_v0, 16  ;;  %v1321_v3 = vshll.u32 %v1060_v0, 16  ;;  %v1331_v11 = vrot.slane %v1329_v8, 2  ;;  %v726_v12 = vrot.slane %v3789_v9, 1 }
  0x3f   :  { %1181 = vmatpush.bf16.msrb.mxu3 %v3640_v10  ;;  %v1328_v10 = vrot.slane %v1326_v42, 1  ;;  %v1077_v14 = vrot.slane %v1060_v0, 1  ;;  %v1350_v57 = vor.u32 %v1349_v50, %v1346_v49  ;;  %v3692_v0 = vld [vmem:[%s4794_s2 + $0x1e8] sm:$0xff]  ;;  %v733_v8 = vrot.slane %v3920_v16, 1 }
  0x40   :  { %622 = vmatpush.bf16.msrb.mxu1 %v3601_v24  ;;  %1540 = vmatpush.bf16.msrb.mxu0 %v3648_v25  ;;  %v1320_v6 = vrot.slane %v1318_v36, 1  ;;  %v1323_v32 = vrot.slane %v1321_v3, 2  ;;  %v728_v22 = vsel %vm725_vm1, %v726_v12, %v727_v13  ;;  %v3661_v36 = vld [vmem:[%s4794_s2 + $0x168] sm:$0xff] }
  0x41   :  { %500 = vmatmul.bf16.gmra.mxu1 %v325_v27  ;;  %520 = vmatmul.bf16.gmra.mxu2 %v357_v29  ;;  %v1332_v19 = vor.u32 %v1331_v11, %v1328_v10  ;;  %v1079_v24 = vsel %vm725_vm1, %v1077_v14, %v1078_v15  ;;  %v3685_v27 = vld [vmem:[%s4794_s2 + $0x1b0] sm:$0xff]  ;;  %v3700_v42 = vld [vmem:[%s4794_s2 + $0x228] sm:$0xff] }
  0x42   :  { %540 = vmatmul.bf16.gmra.mxu3 %v389_v30  ;;  %2124 = vmatpush.bf16.msra.mxu2 %v3686_v34  ;;  %v1324_v17 = vor.u32 %v1323_v32, %v1320_v6  ;;  %v3693_v29 = vld [vmem:[%s4794_s2 + $0x1f0] sm:$0xff]  ;;  %v734_v32 = vsel %vm725_vm1, %v731_v51, %v733_v8 }
  0x43   :  { %480 = vmatmul.bf16.gmra.mxu0 %v293_v31  ;;  %2483 = vmatpush.bf16.msra.mxu3 %v3694_v35  ;;  %v3662_v30 = vld [vmem:[%s4794_s2 + $0x170] sm:$0xff]  ;;  %v1335_v31 = vshrl.u32 %v4160_v26, 16  ;;  %v1340_v35 = vrot.slane %v1338_v33, 2  ;;  %v3683_v33 = vld [vmem:[%s4794_s2 + $0x1a0] sm:$0xff] }
  0x44   :  { %1773 = vmatpush.bf16.msra.mxu1 %v3663_v37  ;;  %2723 = vmatpush.bf16.msra.mxu0 %v3702_v39  ;;  %v1333_v25 = vsel %vm1316_vm2, %v1324_v17, %v1332_v19  ;;  %v729_v37 = vrot.slane %v4011_v7, 1  ;;  %v1080_v39 = vrot.slane %v4160_v26, 1  ;;  %v3629_v12 = vld [vmem:[#allocation2 + $0x2c] sm:$0xff] }
  0x45   :  { %v1337_v34 = vrot.slane %v1335_v31, 1  ;;  %v1365_v14 = vshll.u32 %v3629_v12, 16  ;;  %v3630_v31 = vld [vmem:[#allocation2 + $0x34] sm:$0xff] }
  0x46   :  { %2125 = vmatpush.bf16.msra.mxu2 %v3685_v27  ;;  %v730_v41 = vsel %vm725_vm1, %v727_v13, %v729_v37  ;;  %v1081_v43 = vsel %vm725_vm1, %v1078_v15, %v1080_v39  ;;  %v1362_v13 = vshrl.u32 %v3629_v12, 16  ;;  %v1088_v48 = vrot.slane %v3630_v31, 1 }
  0x47   :  { %2484 = vmatpush.bf16.msra.mxu3 %v3693_v29  ;;  %v1341_v40 = vor.u32 %v1340_v35, %v1337_v34  ;;  %v1367_v17 = vrot.slane %v1365_v14, 2  ;;  %v1371_v34 = vshrl.u32 %v3630_v31, 16  ;;  %v1374_v35 = vshll.u32 %v3630_v31, 16 }
  0x48   :  { %1774 = vmatpush.bf16.msra.mxu1 %v3662_v30  ;;  %v1364_v15 = vrot.slane %v1362_v13, 1 }
  0x49   :  { %v1342_v44 = vsel %vm1316_vm2, %v1332_v19, %v1341_v40  ;;  %v735_v19 = vrot.slane %v3929_v21, 1 }
  0x4b   :  { %2485 = vmatpush.bf16.msra.mxu3 %v3692_v0  ;;  %v736_v27 = vsel %vm725_vm1, %v733_v8, %v735_v19  ;;  %v739_v8 = vrot.slane %v4070_v52, 1 }
  0x4c   :  { %1775 = vmatpush.bf16.msra.mxu1 %v3661_v36 }
  0x51   :  { %505 = vmatmul.bf16.gmra.mxu1 %v333_v59  ;;  %525 = vmatmul.bf16.gmra.mxu2 %v365_v60  ;;  %v732_v59 = vsel %vm725_vm1, %v729_v37, %v731_v51  ;;  %v1083_v60 = vsel %vm725_vm1, %v1080_v39, %v1082_v56 }
  0x52   :  { %545 = vmatmul.bf16.gmra.mxu3 %v397_v61  ;;  %v1351_v61 = vsel %vm1316_vm2, %v1341_v40, %v1350_v57 }
  0x53   :  { %485 = vmatmul.bf16.gmra.mxu0 %v301_v62  ;;  %v3628_v62 = vld [vmem:[#allocation2 + $0x24] sm:$0xff] }
  0x54   :  { %v1353_v1 = vshrl.u32 %v3628_v62, 16  ;;  %v1356_v2 = vshll.u32 %v3628_v62, 16  ;;  %v1084_v9 = vrot.slane %v3628_v62, 1  ;;  %v3631_v62 = vld [vmem:[#allocation2 + $0x3c] sm:$0xff] }
  0x55   :  { %v1383_v0 = vshll.u32 %v3631_v62, 16 }
  0x56   :  { %v1358_v3 = vrot.slane %v1356_v2, 2  ;;  %v1085_v10 = vsel %vm725_vm1, %v1082_v56, %v1084_v9 }
  0x61   :  { %623 = vmatmul.bf16.vlgmr.msrb.gmra.mxu1 %v3927_v20  ;;  %831 = vmatmul.bf16.vlgmr.msrb.gmra.mxu2 %v728_v22  ;;  %v3701_v20 = vld [vmem:[%s4794_s2 + $0x230] sm:$0xff]  ;;  %v1086_v22 = vrot.slane %v3629_v12, 1 }
  0x62   :  { %1182 = vmatmul.bf16.vlgmr.msrb.gmra.mxu3 %v1079_v24  ;;  %2724 = vmatpush.bf16.msra.mxu0 %v3701_v20  ;;  %v1368_v24 = vor.u32 %v1367_v17, %v1364_v15  ;;  %v3691_v20 = vld [vmem:[%s4794_s2 + $0x1e0] sm:$0xff]  ;;  %v3682_v17 = vld [vmem:[%s4794_s2 + $0x198] sm:$0xff] }
  0x63   :  { %1541 = vmatmul.bf16.vlgmr.msrb.gmra.mxu0 %v1333_v25  ;;  %v1087_v30 = vsel %vm725_vm1, %v1084_v9, %v1086_v22  ;;  %2486 = vmatpush.bf16.msra.mxu3 %v3691_v20  ;;  %v1090_v9 = vrot.slane %v3631_v62, 1  ;;  %v3632_v15 = vld [vmem:[#allocation2 + $0x44] sm:$0xff]  ;;  %v3659_v20 = vld [vmem:[%s4794_s2 + $0x158] sm:$0xff] }
  0x65   :  { %v1091_v13 = vsel %vm725_vm1, %v1088_v48, %v1090_v9 }
  0x66   :  { %2725 = vmatpush.bf16.msra.mxu0 %v3700_v42  ;;  %v1385_v42 = vrot.slane %v1383_v0, 2 }
  0x6a   :  { %2726 = vmatpush.bf16.msra.mxu0 %v3699_v45 }
  0x71   :  { %628 = vmatmul.bf16.gmra.mxu1 %v3940_v28  ;;  %836 = vmatmul.bf16.gmra.mxu2 %v730_v41  ;;  %v3684_v28 = vld [vmem:[%s4794_s2 + $0x1a8] sm:$0xff] }
  0x72   :  { %1187 = vmatmul.bf16.gmra.mxu3 %v1081_v43  ;;  %2126 = vmatpush.bf16.msra.mxu2 %v3684_v28  ;;  %v1373_v43 = vrot.slane %v1371_v34, 1  ;;  %v1380_v28 = vshrl.u32 %v3631_v62, 16  ;;  %v3698_v34 = vld [vmem:[%s4794_s2 + $0x218] sm:$0xff] }
  0x73   :  { %1546 = vmatmul.bf16.gmra.mxu0 %v1342_v44  ;;  %v1376_v44 = vrot.slane %v1374_v35, 2  ;;  %v741_v35 = vrot.slane %v3925_v18, 1 }
  0x74   :  { %2727 = vmatpush.bf16.msra.mxu0 %v3698_v34  ;;  %v3681_v34 = vld [vmem:[%s4794_s2 + $0x190] sm:$0xff] }
  0x75   :  { %v1377_v49 = vor.u32 %v1376_v44, %v1373_v43 }
  0x76   :  { %2127 = vmatpush.bf16.msra.mxu2 %v3683_v33 }
  0x7a   :  { %2128 = vmatpush.bf16.msra.mxu2 %v3682_v17 }
  0x7e   :  { %2129 = vmatpush.bf16.msra.mxu2 %v3681_v34 }
  0x81   :  { %633 = vmatmul.bf16.gmra.mxu1 %v4011_v7  ;;  %841 = vmatmul.bf16.gmra.mxu2 %v732_v59  ;;  %v1355_v7 = vrot.slane %v1353_v1, 1 }
  0x82   :  { %1192 = vmatmul.bf16.gmra.mxu3 %v1083_v60  ;;  %v1089_v60 = vsel %vm725_vm1, %v1086_v22, %v1088_v48  ;;  %v1389_v22 = vshrl.u32 %v3632_v15, 16  ;;  %v742_v48 = vsel %vm725_vm1, %v739_v8, %v741_v35 }
  0x83   :  { %1551 = vmatmul.bf16.gmra.mxu0 %v1351_v61  ;;  %v1359_v6 = vor.u32 %v1358_v3, %v1355_v7  ;;  %v1378_v61 = vsel %vm1316_vm2, %v1368_v24, %v1377_v49  ;;  %v1382_v3 = vrot.slane %v1380_v28, 1 }
  0x84   :  { %v1391_v31 = vrot.slane %v1389_v22, 1 }
  0x85   :  { %v1360_v11 = vsel %vm1316_vm2, %v1350_v57, %v1359_v6  ;;  %v738_v57 = vsel %vm725_vm1, %v735_v19, %v737_v46  ;;  %v3690_v19 = vld [vmem:[%s4794_s2 + $0x1d8] sm:$0xff] }
  0x86   :  { %2487 = vmatpush.bf16.msra.mxu3 %v3690_v19 }
  0x91   :  { %638 = vmatmul.bf16.gmra.mxu1 %v4076_v55  ;;  %846 = vmatmul.bf16.gmra.mxu2 %v734_v32  ;;  %v1369_v55 = vsel %vm1316_vm2, %v1359_v6, %v1368_v24  ;;  %v1386_v6 = vor.u32 %v1385_v42, %v1382_v3  ;;  %v1392_v24 = vshll.u32 %v3632_v15, 16 }
  0x92   :  { %1197 = vmatmul.bf16.gmra.mxu3 %v1085_v10 }
  0x93   :  { %1556 = vmatmul.bf16.gmra.mxu0 %v1360_v11  ;;  %v740_v11 = vsel %vm725_vm1, %v737_v46, %v739_v8  ;;  %v1387_v14 = vsel %vm1316_vm2, %v1377_v49, %v1386_v6  ;;  %v1394_v33 = vrot.slane %v1392_v24, 2 }
  0x95   :  { %v1395_v43 = vor.u32 %v1394_v33, %v1391_v31 }
  0x9e   :  { %v4206_v25 = vpop.f32.mrf.mxu1 }
  0xa0   :  { %v4209_v29 = vpop.f32.mrf.mxu0 }
  0xa1   :  { %643 = vmatmul.bf16.gmra.mxu1 %v3920_v16  ;;  %851 = vmatmul.bf16.gmra.mxu2 %v736_v27  ;;  %v3660_v16 = vld [vmem:[%s4794_s2 + $0x160] sm:$0xff] }
  0xa2   :  { %1202 = vmatmul.bf16.gmra.mxu3 %v1087_v30  ;;  %1776 = vmatpush.bf16.msra.mxu1 %v3660_v16  ;;  %v1092_v16 = vrot.slane %v3632_v15, 1 }
  0xa3   :  { %1561 = vmatmul.bf16.gmra.mxu0 %v1369_v55 }
  0xa4   :  { %v4220_v37 = vpop.f32.mrf.mxu2 }
  0xa5   :  { %v4222_v39 = vpop.f32.mrf.mxu3 }
  0xa6   :  { %v4227_v40 = vpop.f32.mrf.mxu1  ;;  %1777 = vmatpush.bf16.msra.mxu1 %v3659_v20  ;;  %v4318_v20 = vld [vmem:[#allocation2 + $0x54] sm:$0xff] }
  0xa8   :  { %v4229_v41 = vpop.f32.mrf.mxu0 }
  0xac   :  { %v4235_v50 = vpop.f32.mrf.mxu2 }
  0xad   :  { %v4237_v51 = vpop.f32.mrf.mxu3 }
  0xae   :  { %v4239_v56 = vpop.f32.mrf.mxu1 }
  0xb0   :  { %v4242_v59 = vpop.f32.mrf.mxu0 }
  0xb1   :  { %648 = vmatmul.bf16.gmra.mxu1 %v3929_v21  ;;  %856 = vmatmul.bf16.gmra.mxu2 %v738_v57  ;;  %v1093_v57 = vsel %vm725_vm1, %v1090_v9, %v1092_v16 }
  0xb2   :  { %1207 = vmatmul.bf16.gmra.mxu3 %v1089_v60  ;;  %v1396_v60 = vsel %vm1316_vm2, %v1386_v6, %v1395_v43  ;;  %v743_v6 = vrot.slane %v3932_v23, 1 }
  0xb3   :  { %1566 = vmatmul.bf16.gmra.mxu0 %v1378_v61  ;;  %v3633_v61 = vld [vmem:[#allocation2 + $0x4c] sm:$0xff] }
  0xb4   :  { %v4247_v1 = vpop.f32.mrf.mxu2  ;;  %v1398_v62 = vshrl.u32 %v3633_v61, 16  ;;  %v1401_v28 = vshll.u32 %v3633_v61, 16  ;;  %v744_v19 = vsel %vm725_vm1, %v741_v35, %v743_v6  ;;  %v1407_v35 = vshrl.u32 %v4318_v20, 16 }
  0xb5   :  { %v4249_v2 = vpop.f32.mrf.mxu3 }
  0xb6   :  { %v4251_v36 = vpop.f32.mrf.mxu1  ;;  %v1403_v9 = vrot.slane %v1401_v28, 2  ;;  %v1409_v28 = vrot.slane %v1407_v35, 1 }
  0xb8   :  { %v4253_v7 = vpop.f32.mrf.mxu0 }
  0xbc   :  { %v4256_v21 = vpop.f32.mrf.mxu2 }
  0xbd   :  { %v4258_v32 = vpop.f32.mrf.mxu3 }
  0xbe   :  { %v4260_v10 = vpop.f32.mrf.mxu1 }
  0xc0   :  { %v4263_v12 = vpop.f32.mrf.mxu0 }
  0xc1   :  { %653 = vmatmul.bf16.gmra.mxu1 %v4005_v4  ;;  %861 = vmatmul.bf16.gmra.mxu2 %v740_v11  ;;  %v1400_v11 = vrot.slane %v1398_v62, 1 }
  0xc2   :  { %1212 = vmatmul.bf16.gmra.mxu3 %v1091_v13  ;;  %v1094_v13 = vrot.slane %v3633_v61, 1 }
  0xc3   :  { %1571 = vmatmul.bf16.gmra.mxu0 %v1387_v14  ;;  %v1404_v14 = vor.u32 %v1403_v9, %v1400_v11  ;;  %v3658_v9 = vld [vmem:[%s4794_s2 + $0x150] sm:$0xff] }
  0xc4   :  { %v4274_v27 = vpop.f32.mrf.mxu2  ;;  %v1095_v31 = vsel %vm725_vm1, %v1092_v16, %v1094_v13  ;;  %v1410_v16 = vshll.u32 %v4318_v20, 16  ;;  %1778 = vmatpush.bf16.msra.mxu1 %v3658_v9 }
  0xc5   :  { %v4276_v30 = vpop.f32.mrf.mxu3  ;;  %v1405_v33 = vsel %vm1316_vm2, %v1395_v43, %v1404_v14 }
  0xc6   :  { %v4278_v4 = vpop.f32.mrf.mxu1  ;;  %v1412_v11 = vrot.slane %v1410_v16, 2 }
  0xc8   :  { %v4280_v55 = vpop.f32.mrf.mxu0 }
  0xcc   :  { %v4289_v44 = vpop.f32.mrf.mxu2 }
  0xcd   :  { %v4291_v45 = vpop.f32.mrf.mxu3 }
  0xce   :  { %v4293_v46 = vpop.f32.mrf.mxu1 }
  0xd0   :  { %v4296_v49 = vpop.f32.mrf.mxu0 }
  0xd1   :  { %658 = vmatmul.bf16.gmra.mxu1 %v4070_v52  ;;  %866 = vmatmul.bf16.gmra.mxu2 %v742_v48 }
  0xd2   :  { %1217 = vmatmul.bf16.gmra.mxu3 %v1093_v57 }
  0xd3   :  { %1576 = vmatmul.bf16.gmra.mxu0 %v1396_v60 }
  0xd4   :  { %v4301_v0 = vpop.f32.mrf.mxu2 }
  0xd5   :  { %v4303_v3 = vpop.f32.mrf.mxu3 }
  0xd6   :  { %v4305_v42 = vpop.f32.mrf.mxu1 }
  0xd8   :  { %v4307_v8 = vpop.f32.mrf.mxu0 }
  0xdc   :  { %v4310_v52 = vpop.f32.mrf.mxu2 }
  0xdd   :  { %v4312_v15 = vpop.f32.mrf.mxu3 }
  0xde   :  { %v624_v17 = vpop.f32.mrf.mxu1 }
  0xdf   :  { %v625_v22 = vadd.f32 %v624_v17, %v4209_v29  ;;  %v3689_v29 = vld [vmem:[%s4794_s2 + $0x1d0] sm:$0xff] }
  0xe0   :  { %v1542_v24 = vpop.f32.mrf.mxu0  ;;  %2488 = vmatpush.bf16.msra.mxu3 %v3689_v29  ;;  %v3697_v17 = vld [vmem:[%s4794_s2 + $0x210] sm:$0xff] }
  0xe1   :  { %663 = vmatmul.bf16.gmra.mxu1 %v3925_v18  ;;  %871 = vmatmul.bf16.gmra.mxu2 %v744_v19 }
  0xe2   :  { %1222 = vmatmul.bf16.gmra.mxu3 %v1095_v31  ;;  %2728 = vmatpush.bf16.msra.mxu0 %v3697_v17  ;;  %v1096_v31 = vrot.slane %v4318_v20, 1 }
  0xe3   :  { %1581 = vmatmul.bf16.gmra.mxu0 %v1405_v33 }
  0xe4   :  { %v832_v43 = vpop.f32.mrf.mxu2 }
  0xe5   :  { %v912_v48 = vadd.f32 %v832_v43, %v625_v22  ;;  %v1183_v18 = vpop.f32.mrf.mxu3  ;;  %v745_v22 = vrot.slane %v4007_v5, 1 }
  0xe6   :  { %v626_v57 = vpop.f32.mrf.mxu1 }
  0xe7   :  { %v1263_v60 = vadd.f32 %v1183_v18, %v912_v48  ;;  %v627_v61 = vadd.f32 %v626_v57, %v4229_v41  ;;  %v1413_v41 = vor.u32 %v1412_v11, %v1409_v28  ;;  %v746_v16 = vsel %vm725_vm1, %v743_v6, %v745_v22 }
  0xe8   :  { %v1544_v62 = vpop.f32.mrf.mxu0  ;;  %v1097_v57 = vsel %vm725_vm1, %v1094_v13, %v1096_v31 }
  0xe9   :  { %v4336_v19 = vadd.f32 %v1542_v24, %v1263_v60  ;;  %v1414_v24 = vsel %vm1316_vm2, %v1404_v14, %v1413_v41  ;;  %v4344_v60 = vld [vmem:[#allocation2 + $0x5c] sm:$0xff] }
  0xea   :  { %v1419_v6 = vshll.u32 %v4344_v60, 16 }
  0xec   :  { %v834_v33 = vpop.f32.mrf.mxu2 }
  0xed   :  { %v913_v34 = vadd.f32 %v834_v33, %v627_v61  ;;  %v1185_v29 = vpop.f32.mrf.mxu3  ;;  %v1416_v61 = vshrl.u32 %v4344_v60, 16 }
  0xee   :  { %v629_v35 = vpop.f32.mrf.mxu1 }
  0xef   :  { %v1264_v43 = vadd.f32 %v1185_v29, %v913_v34  ;;  %v630_v48 = vadd.f32 %v629_v35, %v4242_v59  ;;  %v1418_v33 = vrot.slane %v1416_v61, 1  ;;  %v1421_v34 = vrot.slane %v1419_v6, 2  ;;  %v4360_v6 = vld [vmem:[#allocation2 + $0x64] sm:$0xff] }
  0xf0   :  { %v1547_v18 = vpop.f32.mrf.mxu0  ;;  %v1098_v29 = vrot.slane %v4344_v60, 1 }
  0xf1   :  { %668 = vmatmul.bf16.gmra.mxu1 %v3932_v23  ;;  %876 = vmatmul.bf16.gmra.mxu2 %v746_v16  ;;  %v4347_v20 = vadd.f32 %v1544_v62, %v1264_v43  ;;  %v747_v62 = vrot.slane %v4072_v53, 1  ;;  %v1422_v35 = vor.u32 %v1421_v34, %v1418_v33 }
  0xf2   :  { %1227 = vmatmul.bf16.gmra.mxu3 %v1097_v57  ;;  %v1099_v61 = vsel %vm725_vm1, %v1096_v31, %v1098_v29  ;;  %v1425_v31 = vshrl.u32 %v4360_v6, 16 }
  0xf3   :  { %1586 = vmatmul.bf16.gmra.mxu0 %v1414_v24 }
  0xf4   :  { %v837_v28 = vpop.f32.mrf.mxu2  ;;  %v1427_v34 = vrot.slane %v1425_v31, 1 }
  0xf5   :  { %v914_v59 = vadd.f32 %v837_v28, %v630_v48  ;;  %v1188_v11 = vpop.f32.mrf.mxu3  ;;  %v748_v48 = vsel %vm725_vm1, %v745_v22, %v747_v62  ;;  %v3680_v22 = vld [vmem:[%s4794_s2 + $0x188] sm:$0xff] }
  0xf6   :  { %v631_v9 = vpop.f32.mrf.mxu1  ;;  %2130 = vmatpush.bf16.msra.mxu2 %v3680_v22 }
  0xf7   :  { %v1265_v13 = vadd.f32 %v1188_v11, %v914_v59  ;;  %v632_v14 = vadd.f32 %v631_v9, %v4253_v7 }
  0xf8   :  { %v1549_v17 = vpop.f32.mrf.mxu0 }
  0xf9   :  { %v4352_v23 = vadd.f32 %v1547_v18, %v1265_v13  ;;  %v1423_v18 = vsel %vm1316_vm2, %v1413_v41, %v1422_v35  ;;  %v1428_v41 = vshll.u32 %v4360_v6, 16 }
  0xfc   :  { %v839_v16 = vpop.f32.mrf.mxu2 }
  0xfd   :  { %v915_v43 = vadd.f32 %v839_v16, %v632_v14  ;;  %v1190_v57 = vpop.f32.mrf.mxu3  ;;  %v1430_v16 = vrot.slane %v1428_v41, 2 }
  0xfe   :  { %v634_v24 = vpop.f32.mrf.mxu1 }
  0xff   :  { %v1266_v28 = vadd.f32 %v1190_v57, %v915_v43  ;;  %v635_v59 = vadd.f32 %v634_v24, %v4263_v12  ;;  %v3688_v12 = vld [vmem:[%s4794_s2 + $0x1c8] sm:$0xff] }
 0x100   :  { %v1552_v7 = vpop.f32.mrf.mxu0  ;;  %2489 = vmatpush.bf16.msra.mxu3 %v3688_v12  ;;  %v3657_v43 = vld [vmem:[%s4794_s2 + $0x148] sm:$0xff] }
 0x101   :  { %673 = vmatmul.bf16.gmra.mxu1 %v4007_v5  ;;  %881 = vmatmul.bf16.gmra.mxu2 %v748_v48  ;;  %v4363_v60 = vadd.f32 %v1549_v17, %v1266_v28  ;;  %v3696_v57 = vld [vmem:[%s4794_s2 + $0x208] sm:$0xff]  ;;  %v3830_v48 = vld [vmem:[#allocation2 + $0x60] sm:$0xff] }
 0x102   :  { %1232 = vmatmul.bf16.gmra.mxu3 %v1099_v61  ;;  %1779 = vmatpush.bf16.msra.mxu1 %v3657_v43  ;;  %v749_v28 = vrot.slane %v3830_v48, 1 }
 0x103   :  { %1591 = vmatmul.bf16.gmra.mxu0 %v1423_v18 }
 0x104   :  { %v842_v11 = vpop.f32.mrf.mxu2  ;;  %2729 = vmatpush.bf16.msra.mxu0 %v3696_v57  ;;  %v750_v31 = vsel %vm725_vm1, %v747_v62, %v749_v28 }
 0x105   :  { %v916_v5 = vadd.f32 %v842_v11, %v635_v59  ;;  %v1193_v9 = vpop.f32.mrf.mxu3  ;;  %v1100_v59 = vrot.slane %v4360_v6, 1 }
 0x106   :  { %v636_v13 = vpop.f32.mrf.mxu1 }
 0x107   :  { %v1267_v14 = vadd.f32 %v1193_v9, %v916_v5  ;;  %v637_v17 = vadd.f32 %v636_v13, %v4280_v55  ;;  %v1431_v55 = vor.u32 %v1430_v16, %v1427_v34  ;;  %v1101_v9 = vsel %vm725_vm1, %v1098_v29, %v1100_v59  ;;  %v4387_v13 = vld [vmem:[#allocation2 + $0x6c] sm:$0xff] }
 0x108   :  { %v1554_v33 = vpop.f32.mrf.mxu0  ;;  %v1437_v62 = vshll.u32 %v4387_v13, 16 }
 0x109   :  { %v4380_v24 = vadd.f32 %v1552_v7, %v1267_v14  ;;  %v1432_v7 = vsel %vm1316_vm2, %v1422_v35, %v1431_v55  ;;  %v1434_v14 = vshrl.u32 %v4387_v13, 16 }
 0x10b   :  { %v1436_v57 = vrot.slane %v1434_v14, 1 }
 0x10c   :  { %v844_v61 = vpop.f32.mrf.mxu2 }
 0x10d   :  { %v917_v18 = vadd.f32 %v844_v61, %v637_v17  ;;  %v1195_v22 = vpop.f32.mrf.mxu3  ;;  %v1439_v61 = vrot.slane %v1437_v62, 2  ;;  %v4401_v62 = vld [vmem:[#allocation2 + $0x74] sm:$0xff] }
 0x10e   :  { %v639_v12 = vpop.f32.mrf.mxu1 }
 0x10f   :  { %v1268_v41 = vadd.f32 %v1195_v22, %v917_v18  ;;  %v640_v11 = vadd.f32 %v639_v12, %v4296_v49  ;;  %v1102_v22 = vrot.slane %v4387_v13, 1  ;;  %v1440_v12 = vor.u32 %v1439_v61, %v1436_v57 }
 0x110   :  { %v1557_v5 = vpop.f32.mrf.mxu0 }
 0x111   :  { %678 = vmatmul.bf16.gmra.mxu1 %v4072_v53  ;;  %886 = vmatmul.bf16.gmra.mxu2 %v750_v31  ;;  %v4390_v6 = vadd.f32 %v1554_v33, %v1268_v41  ;;  %v3831_v33 = vld [vmem:[#allocation2 + $0x68] sm:$0xff]  ;;  %v1441_v14 = vsel %vm1316_vm2, %v1431_v55, %v1440_v12 }
 0x112   :  { %1237 = vmatmul.bf16.gmra.mxu3 %v1101_v9  ;;  %v751_v18 = vrot.slane %v3831_v33, 1 }
 0x113   :  { %1596 = vmatmul.bf16.gmra.mxu0 %v1432_v7 }
 0x114   :  { %v847_v17 = vpop.f32.mrf.mxu2 }
 0x115   :  { %v918_v49 = vadd.f32 %v847_v17, %v640_v11  ;;  %v1198_v34 = vpop.f32.mrf.mxu3  ;;  %v752_v11 = vsel %vm725_vm1, %v749_v28, %v751_v18  ;;  %v3679_v28 = vld [vmem:[%s4794_s2 + $0x180] sm:$0xff] }
 0x116   :  { %v641_v16 = vpop.f32.mrf.mxu1  ;;  %2131 = vmatpush.bf16.msra.mxu2 %v3679_v28 }
 0x117   :  { %v1269_v29 = vadd.f32 %v1198_v34, %v918_v49  ;;  %v642_v35 = vadd.f32 %v641_v16, %v4307_v8  ;;  %v1103_v8 = vsel %vm725_vm1, %v1100_v59, %v1102_v22  ;;  %v3687_v59 = vld [vmem:[%s4794_s2 + $0x1c0] sm:$0xff]  ;;  %v1443_v34 = vshrl.u32 %v4401_v62, 16 }
 0x118   :  { %v1559_v43 = vpop.f32.mrf.mxu0  ;;  %2490 = vmatpush.bf16.msra.mxu3 %v3687_v59 }
 0x119   :  { %v4395_v53 = vadd.f32 %v1557_v5, %v1269_v29  ;;  %v2987_v5 = vld [vmem:[%s4796_s1 + $0x84] sm:$0xf] }
 0x11a   :  { %113 = vst [vmem:[#allocation2 + $0x84] sm:$0xf] %v2987_v5 }
 0x11c   :  { %v849_v31 = vpop.f32.mrf.mxu2 }
 0x11d   :  { %v919_v41 = vadd.f32 %v849_v31, %v642_v35  ;;  %v1200_v9 = vpop.f32.mrf.mxu3  ;;  %v1445_v31 = vrot.slane %v1443_v34, 1 }
 0x11e   :  { %v644_v7 = vpop.f32.mrf.mxu1 }
 0x11f   :  { %v1270_v17 = vadd.f32 %v1200_v9, %v919_v41  ;;  %v645_v55 = vadd.f32 %v644_v7, %v4206_v25  ;;  %v3656_v9 = vld [vmem:[%s4794_s2 + $0x140] sm:$0xff] }
 0x120   :  { %v1562_v49 = vpop.f32.mrf.mxu0  ;;  %v3695_v25 = vld [vmem:[%s4794_s2 + $0x200] sm:$0xff]  ;;  %1780 = vmatpush.bf16.msra.mxu1 %v3656_v9 }
 0x121   :  { %683 = vmatmul.bf16.gmra.mxu1 %v3830_v48  ;;  %891 = vmatmul.bf16.gmra.mxu2 %v752_v11  ;;  %v4406_v13 = vadd.f32 %v1559_v43, %v1270_v17  ;;  %v1446_v48 = vshll.u32 %v4401_v62, 16  ;;  %v3832_v11 = vld [vmem:[#allocation2 + $0x70] sm:$0xff] }
 0x122   :  { %1242 = vmatmul.bf16.gmra.mxu3 %v1103_v8  ;;  %2730 = vmatpush.bf16.msra.mxu0 %v3695_v25  ;;  %v753_v17 = vrot.slane %v3832_v11, 1 }
 0x123   :  { %1601 = vmatmul.bf16.gmra.mxu0 %v1441_v14  ;;  %v1448_v41 = vrot.slane %v1446_v48, 2  ;;  %v1104_v14 = vrot.slane %v4401_v62, 1 }
 0x124   :  { %v852_v16 = vpop.f32.mrf.mxu2  ;;  %v754_v48 = vsel %vm725_vm1, %v751_v18, %v753_v17 }
 0x125   :  { %v920_v29 = vadd.f32 %v852_v16, %v645_v55  ;;  %v1203_v35 = vpop.f32.mrf.mxu3  ;;  %v1449_v5 = vor.u32 %v1448_v41, %v1445_v31 }
 0x126   :  { %v646_v43 = vpop.f32.mrf.mxu1 }
 0x127   :  { %v1271_v57 = vadd.f32 %v1203_v35, %v920_v29  ;;  %v647_v8 = vadd.f32 %v646_v43, %v4227_v40  ;;  %v1105_v35 = vsel %vm725_vm1, %v1102_v22, %v1104_v14 }
 0x128   :  { %v1564_v61 = vpop.f32.mrf.mxu0 }
 0x129   :  { %v4423_v7 = vadd.f32 %v1562_v49, %v1271_v57  ;;  %v1450_v49 = vsel %vm1316_vm2, %v1440_v12, %v1449_v5  ;;  %v4430_v57 = vld [vmem:[#allocation2 + $0x7c] sm:$0xff] }
 0x12a   :  { %v1452_v43 = vshrl.u32 %v4430_v57, 16  ;;  %v1455_v18 = vshll.u32 %v4430_v57, 16 }
 0x12c   :  { %v854_v28 = vpop.f32.mrf.mxu2 }
 0x12d   :  { %v921_v59 = vadd.f32 %v854_v28, %v647_v8  ;;  %v1205_v55 = vpop.f32.mrf.mxu3  ;;  %v1454_v8 = vrot.slane %v1452_v43, 1  ;;  %v1457_v28 = vrot.slane %v1455_v18, 2 }
 0x12e   :  { %v649_v34 = vpop.f32.mrf.mxu1 }
 0x12f   :  { %v1272_v16 = vadd.f32 %v1205_v55, %v921_v59  ;;  %v650_v62 = vadd.f32 %v649_v34, %v4239_v56  ;;  %v1106_v56 = vrot.slane %v4430_v57, 1  ;;  %v1458_v34 = vor.u32 %v1457_v28, %v1454_v8 }
 0x130   :  { %v1567_v29 = vpop.f32.mrf.mxu0 }
 0x131   :  { %688 = vmatmul.bf16.gmra.mxu1 %v3831_v33  ;;  %896 = vmatmul.bf16.gmra.mxu2 %v754_v48  ;;  %v4432_v40 = vadd.f32 %v1564_v61, %v1272_v16  ;;  %v1295_v33 = vld [vmem:[#allocation2 + $0x84] sm:$0x3]  ;;  %v755_v61 = vrot.slane %v4074_v54, 1  ;;  %v1107_v18 = vsel %vm725_vm1, %v1104_v14, %v1106_v56 }
 0x132   :  { %1247 = vmatmul.bf16.gmra.mxu3 %v1105_v35  ;;  %v1314_v48 = vunpack.c.l.b16 %v1295_v33  ;;  %v976_v54 = vld [vmem:[#allocation2 + $0x84] sm:$0x1] }
 0x133   :  { %1606 = vmatmul.bf16.gmra.mxu0 %v1450_v49 }
 0x134   :  { %v857_v31 = vpop.f32.mrf.mxu2 }
 0x135   :  { %v922_v41 = vadd.f32 %v857_v31, %v650_v62  ;;  %v1208_v9 = vpop.f32.mrf.mxu3  ;;  %v756_v31 = vsel %vm725_vm1, %v753_v17, %v755_v61 }
 0x136   :  { %v651_v22 = vpop.f32.mrf.mxu1 }
 0x137   :  { %v1273_v25 = vadd.f32 %v1208_v9, %v922_v41  ;;  %v652_v55 = vadd.f32 %v651_v22, %v4251_v36  ;;  %v4445_v9 = vpack.c.b16 %v1314_v48, %v1314_v48  ;;  %v1059_v22 = vunpack.c.l.b16 %v976_v54 }
 0x138   :  { %v1569_v12 = vpop.f32.mrf.mxu0 }
 0x139   :  { %v4437_v59 = vadd.f32 %v1567_v29, %v1273_v25  ;;  %v1459_v29 = vsel %vm1316_vm2, %v1449_v5, %v1458_v34  ;;  %v1461_v17 = vshrl.u32 %v4445_v9, 16  ;;  %v1464_v25 = vshll.u32 %v4445_v9, 16 }
 0x13a   :  { %v1076_v48 = vpack.c.b16 %v1059_v22, %v1059_v22 }
 0x13c   :  { %v859_v16 = vpop.f32.mrf.mxu2 }
 0x13d   :  { %v923_v35 = vadd.f32 %v859_v16, %v652_v55  ;;  %v1210_v49 = vpop.f32.mrf.mxu3  ;;  %v1466_v16 = vrot.slane %v1464_v25, 2 }
 0x13e   :  { %v654_v62 = vpop.f32.mrf.mxu1 }
 0x13f   :  { %v1274_v41 = vadd.f32 %v1210_v49, %v923_v35  ;;  %v655_v57 = vadd.f32 %v654_v62, %v4260_v10  ;;  %v1894_v35 = vld [vmem:[#allocation2 + $0x8] sm:$0xc]  ;;  %v1895_v49 = vld [vmem:[#allocation2 + $0xc] sm:$0xf]  ;;  %v757_v10 = vrot.slane %v4129_v38, 1 }
 0x140   :  { %v1572_v43 = vpop.f32.mrf.mxu0  ;;  %v1977_v62 = vunpack.c.l.b16 %v1894_v35  ;;  %v2604_v35 = vld [vmem:[#allocation2 + $0x8] sm:$0x8] }
 0x141   :  { %693 = vmatmul.bf16.gmra.mxu1 %v3832_v11  ;;  %901 = vmatmul.bf16.gmra.mxu2 %v756_v31  ;;  %v4447_v36 = vadd.f32 %v1569_v12, %v1274_v41  ;;  %v1463_v11 = vrot.slane %v1461_v17, 1  ;;  %v1978_v31 = vunpack.c.l.b16 %v1895_v49  ;;  %v758_v22 = vsel %vm725_vm1, %v755_v61, %v757_v10  ;;  %v1654_v17 = vld [vmem:[#allocation2 + $0x4] sm:$0xc] }
 0x142   :  { %1252 = vmatmul.bf16.gmra.mxu3 %v1107_v18  ;;  %v1108_v18 = vrot.slane %v1076_v48, 1 }
 0x143   :  { %1611 = vmatmul.bf16.gmra.mxu0 %v1459_v29  ;;  %v1467_v29 = vor.u32 %v1466_v16, %v1463_v11  ;;  %v2010_v25 = vpack.c.b16 %v1978_v31, %v1977_v62 }
 0x144   :  { %v862_v8 = vpop.f32.mrf.mxu2 }
 0x145   :  { %v924_v14 = vadd.f32 %v862_v8, %v655_v57  ;;  %v1213_v28 = vpop.f32.mrf.mxu3  ;;  %v1468_v38 = vsel %vm1316_vm2, %v1458_v34, %v1467_v29  ;;  %v2268_v61 = vshrl.u32 %v2010_v25, 16  ;;  %v2271_v11 = vshll.u32 %v2010_v25, 16 }
 0x146   :  { %v656_v5 = vpop.f32.mrf.mxu1  ;;  %v2623_v34 = vunpack.c.l.b16 %v2604_v35  ;;  %v2027_v35 = vrot.slane %v2010_v25, 2 }
 0x147   :  { %v1275_v33 = vadd.f32 %v1213_v28, %v924_v14  ;;  %v657_v41 = vadd.f32 %v656_v5, %v4278_v4  ;;  %v3833_v4 = vld [vmem:[#allocation2 + $0x78] sm:$0xff]  ;;  %v1673_v5 = vunpack.c.l.b16 %v1654_v17 }
 0x148   :  { %v1574_v55 = vpop.f32.mrf.mxu0 }
 0x149   :  { %v4452_v12 = vadd.f32 %v1572_v43, %v1275_v33  ;;  %v1109_v43 = vsel %vm725_vm1, %v1106_v56, %v1108_v18  ;;  %v4459_v33 = vld [vmem:[#allocation2 + $0x10] sm:$0xff]  ;;  %v4800_v18 = vunpack.c.l.b16 %v4139_v47 }
 0x14a   :  { %v2276_v49 = vshrl.u32 %v4459_v33, 16  ;;  %v2279_v56 = vshll.u32 %v4459_v33, 16 }
 0x14b   :  { %v1674_v29 = vpack.c.b16 %v4800_v18, %v1673_v5 }
 0x14c   :  { %v864_v54 = vpop.f32.mrf.mxu2  ;;  %v2278_v17 = vrot.slane %v2276_v49, 2 }
 0x14d   :  { %v925_v57 = vadd.f32 %v864_v54, %v657_v41  ;;  %v1215_v8 = vpop.f32.mrf.mxu3 }
 0x14e   :  { %v659_v14 = vpop.f32.mrf.mxu1 }
 0x14f   :  { %v1276_v28 = vadd.f32 %v1215_v8, %v925_v57  ;;  %v660_v16 = vadd.f32 %v659_v14, %v4293_v46  ;;  %v2273_v57 = vrot.slane %v2271_v11, 3  ;;  %v1676_v46 = vrot.slane %v1674_v29, 2 }
 0x150   :  { %v1577_v58 = vpop.f32.mrf.mxu0  ;;  %v2627_v11 = vrot.slane %v4459_v33, 3 }
 0x151   :  { %698 = vmatmul.bf16.gmra.mxu1 %v3833_v4  ;;  %906 = vmatmul.bf16.gmra.mxu2 %v758_v22  ;;  %v4461_v48 = vadd.f32 %v1574_v55, %v1276_v28  ;;  %v2270_v55 = vrot.slane %v2268_v61, 2  ;;  %v2281_v28 = vrot.slane %v2279_v56, 3  ;;  %v2028_v4 = vrot.slane %v4459_v33, 2 }
 0x152   :  { %1257 = vmatmul.bf16.gmra.mxu3 %v1109_v43  ;;  %v2624_v43 = vpack.c.b16 %v1978_v31, %v2623_v34 }
 0x153   :  { %1616 = vmatmul.bf16.gmra.mxu0 %v1468_v38  ;;  %v1677_v38 = vrot.slane %v4149_v63, 2  ;;  %v2282_v5 = vor.u32 %v2281_v28, %v2278_v17  ;;  %v2029_v63 = vsel %vm1675_vm3, %v2027_v35, %v2028_v4 }
 0x154   :  { %v867_v10 = vpop.f32.mrf.mxu2  ;;  %v2626_v61 = vrot.slane %v2624_v43, 3 }
 0x155   :  { %v926_v62 = vadd.f32 %v867_v10, %v660_v16  ;;  %v1218_v41 = vpop.f32.mrf.mxu3  ;;  %v2274_v16 = vor.u32 %v2273_v57, %v2270_v55 }
 0x156   :  { %v661_v54 = vpop.f32.mrf.mxu1 }
 0x157   :  { %v1277_v8 = vadd.f32 %v1218_v41, %v926_v62  ;;  %v662_v47 = vadd.f32 %v661_v54, %v4305_v42  ;;  %v2283_v62 = vsel %vm2266_vm4, %v2274_v16, %v2282_v5  ;;  %v2628_v42 = vsel %vm2625_vm5, %v2626_v61, %v2627_v11  ;;  %v4478_v41 = vld [vmem:[#allocation2 + $0x18] sm:$0xff] }
 0x158   :  { %v1579_v22 = vpop.f32.mrf.mxu0  ;;  %v2285_v29 = vshrl.u32 %v4478_v41, 16  ;;  %v2288_v54 = vshll.u32 %v4478_v41, 16 }
 0x159   :  { %v4468_v14 = vadd.f32 %v1577_v58, %v1277_v8  ;;  %v1678_v58 = vsel %vm1675_vm3, %v1676_v46, %v1677_v38 }
 0x15a   :  { %v2287_v46 = vrot.slane %v2285_v29, 2  ;;  %v2290_v35 = vrot.slane %v2288_v54, 3 }
 0x15c   :  { %v869_v10 = vpop.f32.mrf.mxu2  ;;  %v2291_v61 = vor.u32 %v2290_v35, %v2287_v46 }
 0x15d   :  { %v927_v31 = vadd.f32 %v869_v10, %v662_v47  ;;  %v1220_v49 = vpop.f32.mrf.mxu3  ;;  %v2030_v47 = vrot.slane %v4478_v41, 2  ;;  %v2629_v10 = vrot.slane %v4478_v41, 3 }
 0x15e   :  { %v664_v56 = vpop.f32.mrf.mxu1 }
 0x15f   :  { %v1278_v25 = vadd.f32 %v1220_v49, %v927_v31  ;;  %v665_v18 = vadd.f32 %v664_v56, %v4220_v37 }
 0x160   :  { %v1582_v34 = vpop.f32.mrf.mxu0 }
 0x161   :  { %1781 = vmatmul.bf16.vlgmr.msra.gmra.mxu1 %v1678_v58  ;;  %2132 = vmatmul.bf16.vlgmr.msra.gmra.mxu2 %v2029_v63  ;;  %v4480_v33 = vadd.f32 %v1579_v22, %v1278_v25  ;;  %v1679_v22 = vrot.slane %v4160_v26, 2  ;;  %v2031_v25 = vsel %vm1675_vm3, %v2028_v4, %v2030_v47  ;;  %v2630_v26 = vsel %vm2625_vm5, %v2627_v11, %v2629_v10 }
 0x162   :  { %2491 = vmatmul.bf16.vlgmr.msra.gmra.mxu3 %v2283_v62 }
 0x163   :  { %2731 = vmatmul.bf16.vlgmr.msra.gmra.mxu0 %v2628_v42  ;;  %v1680_v63 = vsel %vm1675_vm3, %v1677_v38, %v1679_v22  ;;  %v2292_v42 = vsel %vm2266_vm4, %v2282_v5, %v2291_v61 }
 0x164   :  { %v872_v55 = vpop.f32.mrf.mxu2 }
 0x165   :  { %v928_v57 = vadd.f32 %v872_v55, %v665_v18  ;;  %v1223_v8 = vpop.f32.mrf.mxu3  ;;  %v4495_v18 = vld [vmem:[#allocation2 + $0x20] sm:$0xff] }
 0x166   :  { %v666_v17 = vpop.f32.mrf.mxu1  ;;  %v2294_v38 = vshrl.u32 %v4495_v18, 16  ;;  %v2297_v4 = vshll.u32 %v4495_v18, 16  ;;  %v2032_v35 = vrot.slane %v4495_v18, 2 }
 0x167   :  { %v1279_v28 = vadd.f32 %v1223_v8, %v928_v57  ;;  %v667_v37 = vadd.f32 %v666_v17, %v4235_v50 }
 0x168   :  { %v1584_v43 = vpop.f32.mrf.mxu0  ;;  %v2296_v8 = vrot.slane %v2294_v38, 2  ;;  %v2299_v17 = vrot.slane %v2297_v4, 3  ;;  %v4511_v38 = vld [vmem:[#allocation2 + $0x28] sm:$0xff] }
 0x169   :  { %v4485_v16 = vadd.f32 %v1582_v34, %v1279_v28 }
 0x16c   :  { %v874_v31 = vpop.f32.mrf.mxu2 }
 0x16d   :  { %v929_v49 = vadd.f32 %v874_v31, %v667_v37  ;;  %v1225_v56 = vpop.f32.mrf.mxu3  ;;  %v2300_v37 = vor.u32 %v2299_v17, %v2296_v8  ;;  %v2631_v31 = vrot.slane %v4495_v18, 3 }
 0x16e   :  { %v669_v58 = vpop.f32.mrf.mxu1 }
 0x16f   :  { %v1280_v62 = vadd.f32 %v1225_v56, %v929_v49  ;;  %v670_v41 = vadd.f32 %v669_v58, %v4247_v1 }
 0x170   :  { %v1587_v34 = vpop.f32.mrf.mxu0 }
 0x171   :  { %1786 = vmatmul.bf16.gmra.mxu1 %v1680_v63  ;;  %2137 = vmatmul.bf16.gmra.mxu2 %v2031_v25  ;;  %v4497_v50 = vadd.f32 %v1584_v43, %v1280_v62  ;;  %v3834_v43 = vld [vmem:[#allocation2 + $0x1c] sm:$0xff]  ;;  %v2033_v62 = vsel %vm1675_vm3, %v2030_v47, %v2032_v35  ;;  %v2306_v47 = vshll.u32 %v4511_v38, 16 }
 0x172   :  { %2496 = vmatmul.bf16.gmra.mxu3 %v2292_v42  ;;  %v1681_v46 = vrot.slane %v3834_v43, 2  ;;  %v2034_v43 = vrot.slane %v4511_v38, 2 }
 0x173   :  { %2736 = vmatmul.bf16.gmra.mxu0 %v2630_v26  ;;  %v2301_v26 = vsel %vm2266_vm4, %v2291_v61, %v2300_v37 }
 0x174   :  { %v877_v29 = vpop.f32.mrf.mxu2  ;;  %v1682_v25 = vsel %vm1675_vm3, %v1679_v22, %v1681_v46  ;;  %v2303_v22 = vshrl.u32 %v4511_v38, 16 }
 0x175   :  { %v930_v54 = vadd.f32 %v877_v29, %v670_v41  ;;  %v1228_v55 = vpop.f32.mrf.mxu3  ;;  %v2632_v41 = vsel %vm2625_vm5, %v2629_v10, %v2631_v31 }
 0x176   :  { %v671_v5 = vpop.f32.mrf.mxu1 }
 0x177   :  { %v1281_v57 = vadd.f32 %v1228_v55, %v930_v54  ;;  %v672_v1 = vadd.f32 %v671_v5, %v4256_v21  ;;  %v2305_v5 = vrot.slane %v2303_v22, 2  ;;  %v4527_v22 = vld [vmem:[#allocation2 + $0x30] sm:$0xff] }
 0x178   :  { %v1589_v11 = vpop.f32.mrf.mxu0 }
 0x179   :  { %v4502_v28 = vadd.f32 %v1587_v34, %v1281_v57  ;;  %v2308_v57 = vrot.slane %v2306_v47, 3 }
 0x17c   :  { %v879_v49 = vpop.f32.mrf.mxu2 }
 0x17d   :  { %v931_v56 = vadd.f32 %v879_v49, %v672_v1  ;;  %v1230_v58 = vpop.f32.mrf.mxu3  ;;  %v2309_v1 = vor.u32 %v2308_v57, %v2305_v5  ;;  %v2633_v49 = vrot.slane %v4511_v38, 3 }
 0x17e   :  { %v674_v63 = vpop.f32.mrf.mxu1 }
 0x17f   :  { %v1282_v42 = vadd.f32 %v1230_v58, %v931_v56  ;;  %v675_v18 = vadd.f32 %v674_v63, %v4274_v27 }
 0x180   :  { %v1592_v34 = vpop.f32.mrf.mxu0 }
 0x181   :  { %1791 = vmatmul.bf16.gmra.mxu1 %v1682_v25  ;;  %2142 = vmatmul.bf16.gmra.mxu2 %v2033_v62  ;;  %v4513_v21 = vadd.f32 %v1589_v11, %v1282_v42  ;;  %v3835_v11 = vld [vmem:[#allocation2 + $0x24] sm:$0xff]  ;;  %v2035_v42 = vsel %vm1675_vm3, %v2032_v35, %v2034_v43  ;;  %v2315_v35 = vshll.u32 %v4527_v22, 16 }
 0x182   :  { %2501 = vmatmul.bf16.gmra.mxu3 %v2301_v26  ;;  %v1683_v17 = vrot.slane %v3835_v11, 2  ;;  %v2036_v11 = vrot.slane %v4527_v22, 2 }
 0x183   :  { %2741 = vmatmul.bf16.gmra.mxu0 %v2632_v41  ;;  %v2310_v41 = vsel %vm2266_vm4, %v2300_v37, %v2309_v1 }
 0x184   :  { %v882_v4 = vpop.f32.mrf.mxu2  ;;  %v1684_v62 = vsel %vm1675_vm3, %v1681_v46, %v1683_v17  ;;  %v2312_v46 = vshrl.u32 %v4527_v22, 16 }
 0x185   :  { %v932_v29 = vadd.f32 %v882_v4, %v675_v18  ;;  %v1233_v54 = vpop.f32.mrf.mxu3  ;;  %v2634_v18 = vsel %vm2625_vm5, %v2631_v31, %v2633_v49 }
 0x186   :  { %v676_v61 = vpop.f32.mrf.mxu1 }
 0x187   :  { %v1283_v55 = vadd.f32 %v1233_v54, %v932_v29  ;;  %v677_v27 = vadd.f32 %v676_v61, %v4289_v44  ;;  %v2314_v61 = vrot.slane %v2312_v46, 2  ;;  %v4543_v46 = vld [vmem:[#allocation2 + $0x38] sm:$0xff] }
 0x188   :  { %v1594_v10 = vpop.f32.mrf.mxu0 }
 0x189   :  { %v4518_v8 = vadd.f32 %v1592_v34, %v1283_v55  ;;  %v2317_v55 = vrot.slane %v2315_v35, 3 }
 0x18c   :  { %v884_v56 = vpop.f32.mrf.mxu2 }
 0x18d   :  { %v933_v58 = vadd.f32 %v884_v56, %v677_v27  ;;  %v1235_v63 = vpop.f32.mrf.mxu3  ;;  %v2318_v27 = vor.u32 %v2317_v55, %v2314_v61  ;;  %v2635_v56 = vrot.slane %v4527_v22, 3 }
 0x18e   :  { %v679_v25 = vpop.f32.mrf.mxu1 }
 0x18f   :  { %v1284_v26 = vadd.f32 %v1235_v63, %v933_v58  ;;  %v680_v38 = vadd.f32 %v679_v25, %v4301_v0 }
 0x190   :  { %v1597_v34 = vpop.f32.mrf.mxu0 }
 0x191   :  { %1796 = vmatmul.bf16.gmra.mxu1 %v1684_v62  ;;  %2147 = vmatmul.bf16.gmra.mxu2 %v2035_v42  ;;  %v4529_v44 = vadd.f32 %v1594_v10, %v1284_v26  ;;  %v3836_v10 = vld [vmem:[#allocation2 + $0x2c] sm:$0xff]  ;;  %v2037_v26 = vsel %vm1675_vm3, %v2034_v43, %v2036_v11  ;;  %v2324_v43 = vshll.u32 %v4543_v46, 16 }
 0x192   :  { %2506 = vmatmul.bf16.gmra.mxu3 %v2310_v41  ;;  %v1685_v57 = vrot.slane %v3836_v10, 2  ;;  %v2038_v10 = vrot.slane %v4543_v46, 2 }
 0x193   :  { %2746 = vmatmul.bf16.gmra.mxu0 %v2634_v18  ;;  %v2319_v18 = vsel %vm2266_vm4, %v2309_v1, %v2318_v27 }
 0x194   :  { %v887_v47 = vpop.f32.mrf.mxu2  ;;  %v1686_v42 = vsel %vm1675_vm3, %v1683_v17, %v1685_v57  ;;  %v2321_v17 = vshrl.u32 %v4543_v46, 16 }
 0x195   :  { %v934_v4 = vadd.f32 %v887_v47, %v680_v38  ;;  %v1238_v29 = vpop.f32.mrf.mxu3  ;;  %v2636_v38 = vsel %vm2625_vm5, %v2633_v49, %v2635_v56 }
 0x196   :  { %v681_v37 = vpop.f32.mrf.mxu1 }
 0x197   :  { %v1285_v54 = vadd.f32 %v1238_v29, %v934_v4  ;;  %v682_v0 = vadd.f32 %v681_v37, %v4310_v52  ;;  %v2323_v37 = vrot.slane %v2321_v17, 2  ;;  %v4559_v17 = vld [vmem:[#allocation2 + $0x40] sm:$0xff] }
 0x198   :  { %v1599_v31 = vpop.f32.mrf.mxu0 }
 0x199   :  { %v4534_v5 = vadd.f32 %v1597_v34, %v1285_v54  ;;  %v2326_v54 = vrot.slane %v2324_v43, 3 }
 0x19c   :  { %v889_v58 = vpop.f32.mrf.mxu2 }
 0x19d   :  { %v935_v63 = vadd.f32 %v889_v58, %v682_v0  ;;  %v1240_v25 = vpop.f32.mrf.mxu3  ;;  %v2327_v0 = vor.u32 %v2326_v54, %v2323_v37  ;;  %v2637_v58 = vrot.slane %v4543_v46, 3 }
 0x19e   :  { %v684_v62 = vpop.f32.mrf.mxu1 }
 0x19f   :  { %v1286_v41 = vadd.f32 %v1240_v25, %v935_v63  ;;  %v685_v22 = vadd.f32 %v684_v62, %v4222_v39 }
 0x1a0   :  { %v1602_v34 = vpop.f32.mrf.mxu0 }
 0x1a1   :  { %1801 = vmatmul.bf16.gmra.mxu1 %v1686_v42  ;;  %2152 = vmatmul.bf16.gmra.mxu2 %v2037_v26  ;;  %v4545_v52 = vadd.f32 %v1599_v31, %v1286_v41  ;;  %v3837_v31 = vld [vmem:[#allocation2 + $0x34] sm:$0xff]  ;;  %v2039_v41 = vsel %vm1675_vm3, %v2036_v11, %v2038_v10  ;;  %v2333_v11 = vshll.u32 %v4559_v17, 16 }
 0x1a2   :  { %2511 = vmatmul.bf16.gmra.mxu3 %v2319_v18  ;;  %v1687_v55 = vrot.slane %v3837_v31, 2  ;;  %v2040_v31 = vrot.slane %v4559_v17, 2 }
 0x1a3   :  { %2751 = vmatmul.bf16.gmra.mxu0 %v2636_v38  ;;  %v2328_v38 = vsel %vm2266_vm4, %v2318_v27, %v2327_v0 }
 0x1a4   :  { %v892_v35 = vpop.f32.mrf.mxu2  ;;  %v1688_v26 = vsel %vm1675_vm3, %v1685_v57, %v1687_v55  ;;  %v2330_v57 = vshrl.u32 %v4559_v17, 16 }
 0x1a5   :  { %v936_v47 = vadd.f32 %v892_v35, %v685_v22  ;;  %v1243_v4 = vpop.f32.mrf.mxu3  ;;  %v2638_v22 = vsel %vm2625_vm5, %v2635_v56, %v2637_v58 }
 0x1a6   :  { %v686_v1 = vpop.f32.mrf.mxu1 }
 0x1a7   :  { %v1287_v29 = vadd.f32 %v1243_v4, %v936_v47  ;;  %v687_v39 = vadd.f32 %v686_v1, %v4237_v51  ;;  %v2332_v1 = vrot.slane %v2330_v57, 2  ;;  %v4575_v57 = vld [vmem:[#allocation2 + $0x48] sm:$0xff] }
 0x1a8   :  { %v1604_v49 = vpop.f32.mrf.mxu0 }
 0x1a9   :  { %v4550_v61 = vadd.f32 %v1602_v34, %v1287_v29  ;;  %v2335_v29 = vrot.slane %v2333_v11, 3 }
 0x1ac   :  { %v894_v63 = vpop.f32.mrf.mxu2 }
 0x1ad   :  { %v937_v25 = vadd.f32 %v894_v63, %v687_v39  ;;  %v1245_v62 = vpop.f32.mrf.mxu3  ;;  %v2336_v39 = vor.u32 %v2335_v29, %v2332_v1  ;;  %v2639_v63 = vrot.slane %v4559_v17, 3 }
 0x1ae   :  { %v689_v42 = vpop.f32.mrf.mxu1 }
 0x1af   :  { %v1288_v18 = vadd.f32 %v1245_v62, %v937_v25  ;;  %v690_v46 = vadd.f32 %v689_v42, %v4249_v2 }
 0x1b0   :  { %v1607_v34 = vpop.f32.mrf.mxu0 }
 0x1b1   :  { %1806 = vmatmul.bf16.gmra.mxu1 %v1688_v26  ;;  %2157 = vmatmul.bf16.gmra.mxu2 %v2039_v41  ;;  %v4561_v51 = vadd.f32 %v1604_v49, %v1288_v18  ;;  %v3838_v49 = vld [vmem:[#allocation2 + $0x3c] sm:$0xff]  ;;  %v2041_v18 = vsel %vm1675_vm3, %v2038_v10, %v2040_v31  ;;  %v2342_v10 = vshll.u32 %v4575_v57, 16 }
 0x1b2   :  { %2516 = vmatmul.bf16.gmra.mxu3 %v2328_v38  ;;  %v1689_v54 = vrot.slane %v3838_v49, 2  ;;  %v2042_v49 = vrot.slane %v4575_v57, 2 }
 0x1b3   :  { %2756 = vmatmul.bf16.gmra.mxu0 %v2638_v22  ;;  %v2337_v22 = vsel %vm2266_vm4, %v2327_v0, %v2336_v39 }
 0x1b4   :  { %v897_v43 = vpop.f32.mrf.mxu2  ;;  %v1690_v41 = vsel %vm1675_vm3, %v1687_v55, %v1689_v54  ;;  %v2339_v55 = vshrl.u32 %v4575_v57, 16 }
 0x1b5   :  { %v938_v35 = vadd.f32 %v897_v43, %v690_v46  ;;  %v1248_v47 = vpop.f32.mrf.mxu3  ;;  %v2640_v46 = vsel %vm2625_vm5, %v2637_v58, %v2639_v63 }
 0x1b6   :  { %v691_v27 = vpop.f32.mrf.mxu1 }
 0x1b7   :  { %v1289_v4 = vadd.f32 %v1248_v47, %v938_v35  ;;  %v692_v2 = vadd.f32 %v691_v27, %v4258_v32  ;;  %v2341_v27 = vrot.slane %v2339_v55, 2  ;;  %v4591_v55 = vld [vmem:[#allocation2 + $0x50] sm:$0xff] }
 0x1b8   :  { %v1609_v56 = vpop.f32.mrf.mxu0 }
 0x1b9   :  { %v4566_v37 = vadd.f32 %v1607_v34, %v1289_v4  ;;  %v2344_v4 = vrot.slane %v2342_v10, 3 }
 0x1bc   :  { %v899_v25 = vpop.f32.mrf.mxu2 }
 0x1bd   :  { %v939_v62 = vadd.f32 %v899_v25, %v692_v2  ;;  %v1250_v42 = vpop.f32.mrf.mxu3  ;;  %v2345_v2 = vor.u32 %v2344_v4, %v2341_v27  ;;  %v2641_v25 = vrot.slane %v4575_v57, 3 }
 0x1be   :  { %v694_v26 = vpop.f32.mrf.mxu1 }
 0x1bf   :  { %v1290_v38 = vadd.f32 %v1250_v42, %v939_v62  ;;  %v695_v17 = vadd.f32 %v694_v26, %v4276_v30 }
 0x1c0   :  { %v1612_v34 = vpop.f32.mrf.mxu0 }
 0x1c1   :  { %1811 = vmatmul.bf16.gmra.mxu1 %v1690_v41  ;;  %2162 = vmatmul.bf16.gmra.mxu2 %v2041_v18  ;;  %v4577_v32 = vadd.f32 %v1609_v56, %v1290_v38  ;;  %v3839_v56 = vld [vmem:[#allocation2 + $0x44] sm:$0xff]  ;;  %v2043_v38 = vsel %vm1675_vm3, %v2040_v31, %v2042_v49  ;;  %v2351_v31 = vshll.u32 %v4591_v55, 16 }
 0x1c2   :  { %2521 = vmatmul.bf16.gmra.mxu3 %v2337_v22  ;;  %v1691_v29 = vrot.slane %v3839_v56, 2  ;;  %v2044_v56 = vrot.slane %v4591_v55, 2 }
 0x1c3   :  { %2761 = vmatmul.bf16.gmra.mxu0 %v2640_v46  ;;  %v2346_v46 = vsel %vm2266_vm4, %v2336_v39, %v2345_v2 }
 0x1c4   :  { %v902_v11 = vpop.f32.mrf.mxu2  ;;  %v1692_v18 = vsel %vm1675_vm3, %v1689_v54, %v1691_v29  ;;  %v2348_v54 = vshrl.u32 %v4591_v55, 16 }
 0x1c5   :  { %v940_v43 = vadd.f32 %v902_v11, %v695_v17  ;;  %v1253_v35 = vpop.f32.mrf.mxu3  ;;  %v2642_v17 = vsel %vm2625_vm5, %v2639_v63, %v2641_v25 }
 0x1c6   :  { %v696_v0 = vpop.f32.mrf.mxu1 }
 0x1c7   :  { %v1291_v47 = vadd.f32 %v1253_v35, %v940_v43  ;;  %v697_v30 = vadd.f32 %v696_v0, %v4291_v45  ;;  %v2350_v0 = vrot.slane %v2348_v54, 2  ;;  %v4607_v54 = vld [vmem:[#allocation2 + $0x58] sm:$0xff] }
 0x1c8   :  { %v1614_v58 = vpop.f32.mrf.mxu0 }
 0x1c9   :  { %v4582_v1 = vadd.f32 %v1612_v34, %v1291_v47  ;;  %v2353_v47 = vrot.slane %v2351_v31, 3 }
 0x1cc   :  { %v904_v62 = vpop.f32.mrf.mxu2 }
 0x1cd   :  { %v941_v42 = vadd.f32 %v904_v62, %v697_v30  ;;  %v1255_v26 = vpop.f32.mrf.mxu3  ;;  %v2354_v30 = vor.u32 %v2353_v47, %v2350_v0  ;;  %v2643_v62 = vrot.slane %v4591_v55, 3  ;;  %v3841_v0 = vld [vmem:[#allocation2 + $0x54] sm:$0xff] }
 0x1ce   :  { %v699_v41 = vpop.f32.mrf.mxu1  ;;  %v1695_v47 = vrot.slane %v3841_v0, 2 }
 0x1cf   :  { %v1292_v22 = vadd.f32 %v1255_v26, %v941_v42  ;;  %v700_v57 = vadd.f32 %v699_v41, %v4303_v3 }
 0x1d0   :  { %v1617_v34 = vpop.f32.mrf.mxu0 }
 0x1d1   :  { %1816 = vmatmul.bf16.gmra.mxu1 %v1692_v18  ;;  %2167 = vmatmul.bf16.gmra.mxu2 %v2043_v38  ;;  %v4593_v45 = vadd.f32 %v1614_v58, %v1292_v22  ;;  %v3840_v58 = vld [vmem:[#allocation2 + $0x4c] sm:$0xff]  ;;  %v2045_v22 = vsel %vm1675_vm3, %v2042_v49, %v2044_v56  ;;  %v2360_v49 = vshll.u32 %v4607_v54, 16 }
 0x1d2   :  { %2526 = vmatmul.bf16.gmra.mxu3 %v2346_v46  ;;  %v1693_v4 = vrot.slane %v3840_v58, 2 }
 0x1d3   :  { %2766 = vmatmul.bf16.gmra.mxu0 %v2642_v17  ;;  %v2355_v17 = vsel %vm2266_vm4, %v2345_v2, %v2354_v30 }
 0x1d4   :  { %v907_v10 = vpop.f32.mrf.mxu2  ;;  %v1694_v38 = vsel %vm1675_vm3, %v1691_v29, %v1693_v4  ;;  %v2357_v29 = vshrl.u32 %v4607_v54, 16 }
 0x1d5   :  { %v942_v11 = vadd.f32 %v907_v10, %v700_v57  ;;  %v1258_v43 = vpop.f32.mrf.mxu3  ;;  %v2644_v57 = vsel %vm2625_vm5, %v2641_v25, %v2643_v62 }
 0x1d6   :  { %v701_v39 = vpop.f32.mrf.mxu1  ;;  %v2359_v25 = vrot.slane %v2357_v29, 2  ;;  %v4626_v29 = vld [vmem:[#allocation2 + $0x60] sm:$0xff] }
 0x1d7   :  { %v1293_v35 = vadd.f32 %v1258_v43, %v942_v11  ;;  %v702_v3 = vadd.f32 %v701_v39, %v4312_v15  ;;  %v2362_v39 = vrot.slane %v2360_v49, 3 }
 0x1d8   :  { %v1619_v63 = vpop.f32.mrf.mxu0 }
 0x1d9   :  { %v4598_v27 = vadd.f32 %v1617_v34, %v1293_v35 }
 0x1dc   :  { %v909_v42 = vpop.f32.mrf.mxu2 }
 0x1dd   :  { %v943_v26 = vadd.f32 %v909_v42, %v702_v3  ;;  %v1260_v41 = vpop.f32.mrf.mxu3  ;;  %v2363_v3 = vor.u32 %v2362_v39, %v2359_v25 }
 0x1de   :  { %v1782_v18 = vpop.f32.mrf.mxu1 }
 0x1df   :  { %v1294_v46 = vadd.f32 %v1260_v41, %v943_v26  ;;  %v1862_v55 = vadd.f32 %v1782_v18, %v4336_v19  ;;  %v2645_v19 = vrot.slane %v4607_v54, 3  ;;  %v4620_v41 = vld [vmem:[%s4797_s3] ss:$0 sm:$0xff] }
 0x1e0   :  { %v2732_v34 = vpop.f32.mrf.mxu0 }
 0x1e1   :  { %1821 = vmatmul.bf16.gmra.mxu1 %v1694_v38  ;;  %2172 = vmatmul.bf16.gmra.mxu2 %v2045_v22  ;;  %v4609_v15 = vadd.f32 %v1619_v63, %v1294_v46  ;;  %v2046_v63 = vrot.slane %v4607_v54, 2  ;;  %v1696_v46 = vsel %vm1675_vm3, %v1693_v4, %v1695_v47  ;;  %v2646_v54 = vsel %vm2625_vm5, %v2643_v62, %v2645_v19 }
 0x1e2   :  { %2531 = vmatmul.bf16.gmra.mxu3 %v2355_v17 }
 0x1e3   :  { %2771 = vmatmul.bf16.gmra.mxu0 %v2644_v57  ;;  %v2047_v17 = vsel %vm1675_vm3, %v2044_v56, %v2046_v63  ;;  %v2366_v56 = vshrl.u32 %v4626_v29, 16 }
 0x1e4   :  { %v2133_v31 = vpop.f32.mrf.mxu2 }
 0x1e5   :  { %v2213_v10 = vadd.f32 %v2133_v31, %v1862_v55  ;;  %v2492_v11 = vpop.f32.mrf.mxu3  ;;  %v2368_v0 = vrot.slane %v2366_v56, 2 }
 0x1e6   :  { %v1784_v2 = vpop.f32.mrf.mxu1 }
 0x1e7   :  { %v2572_v35 = vadd.f32 %v2492_v11, %v2213_v10  ;;  %v1863_v58 = vadd.f32 %v1784_v2, %v4347_v20  ;;  %v2364_v20 = vsel %vm2266_vm4, %v2354_v30, %v2363_v3  ;;  %v2369_v10 = vshll.u32 %v4626_v29, 16 }
 0x1e8   :  { %v2734_v43 = vpop.f32.mrf.mxu0 }
 0x1e9   :  { %v2812_v26 = vadd.f32 %v2732_v34, %v2572_v35 }
 0x1eb   :  { %v2848_v34 = vadd.f32 %v4620_v41, %v2812_v26 }
 0x1ec   :  { %v2135_v42 = vpop.f32.mrf.mxu2 }
 0x1ed   :  { %v2214_v18 = vadd.f32 %v2135_v42, %v1863_v58  ;;  %v2494_v38 = vpop.f32.mrf.mxu3  ;;  %v2880_v11 = vmax.f32 %v2848_v34, 0.0  ;;  %v2371_v58 = vrot.slane %v2369_v10, 3 }
 0x1ee   :  { %v1787_v22 = vpop.f32.mrf.mxu1 }
 0x1ef   :  { %v2573_v57 = vadd.f32 %v2494_v38, %v2214_v18  ;;  %v1864_v4 = vadd.f32 %v1787_v22, %v4352_v23  ;;  %v3842_v23 = vld [vmem:[#allocation2 + $0x5c] sm:$0xff]  ;;  %v2048_v18 = vrot.slane %v4626_v29, 2  ;;  %v2372_v22 = vor.u32 %v2371_v58, %v2368_v0 }
 0x1f0   :  { %v2737_v55 = vpop.f32.mrf.mxu0  ;;  %v1697_v26 = vrot.slane %v3842_v23, 2 }
 0x1f1   :  { %v2813_v49 = vadd.f32 %v2734_v43, %v2573_v57  ;;  %1826 = vmatmul.bf16.gmra.mxu1 %v1696_v46  ;;  %2177 = vmatmul.bf16.gmra.mxu2 %v2047_v17  ;;  %v2647_v46 = vrot.slane %v4626_v29, 3  ;;  %v2373_v10 = vsel %vm2266_vm4, %v2363_v3, %v2372_v22 }
 0x1f2   :  { %2536 = vmatmul.bf16.gmra.mxu3 %v2364_v20 }
 0x1f3   :  { %2776 = vmatmul.bf16.gmra.mxu0 %v2646_v54  ;;  %v2849_v31 = vadd.f32 %v4620_v41, %v2813_v49  ;;  %v1698_v49 = vsel %vm1675_vm3, %v1695_v47, %v1697_v26 }
 0x1f4   :  { %v2138_v30 = vpop.f32.mrf.mxu2 }
 0x1f5   :  { %v2881_v62 = vmax.f32 %v2849_v31, 0.0  ;;  %v2215_v2 = vadd.f32 %v2138_v30, %v1864_v4  ;;  %v2497_v25 = vpop.f32.mrf.mxu3  ;;  %v2049_v31 = vsel %vm1675_vm3, %v2046_v63, %v2048_v18  ;;  %v2648_v30 = vsel %vm2625_vm5, %v2645_v19, %v2647_v46 }
 0x1f6   :  { %v1789_v39 = vpop.f32.mrf.mxu1 }
 0x1f7   :  { %v3710_v35 = vpack.c.bf16 %v2881_v62, %v2880_v11  ;;  %v2574_v42 = vadd.f32 %v2497_v25, %v2215_v2  ;;  %v1865_v38 = vadd.f32 %v1789_v39, %v4363_v60  ;;  %v4643_v11 = vld [vmem:[#allocation2 + $0x68] sm:$0xff] }
 0x1f8   :  { %v2739_v43 = vpop.f32.mrf.mxu0  ;;  %v2375_v63 = vshrl.u32 %v4643_v11, 16  ;;  %v2378_v62 = vshll.u32 %v4643_v11, 16 }
 0x1f9   :  { %3711 = vst [vmem:[%s4798_s4] sm:$0xff] %v3710_v35   ;;  %v2814_v57 = vadd.f32 %v2737_v55, %v2574_v42 }
 0x1fa   :  { %v2377_v58 = vrot.slane %v2375_v63, 2  ;;  %v2380_v42 = vrot.slane %v2378_v62, 3  ;;  %v4660_v62 = vld [vmem:[#allocation2 + $0x70] sm:$0xff] }
 0x1fb   :  { %v2850_v60 = vadd.f32 %v4620_v41, %v2814_v57 }
 0x1fc   :  { %v2140_v17 = vpop.f32.mrf.mxu2 }
 0x1fd   :  { %v2216_v20 = vadd.f32 %v2140_v17, %v1865_v38  ;;  %v2499_v54 = vpop.f32.mrf.mxu3  ;;  %v2882_v2 = vmax.f32 %v2850_v60, 0.0  ;;  %v2050_v17 = vrot.slane %v4643_v11, 2 }
 0x1fe   :  { %v1792_v34 = vpop.f32.mrf.mxu1 }
 0x1ff   :  { %v2575_v4 = vadd.f32 %v2499_v54, %v2216_v20  ;;  %v1866_v47 = vadd.f32 %v1792_v34, %v4380_v24  ;;  %v3843_v24 = vld [vmem:[#allocation2 + $0x64] sm:$0xff]  ;;  %v2381_v20 = vor.u32 %v2380_v42, %v2377_v58  ;;  %v2649_v54 = vrot.slane %v4643_v11, 3 }
 0x200   :  { %v2742_v56 = vpop.f32.mrf.mxu0  ;;  %v1699_v38 = vrot.slane %v3843_v24, 2  ;;  %v2051_v60 = vsel %vm1675_vm3, %v2048_v18, %v2050_v17  ;;  %v2384_v18 = vshrl.u32 %v4660_v62, 16  ;;  %v2052_v24 = vrot.slane %v4660_v62, 2 }
 0x201   :  { %v2815_v29 = vadd.f32 %v2739_v43, %v2575_v4  ;;  %1831 = vmatmul.bf16.gmra.mxu1 %v1698_v49  ;;  %2182 = vmatmul.bf16.gmra.mxu2 %v2049_v31  ;;  %v2650_v63 = vsel %vm2625_vm5, %v2647_v46, %v2649_v54 }
 0x202   :  { %2541 = vmatmul.bf16.gmra.mxu3 %v2373_v10 }
 0x203   :  { %2781 = vmatmul.bf16.gmra.mxu0 %v2648_v30  ;;  %v2851_v55 = vadd.f32 %v4620_v41, %v2815_v29  ;;  %v1700_v30 = vsel %vm1675_vm3, %v1697_v26, %v1699_v38 }
 0x204   :  { %v2143_v3 = vpop.f32.mrf.mxu2 }
 0x205   :  { %v2883_v19 = vmax.f32 %v2851_v55, 0.0  ;;  %v2217_v25 = vadd.f32 %v2143_v3, %v1866_v47  ;;  %v2502_v39 = vpop.f32.mrf.mxu3  ;;  %v2382_v47 = vsel %vm2266_vm4, %v2372_v22, %v2381_v20  ;;  %v2387_v3 = vshll.u32 %v4660_v62, 16 }
 0x206   :  { %v1794_v35 = vpop.f32.mrf.mxu1 }
 0x207   :  { %v3715_v0 = vpack.c.bf16 %v2883_v19, %v2882_v2  ;;  %v2576_v23 = vadd.f32 %v2502_v39, %v2217_v25  ;;  %v1867_v57 = vadd.f32 %v1794_v35, %v4390_v6  ;;  %v2389_v58 = vrot.slane %v2387_v3, 3 }
 0x208   :  { %v2744_v43 = vpop.f32.mrf.mxu0 }
 0x209   :  { %3790 = vst [vmem:[%s4798_s4 + $0x8] sm:$0xff] %v3715_v0   ;;  %v2816_v49 = vadd.f32 %v2742_v56, %v2576_v23 }
 0x20b   :  { %v2852_v6 = vadd.f32 %v4620_v41, %v2816_v49  ;;  %v2651_v49 = vrot.slane %v4660_v62, 3  ;;  %v4680_v62 = vld [vmem:[#allocation2 + $0x78] sm:$0xff] }
 0x20c   :  { %v2145_v34 = vpop.f32.mrf.mxu2 }
 0x20d   :  { %v2218_v31 = vadd.f32 %v2145_v34, %v1867_v57  ;;  %v2504_v4 = vpop.f32.mrf.mxu3  ;;  %v2884_v2 = vmax.f32 %v2852_v6, 0.0 }
 0x20e   :  { %v1797_v10 = vpop.f32.mrf.mxu1 }
 0x20f   :  { %v2577_v29 = vadd.f32 %v2504_v4, %v2218_v31  ;;  %v1868_v26 = vadd.f32 %v1797_v10, %v4395_v53  ;;  %v3844_v53 = vld [vmem:[#allocation2 + $0x6c] sm:$0xff] }
 0x210   :  { %v2747_v55 = vpop.f32.mrf.mxu0  ;;  %v1701_v23 = vrot.slane %v3844_v53, 2 }
 0x211   :  { %v2817_v11 = vadd.f32 %v2744_v43, %v2577_v29  ;;  %1836 = vmatmul.bf16.gmra.mxu1 %v1700_v30  ;;  %2187 = vmatmul.bf16.gmra.mxu2 %v2051_v60  ;;  %v2386_v43 = vrot.slane %v2384_v18, 2  ;;  %v2393_v18 = vshrl.u32 %v4680_v62, 16 }
 0x212   :  { %2546 = vmatmul.bf16.gmra.mxu3 %v2382_v47  ;;  %v1702_v29 = vsel %vm1675_vm3, %v1699_v38, %v1701_v23  ;;  %v2053_v47 = vsel %vm1675_vm3, %v2050_v17, %v2052_v24 }
 0x213   :  { %2786 = vmatmul.bf16.gmra.mxu0 %v2650_v63  ;;  %v2853_v56 = vadd.f32 %v4620_v41, %v2817_v11  ;;  %v2390_v34 = vor.u32 %v2389_v58, %v2386_v43  ;;  %v2988_v63 = vld [vmem:[%s4796_s1 + $0x88] sm:$0xf] }
 0x214   :  { %v2148_v22 = vpop.f32.mrf.mxu2  ;;  %114 = vst [vmem:[#allocation2 + $0x88] sm:$0xf] %v2988_v63 }
 0x215   :  { %v2885_v46 = vmax.f32 %v2853_v56, 0.0  ;;  %v2219_v19 = vadd.f32 %v2148_v22, %v1868_v26  ;;  %v2507_v25 = vpop.f32.mrf.mxu3  ;;  %v2652_v56 = vsel %vm2625_vm5, %v2649_v54, %v2651_v49 }
 0x216   :  { %v1799_v39 = vpop.f32.mrf.mxu1 }
 0x217   :  { %v3720_v35 = vpack.c.bf16 %v2885_v46, %v2884_v2  ;;  %v2578_v42 = vadd.f32 %v2507_v25, %v2219_v19  ;;  %v1869_v57 = vadd.f32 %v1799_v39, %v4406_v13  ;;  %v2391_v13 = vsel %vm2266_vm4, %v2381_v20, %v2390_v34 }
 0x218   :  { %v2749_v0 = vpop.f32.mrf.mxu0  ;;  %v2396_v20 = vshll.u32 %v4680_v62, 16 }
 0x219   :  { %3791 = vst [vmem:[%s4798_s4 + $0x10] sm:$0xff] %v3720_v35   ;;  %v2818_v4 = vadd.f32 %v2747_v55, %v2578_v42  ;;  %v2395_v35 = vrot.slane %v2393_v18, 2  ;;  %v2054_v42 = vrot.slane %v4680_v62, 2 }
 0x21b   :  { %v2854_v55 = vadd.f32 %v4620_v41, %v2818_v4  ;;  %v2055_v63 = vsel %vm1675_vm3, %v2052_v24, %v2054_v42 }
 0x21c   :  { %v2150_v31 = vpop.f32.mrf.mxu2 }
 0x21d   :  { %v2220_v10 = vadd.f32 %v2150_v31, %v1869_v57  ;;  %v2509_v30 = vpop.f32.mrf.mxu3  ;;  %v2886_v54 = vmax.f32 %v2854_v55, 0.0  ;;  %v2653_v31 = vrot.slane %v4680_v62, 3 }
 0x21e   :  { %v1802_v60 = vpop.f32.mrf.mxu1 }
 0x21f   :  { %v2579_v6 = vadd.f32 %v2509_v30, %v2220_v10  ;;  %v1870_v17 = vadd.f32 %v1802_v60, %v4423_v7  ;;  %v3845_v7 = vld [vmem:[#allocation2 + $0x74] sm:$0xff]  ;;  %v2654_v55 = vsel %vm2625_vm5, %v2651_v49, %v2653_v31 }
 0x220   :  { %v2752_v11 = vpop.f32.mrf.mxu0  ;;  %v1703_v58 = vrot.slane %v3845_v7, 2 }
 0x221   :  { %v2819_v26 = vadd.f32 %v2749_v0, %v2579_v6  ;;  %1841 = vmatmul.bf16.gmra.mxu1 %v1702_v29  ;;  %2192 = vmatmul.bf16.gmra.mxu2 %v2053_v47  ;;  %v2398_v0 = vrot.slane %v2396_v20, 3 }
 0x222   :  { %2551 = vmatmul.bf16.gmra.mxu3 %v2391_v13  ;;  %v1704_v47 = vsel %vm1675_vm3, %v1701_v23, %v1703_v58 }
 0x223   :  { %2791 = vmatmul.bf16.gmra.mxu0 %v2652_v56  ;;  %v2855_v38 = vadd.f32 %v4620_v41, %v2819_v26  ;;  %v2399_v57 = vor.u32 %v2398_v0, %v2395_v35  ;;  %v4697_v26 = vld [vmem:[#allocation2 + $0x80] sm:$0xff] }
 0x224   :  { %v2153_v3 = vpop.f32.mrf.mxu2  ;;  %v2402_v24 = vshrl.u32 %v4697_v26, 16  ;;  %v2056_v35 = vrot.slane %v4697_v26, 2  ;;  %v2655_v7 = vrot.slane %v4697_v26, 3 }
 0x225   :  { %v2887_v22 = vmax.f32 %v2855_v38, 0.0  ;;  %v2221_v2 = vadd.f32 %v2153_v3, %v1870_v17  ;;  %v2512_v46 = vpop.f32.mrf.mxu3  ;;  %v2400_v56 = vsel %vm2266_vm4, %v2390_v34, %v2399_v57  ;;  %v2405_v38 = vshll.u32 %v4697_v26, 16 }
 0x226   :  { %v1804_v19 = vpop.f32.mrf.mxu1 }
 0x227   :  { %v3725_v25 = vpack.c.bf16 %v2887_v22, %v2886_v54  ;;  %v2580_v43 = vadd.f32 %v2512_v46, %v2221_v2  ;;  %v1871_v53 = vadd.f32 %v1804_v19, %v4432_v40  ;;  %v2404_v2 = vrot.slane %v2402_v24, 2  ;;  %v2245_v19 = vld [vmem:[#allocation2 + $0x88] sm:$0x7] }
 0x228   :  { %v2754_v39 = vpop.f32.mrf.mxu0  ;;  %v2407_v46 = vrot.slane %v2405_v38, 3 }
 0x229   :  { %3792 = vst [vmem:[%s4798_s4 + $0x18] sm:$0xff] %v3725_v25   ;;  %v2820_v10 = vadd.f32 %v2752_v11, %v2580_v43  ;;  %v3846_v25 = vld [vmem:[#allocation2 + $0x7c] sm:$0xff] }
 0x22a   :  { %v2408_v43 = vor.u32 %v2407_v46, %v2404_v2 }
 0x22b   :  { %v2856_v40 = vadd.f32 %v4620_v41, %v2820_v10 }
 0x22c   :  { %v2155_v4 = vpop.f32.mrf.mxu2 }
 0x22d   :  { %v2222_v30 = vadd.f32 %v2155_v4, %v1871_v53  ;;  %v2514_v60 = vpop.f32.mrf.mxu3  ;;  %v2888_v17 = vmax.f32 %v2856_v40, 0.0  ;;  %v2264_v53 = vunpack.c.l.b16 %v2245_v19  ;;  %v2656_v40 = vsel %vm2625_vm5, %v2653_v31, %v2655_v7 }
 0x22e   :  { %v1807_v29 = vpop.f32.mrf.mxu1 }
 0x22f   :  { %v2581_v6 = vadd.f32 %v2514_v60, %v2222_v30  ;;  %v1872_v23 = vadd.f32 %v1807_v29, %v4437_v59 }
 0x230   :  { %v2757_v13 = vpop.f32.mrf.mxu0 }
 0x231   :  { %v2821_v62 = vadd.f32 %v2754_v39, %v2581_v6  ;;  %1846 = vmatmul.bf16.gmra.mxu1 %v1704_v47  ;;  %2197 = vmatmul.bf16.gmra.mxu2 %v2055_v63  ;;  %v1705_v39 = vrot.slane %v3846_v25, 2  ;;  %v2057_v63 = vsel %vm1675_vm3, %v2054_v42, %v2056_v35 }
 0x232   :  { %2556 = vmatmul.bf16.gmra.mxu3 %v2400_v56 }
 0x233   :  { %2796 = vmatmul.bf16.gmra.mxu0 %v2654_v55  ;;  %v2857_v11 = vadd.f32 %v4620_v41, %v2821_v62  ;;  %v1706_v47 = vsel %vm1675_vm3, %v1703_v58, %v1705_v39  ;;  %v2409_v55 = vsel %vm2266_vm4, %v2399_v57, %v2408_v43  ;;  %v2265_v62 = vpack.c.b16 %v2264_v53, %v2264_v53 }
 0x234   :  { %v2158_v34 = vpop.f32.mrf.mxu2 }
 0x235   :  { %v2889_v49 = vmax.f32 %v2857_v11, 0.0  ;;  %v2223_v18 = vadd.f32 %v2158_v34, %v1872_v23  ;;  %v2517_v20 = vpop.f32.mrf.mxu3  ;;  %v2411_v23 = vshrl.u32 %v2265_v62, 16  ;;  %v2414_v24 = vshll.u32 %v2265_v62, 16 }
 0x236   :  { %v1809_v3 = vpop.f32.mrf.mxu1  ;;  %v2657_v25 = vrot.slane %v2265_v62, 3 }
 0x237   :  { %v3730_v54 = vpack.c.bf16 %v2889_v49, %v2888_v17  ;;  %v2582_v59 = vadd.f32 %v2517_v20, %v2223_v18  ;;  %v1873_v0 = vadd.f32 %v1809_v3, %v4447_v36  ;;  %v1926_v36 = vld [vmem:[#allocation2 + $0x88] sm:$0x3] }
 0x238   :  { %v2759_v22 = vpop.f32.mrf.mxu0 }
 0x239   :  { %3793 = vst [vmem:[%s4798_s4 + $0x20] sm:$0xff] %v3730_v54   ;;  %v2822_v10 = vadd.f32 %v2757_v13, %v2582_v59  ;;  %v2009_v13 = vunpack.c.l.b16 %v1926_v36  ;;  %v2413_v54 = vrot.slane %v2411_v23, 2 }
 0x23b   :  { %v2858_v26 = vadd.f32 %v4620_v41, %v2822_v10  ;;  %v2026_v18 = vpack.c.b16 %v2009_v13, %v2009_v13 }
 0x23c   :  { %v2160_v4 = vpop.f32.mrf.mxu2 }
 0x23d   :  { %v2224_v30 = vadd.f32 %v2160_v4, %v1873_v0  ;;  %v2519_v60 = vpop.f32.mrf.mxu3  ;;  %v2890_v57 = vmax.f32 %v2858_v26, 0.0  ;;  %v2058_v46 = vrot.slane %v2026_v18, 2 }
 0x23e   :  { %v1812_v29 = vpop.f32.mrf.mxu1 }
 0x23f   :  { %v2583_v6 = vadd.f32 %v2519_v60, %v2224_v30  ;;  %v1874_v42 = vadd.f32 %v1812_v29, %v4452_v12  ;;  %v1707_v12 = vrot.slane %v4445_v9, 2  ;;  %v2059_v29 = vsel %vm1675_vm3, %v2056_v35, %v2058_v46 }
 0x240   :  { %v2762_v56 = vpop.f32.mrf.mxu0  ;;  %v2658_v9 = vsel %vm2625_vm5, %v2655_v7, %v2657_v25 }
 0x241   :  { %v2823_v11 = vadd.f32 %v2759_v22, %v2583_v6  ;;  %1851 = vmatmul.bf16.gmra.mxu1 %v1706_v47  ;;  %2202 = vmatmul.bf16.gmra.mxu2 %v2057_v63  ;;  %v2416_v22 = vrot.slane %v2414_v24, 3  ;;  %v1708_v60 = vsel %vm1675_vm3, %v1705_v39, %v1707_v12 }
 0x242   :  { %2561 = vmatmul.bf16.gmra.mxu3 %v2409_v55 }
 0x243   :  { %2801 = vmatmul.bf16.gmra.mxu0 %v2656_v40  ;;  %v2859_v58 = vadd.f32 %v4620_v41, %v2823_v11  ;;  %v2417_v59 = vor.u32 %v2416_v22, %v2413_v54 }
 0x244   :  { %v2163_v38 = vpop.f32.mrf.mxu2 }
 0x245   :  { %v2891_v34 = vmax.f32 %v2859_v58, 0.0  ;;  %v2225_v31 = vadd.f32 %v2163_v38, %v1874_v42  ;;  %v2522_v17 = vpop.f32.mrf.mxu3  ;;  %v2418_v6 = vsel %vm2266_vm4, %v2408_v43, %v2417_v59 }
 0x246   :  { %v1814_v49 = vpop.f32.mrf.mxu1 }
 0x247   :  { %v3735_v20 = vpack.c.bf16 %v2891_v34, %v2890_v57  ;;  %v2584_v2 = vadd.f32 %v2522_v17, %v2225_v31  ;;  %v1875_v19 = vadd.f32 %v1814_v49, %v4461_v48 }
 0x248   :  { %v2764_v3 = vpop.f32.mrf.mxu0 }
 0x249   :  { %3794 = vst [vmem:[%s4798_s4 + $0x28] sm:$0xff] %v3735_v20   ;;  %v2824_v53 = vadd.f32 %v2762_v56, %v2584_v2 }
 0x24b   :  { %v2860_v55 = vadd.f32 %v4620_v41, %v2824_v53 }
 0x24c   :  { %v2165_v0 = vpop.f32.mrf.mxu2 }
 0x24d   :  { %v2226_v4 = vadd.f32 %v2165_v0, %v1875_v19  ;;  %v2524_v10 = vpop.f32.mrf.mxu3  ;;  %v2892_v36 = vmax.f32 %v2860_v55, 0.0 }
 0x24e   :  { %v1817_v30 = vpop.f32.mrf.mxu1 }
 0x24f   :  { %v2585_v47 = vadd.f32 %v2524_v10, %v2226_v4  ;;  %v1876_v40 = vadd.f32 %v1817_v30, %v4468_v14 }
 0x250   :  { %v2767_v63 = vpop.f32.mrf.mxu0 }
 0x251   :  { %v2825_v48 = vadd.f32 %v2764_v3, %v2585_v47  ;;  %1856 = vmatmul.bf16.gmra.mxu1 %v1708_v60  ;;  %2207 = vmatmul.bf16.gmra.mxu2 %v2059_v29 }
 0x252   :  { %2566 = vmatmul.bf16.gmra.mxu3 %v2418_v6 }
 0x253   :  { %2806 = vmatmul.bf16.gmra.mxu0 %v2658_v9  ;;  %v2861_v56 = vadd.f32 %v4620_v41, %v2825_v48 }
 0x254   :  { %v2168_v39 = vpop.f32.mrf.mxu2 }
 0x255   :  { %v2893_v35 = vmax.f32 %v2861_v56, 0.0  ;;  %v2227_v62 = vadd.f32 %v2168_v39, %v1876_v40  ;;  %v2527_v26 = vpop.f32.mrf.mxu3 }
 0x256   :  { %v1819_v11 = vpop.f32.mrf.mxu1 }
 0x257   :  { %v3740_v43 = vpack.c.bf16 %v2893_v35, %v2892_v36  ;;  %v2586_v7 = vadd.f32 %v2527_v26, %v2227_v62  ;;  %v1877_v58 = vadd.f32 %v1819_v11, %v4480_v33 }
 0x258   :  { %v2769_v13 = vpop.f32.mrf.mxu0 }
 0x259   :  { %3795 = vst [vmem:[%s4798_s4 + $0x30] sm:$0xff] %v3740_v43   ;;  %v2826_v23 = vadd.f32 %v2767_v63, %v2586_v7 }
 0x25b   :  { %v2862_v31 = vadd.f32 %v4620_v41, %v2826_v23 }
 0x25c   :  { %v2170_v42 = vpop.f32.mrf.mxu2 }
 0x25d   :  { %v2228_v24 = vadd.f32 %v2170_v42, %v1877_v58  ;;  %v2529_v38 = vpop.f32.mrf.mxu3  ;;  %v2894_v3 = vmax.f32 %v2862_v31, 0.0 }
 0x25e   :  { %v1822_v14 = vpop.f32.mrf.mxu1 }
 0x25f   :  { %v2587_v57 = vadd.f32 %v2529_v38, %v2228_v24  ;;  %v1878_v18 = vadd.f32 %v1822_v14, %v4485_v16 }
 0x260   :  { %v2772_v34 = vpop.f32.mrf.mxu0 }
 0x261   :  { %v2827_v17 = vadd.f32 %v2769_v13, %v2587_v57 }
 0x263   :  { %v2863_v49 = vadd.f32 %v4620_v41, %v2827_v17 }
 0x264   :  { %v2173_v20 = vpop.f32.mrf.mxu2 }
 0x265   :  { %v2895_v54 = vmax.f32 %v2863_v49, 0.0  ;;  %v2229_v22 = vadd.f32 %v2173_v20, %v1878_v18  ;;  %v2532_v2 = vpop.f32.mrf.mxu3 }
 0x266   :  { %v1824_v33 = vpop.f32.mrf.mxu1 }
 0x267   :  { %v3745_v12 = vpack.c.bf16 %v2895_v54, %v2894_v3  ;;  %v2588_v19 = vadd.f32 %v2532_v2, %v2229_v22  ;;  %v1879_v59 = vadd.f32 %v1824_v33, %v4497_v50 }
 0x268   :  { %v2774_v46 = vpop.f32.mrf.mxu0 }
 0x269   :  { %3796 = vst [vmem:[%s4798_s4 + $0x38] sm:$0xff] %v3745_v12   ;;  %v2828_v0 = vadd.f32 %v2772_v34, %v2588_v19 }
 0x26b   :  { %v2864_v60 = vadd.f32 %v4620_v41, %v2828_v0 }
 0x26c   :  { %v2175_v25 = vpop.f32.mrf.mxu2 }
 0x26d   :  { %v2230_v53 = vadd.f32 %v2175_v25, %v1879_v59  ;;  %v2534_v4 = vpop.f32.mrf.mxu3  ;;  %v2896_v9 = vmax.f32 %v2864_v60, 0.0 }
 0x26e   :  { %v1827_v16 = vpop.f32.mrf.mxu1 }
 0x26f   :  { %v2589_v10 = vadd.f32 %v2534_v4, %v2230_v53  ;;  %v1880_v63 = vadd.f32 %v1827_v16, %v4502_v28 }
 0x270   :  { %v2777_v30 = vpop.f32.mrf.mxu0 }
 0x271   :  { %v2829_v29 = vadd.f32 %v2774_v46, %v2589_v10 }
 0x273   :  { %v2865_v47 = vadd.f32 %v4620_v41, %v2829_v29 }
 0x274   :  { %v2178_v6 = vpop.f32.mrf.mxu2 }
 0x275   :  { %v2897_v55 = vmax.f32 %v2865_v47, 0.0  ;;  %v2231_v48 = vadd.f32 %v2178_v6, %v1880_v63  ;;  %v2537_v56 = vpop.f32.mrf.mxu3 }
 0x276   :  { %v1829_v50 = vpop.f32.mrf.mxu1 }
 0x277   :  { %v3750_v40 = vpack.c.bf16 %v2897_v55, %v2896_v9  ;;  %v2590_v36 = vadd.f32 %v2537_v56, %v2231_v48  ;;  %v1881_v35 = vadd.f32 %v1829_v50, %v4513_v21 }
 0x278   :  { %v2779_v39 = vpop.f32.mrf.mxu0 }
 0x279   :  { %3797 = vst [vmem:[%s4798_s4 + $0x40] sm:$0xff] %v3750_v40   ;;  %v2830_v26 = vadd.f32 %v2777_v30, %v2590_v36 }
 0x27b   :  { %v2866_v58 = vadd.f32 %v4620_v41, %v2830_v26 }
 0x27c   :  { %v2180_v62 = vpop.f32.mrf.mxu2 }
 0x27d   :  { %v2232_v11 = vadd.f32 %v2180_v62, %v1881_v35  ;;  %v2539_v43 = vpop.f32.mrf.mxu3  ;;  %v2898_v14 = vmax.f32 %v2866_v58, 0.0 }
 0x27e   :  { %v1832_v28 = vpop.f32.mrf.mxu1 }
 0x27f   :  { %v2591_v13 = vadd.f32 %v2539_v43, %v2232_v11  ;;  %v1882_v24 = vadd.f32 %v1832_v28, %v4518_v8 }
 0x280   :  { %v2782_v7 = vpop.f32.mrf.mxu0 }
 0x281   :  { %v2831_v42 = vadd.f32 %v2779_v39, %v2591_v13 }
 0x283   :  { %v2867_v23 = vadd.f32 %v4620_v41, %v2831_v42 }
 0x284   :  { %v2183_v38 = vpop.f32.mrf.mxu2 }
 0x285   :  { %v2899_v57 = vmax.f32 %v2867_v23, 0.0  ;;  %v2233_v34 = vadd.f32 %v2183_v38, %v1882_v24  ;;  %v2542_v31 = vpop.f32.mrf.mxu3 }
 0x286   :  { %v1834_v21 = vpop.f32.mrf.mxu1 }
 0x287   :  { %v3755_v17 = vpack.c.bf16 %v2899_v57, %v2898_v14  ;;  %v2592_v18 = vadd.f32 %v2542_v31, %v2233_v34  ;;  %v1883_v20 = vadd.f32 %v1834_v21, %v4529_v44 }
 0x288   :  { %v2784_v49 = vpop.f32.mrf.mxu0 }
 0x289   :  { %3798 = vst [vmem:[%s4798_s4 + $0x48] sm:$0xff] %v3755_v17   ;;  %v2832_v54 = vadd.f32 %v2782_v7, %v2592_v18 }
 0x28b   :  { %v2868_v46 = vadd.f32 %v4620_v41, %v2832_v54 }
 0x28c   :  { %v2185_v3 = vpop.f32.mrf.mxu2 }
 0x28d   :  { %v2234_v22 = vadd.f32 %v2185_v3, %v1883_v20  ;;  %v2544_v2 = vpop.f32.mrf.mxu3  ;;  %v2900_v53 = vmax.f32 %v2868_v46, 0.0 }
 0x28e   :  { %v1837_v8 = vpop.f32.mrf.mxu1 }
 0x28f   :  { %v2593_v33 = vadd.f32 %v2544_v2, %v2234_v22  ;;  %v1884_v25 = vadd.f32 %v1837_v8, %v4534_v5 }
 0x290   :  { %v2787_v12 = vpop.f32.mrf.mxu0 }
 0x291   :  { %v2833_v19 = vadd.f32 %v2784_v49, %v2593_v33 }
 0x293   :  { %v2869_v59 = vadd.f32 %v4620_v41, %v2833_v19 }
 0x294   :  { %v2188_v0 = vpop.f32.mrf.mxu2 }
 0x295   :  { %v2901_v4 = vmax.f32 %v2869_v59, 0.0  ;;  %v2235_v16 = vadd.f32 %v2188_v0, %v1884_v25  ;;  %v2547_v10 = vpop.f32.mrf.mxu3 }
 0x296   :  { %v1839_v44 = vpop.f32.mrf.mxu1 }
 0x297   :  { %v3760_v30 = vpack.c.bf16 %v2901_v4, %v2900_v53  ;;  %v2594_v29 = vadd.f32 %v2547_v10, %v2235_v16  ;;  %v1885_v47 = vadd.f32 %v1839_v44, %v4545_v52 }
 0x298   :  { %v2789_v60 = vpop.f32.mrf.mxu0 }
 0x299   :  { %3799 = vst [vmem:[%s4798_s4 + $0x50] sm:$0xff] %v3760_v30   ;;  %v2834_v6 = vadd.f32 %v2787_v12, %v2594_v29 }
 0x29b   :  { %v2870_v50 = vadd.f32 %v4620_v41, %v2834_v6 }
 0x29c   :  { %v2190_v63 = vpop.f32.mrf.mxu2 }
 0x29d   :  { %v2236_v9 = vadd.f32 %v2190_v63, %v1885_v47  ;;  %v2549_v55 = vpop.f32.mrf.mxu3  ;;  %v2902_v62 = vmax.f32 %v2870_v50, 0.0 }
 0x29e   :  { %v1842_v5 = vpop.f32.mrf.mxu1 }
 0x29f   :  { %v2595_v48 = vadd.f32 %v2549_v55, %v2236_v9  ;;  %v1886_v36 = vadd.f32 %v1842_v5, %v4550_v61 }
 0x2a0   :  { %v2792_v56 = vpop.f32.mrf.mxu0 }
 0x2a1   :  { %v2835_v40 = vadd.f32 %v2789_v60, %v2595_v48 }
 0x2a3   :  { %v2871_v39 = vadd.f32 %v4620_v41, %v2835_v40 }
 0x2a4   :  { %v2193_v35 = vpop.f32.mrf.mxu2 }
 0x2a5   :  { %v2903_v26 = vmax.f32 %v2871_v39, 0.0  ;;  %v2237_v11 = vadd.f32 %v2193_v35, %v1886_v36  ;;  %v2552_v43 = vpop.f32.mrf.mxu3 }
 0x2a6   :  { %v1844_v52 = vpop.f32.mrf.mxu1 }
 0x2a7   :  { %v3765_v28 = vpack.c.bf16 %v2903_v26, %v2902_v62  ;;  %v2596_v7 = vadd.f32 %v2552_v43, %v2237_v11  ;;  %v1887_v58 = vadd.f32 %v1844_v52, %v4561_v51 }
 0x2a8   :  { %v2794_v13 = vpop.f32.mrf.mxu0 }
 0x2a9   :  { %3800 = vst [vmem:[%s4798_s4 + $0x58] sm:$0xff] %v3765_v28   ;;  %v2836_v23 = vadd.f32 %v2792_v56, %v2596_v7 }
 0x2ab   :  { %v2872_v34 = vadd.f32 %v4620_v41, %v2836_v23 }
 0x2ac   :  { %v2195_v42 = vpop.f32.mrf.mxu2 }
 0x2ad   :  { %v2238_v24 = vadd.f32 %v2195_v42, %v1887_v58  ;;  %v2554_v38 = vpop.f32.mrf.mxu3  ;;  %v2904_v18 = vmax.f32 %v2872_v34, 0.0 }
 0x2ae   :  { %v1847_v61 = vpop.f32.mrf.mxu1 }
 0x2af   :  { %v2597_v14 = vadd.f32 %v2554_v38, %v2238_v24  ;;  %v1888_v17 = vadd.f32 %v1847_v61, %v4566_v37 }
 0x2b0   :  { %v2797_v57 = vpop.f32.mrf.mxu0 }
 0x2b1   :  { %v2837_v31 = vadd.f32 %v2794_v13, %v2597_v14 }
 0x2b3   :  { %v2873_v21 = vadd.f32 %v4620_v41, %v2837_v31 }
 0x2b4   :  { %v2198_v49 = vpop.f32.mrf.mxu2 }
 0x2b5   :  { %v2905_v20 = vmax.f32 %v2873_v21, 0.0  ;;  %v2239_v3 = vadd.f32 %v2198_v49, %v1888_v17  ;;  %v2557_v54 = vpop.f32.mrf.mxu3 }
 0x2b6   :  { %v1849_v51 = vpop.f32.mrf.mxu1 }
 0x2b7   :  { %v3770_v22 = vpack.c.bf16 %v2905_v20, %v2904_v18  ;;  %v2598_v8 = vadd.f32 %v2557_v54, %v2239_v3  ;;  %v1889_v33 = vadd.f32 %v1849_v51, %v4577_v32 }
 0x2b8   :  { %v2799_v2 = vpop.f32.mrf.mxu0 }
 0x2b9   :  { %3801 = vst [vmem:[%s4798_s4 + $0x60] sm:$0xff] %v3770_v22   ;;  %v2838_v46 = vadd.f32 %v2797_v57, %v2598_v8 }
 0x2bb   :  { %v2874_v0 = vadd.f32 %v4620_v41, %v2838_v46 }
 0x2bc   :  { %v2200_v12 = vpop.f32.mrf.mxu2 }
 0x2bd   :  { %v2240_v19 = vadd.f32 %v2200_v12, %v1889_v33  ;;  %v2559_v59 = vpop.f32.mrf.mxu3  ;;  %v2906_v30 = vmax.f32 %v2874_v0, 0.0 }
 0x2be   :  { %v1852_v37 = vpop.f32.mrf.mxu1 }
 0x2bf   :  { %v2599_v25 = vadd.f32 %v2559_v59, %v2240_v19  ;;  %v1890_v10 = vadd.f32 %v1852_v37, %v4582_v1 }
 0x2c0   :  { %v2802_v4 = vpop.f32.mrf.mxu0 }
 0x2c1   :  { %v2839_v53 = vadd.f32 %v2799_v2, %v2599_v25 }
 0x2c3   :  { %v2875_v16 = vadd.f32 %v4620_v41, %v2839_v53 }
 0x2c4   :  { %v2203_v44 = vpop.f32.mrf.mxu2 }
 0x2c5   :  { %v2907_v60 = vmax.f32 %v2875_v16, 0.0  ;;  %v2241_v29 = vadd.f32 %v2203_v44, %v1890_v10  ;;  %v2562_v47 = vpop.f32.mrf.mxu3 }
 0x2c6   :  { %v1854_v32 = vpop.f32.mrf.mxu1 }
 0x2c7   :  { %v3775_v63 = vpack.c.bf16 %v2907_v60, %v2906_v30  ;;  %v2600_v6 = vadd.f32 %v2562_v47, %v2241_v29  ;;  %v1891_v9 = vadd.f32 %v1854_v32, %v4593_v45 }
 0x2c8   :  { %v2804_v55 = vpop.f32.mrf.mxu0 }
 0x2c9   :  { %3802 = vst [vmem:[%s4798_s4 + $0x68] sm:$0xff] %v3775_v63   ;;  %v2840_v48 = vadd.f32 %v2802_v4, %v2600_v6 }
 0x2cb   :  { %v2876_v39 = vadd.f32 %v4620_v41, %v2840_v48 }
 0x2cc   :  { %v2205_v5 = vpop.f32.mrf.mxu2 }
 0x2cd   :  { %v2242_v56 = vadd.f32 %v2205_v5, %v1891_v9  ;;  %v2564_v50 = vpop.f32.mrf.mxu3  ;;  %v2908_v11 = vmax.f32 %v2876_v39, 0.0 }
 0x2ce   :  { %v1857_v1 = vpop.f32.mrf.mxu1 }
 0x2cf   :  { %v2601_v40 = vadd.f32 %v2564_v50, %v2242_v56  ;;  %v1892_v62 = vadd.f32 %v1857_v1, %v4598_v27 }
 0x2d0   :  { %v2807_v45 = vpop.f32.mrf.mxu0 }
 0x2d1   :  { %v2841_v36 = vadd.f32 %v2804_v55, %v2601_v40 }
 0x2d3   :  { %v2877_v35 = vadd.f32 %v4620_v41, %v2841_v36 }
 0x2d4   :  { %v2208_v26 = vpop.f32.mrf.mxu2 }
 0x2d5   :  { %v2909_v43 = vmax.f32 %v2877_v35, 0.0  ;;  %v2243_v52 = vadd.f32 %v2208_v26, %v1892_v62  ;;  %v2567_v28 = vpop.f32.mrf.mxu3 }
 0x2d6   :  { %v1859_v7 = vpop.f32.mrf.mxu1 }
 0x2d7   :  { %v3780_v13 = vpack.c.bf16 %v2909_v43, %v2908_v11  ;;  %v2602_v58 = vadd.f32 %v2567_v28, %v2243_v52  ;;  %v1893_v42 = vadd.f32 %v1859_v7, %v4609_v15 }
 0x2d8   :  { %v2809_v14 = vpop.f32.mrf.mxu0 }
 0x2d9   :  { %3803 = vst [vmem:[%s4798_s4 + $0x70] sm:$0xff] %v3780_v13   ;;  %v2842_v24 = vadd.f32 %v2807_v45, %v2602_v58 }
 0x2db   :  { %v2878_v57 = vadd.f32 %v4620_v41, %v2842_v24 }
 0x2dc   :  { %v2210_v23 = vpop.f32.mrf.mxu2 }
 0x2dd   :  { %v2244_v38 = vadd.f32 %v2210_v23, %v1893_v42  ;;  %v2569_v61 = vpop.f32.mrf.mxu3  ;;  %v2910_v21 = vmax.f32 %v2878_v57, 0.0 }
 0x2df   :  { %v2603_v27 = vadd.f32 %v2569_v61, %v2244_v38 }
 0x2e1   :  { %v2843_v34 = vadd.f32 %v2809_v14, %v2603_v27 }
 0x2e3   :  { %v2879_v31 = vadd.f32 %v4620_v41, %v2843_v34 }
 0x2e5   :  { %v2911_v17 = vmax.f32 %v2879_v31, 0.0 }
 0x2e7   :  { %v3785_v49 = vpack.c.bf16 %v2911_v17, %v2910_v21 }
 0x2e9   :  { %3804 = vst [vmem:[%s4798_s4 + $0x78] sm:$0xff] %v3785_v49  }

</bundles_post_ra>
